<compile_context>
chip_gen: v7x
topology: tpu7x:2x2x1
jax: 0.10.0
libtpu: 0.0.40
codegen_flags: <defaults>
</compile_context>

<pallas_src>
import math
import jax
import jax.numpy as jnp
from jax.experimental import pallas as pl
from jax.experimental.pallas import tpu as pltpu

# --- small synthetic config (hidden_size analogue of config.hidden_size) -----
B, S, H = 2, 16, 128          # batch, sequence, hidden
BS = B * S
NUM_HEADS = 4
HEAD_DIM = H // NUM_HEADS
FFN = 256
NUM_LAYERS = 2
VOCAB = 100
STD = 0.02                    # config.initializer_range
EPS = 1e-7
OUT_PAD = 128                 # lane-dense padded width for the CLS-head output


def _layer_norm(x, gamma, beta, eps=EPS):
    mu = jnp.mean(x, axis=-1, keepdims=True)
    var = jnp.mean(jnp.square(x - mu), axis=-1, keepdims=True)
    return (x - mu) * jax.lax.rsqrt(var + eps) * gamma + beta


# ----------------------------- fused Pallas kernel ----------------------------
def fused_forward_kernel(emb_ref, bias_ref, ln0_ref,
                         wq_ref, wk_ref, wv_ref, wo_ref,
                         vecH_ref, w1_ref, b1_ref, w2_ref,
                         wh_ref, bh_ref, o_ref):
    # Activations: whole batch as one (BS, H) tile, f32.
    x = emb_ref[...].astype(jnp.float32)                       # (BS, H)
    ln0 = ln0_ref[...]                                          # (2, H): [gamma; beta]
    x = _layer_norm(x, ln0[0], ln0[1])                          # embedding LayerNorm

    bias = bias_ref[...]                                        # (BS, BS) additive mask (f32)

    for l in range(NUM_LAYERS):                                 # static unroll over layers
        wq = wq_ref[l]                                          # (H, H) bf16 (pre-scaled)
        wk = wk_ref[l]
        wv = wv_ref[l]
        wo = wo_ref[l]
        w1 = w1_ref[l]                                          # (H, FFN) bf16
        w2 = w2_ref[l]                                          # (FFN, H) bf16
        vecs = vecH_ref[l]                                      # (9, H) f32
        bq, bk, bv, bo = vecs[0], vecs[1], vecs[2], vecs[3]
        g1, be1 = vecs[4], vecs[5]
        b2, g2, be2 = vecs[6], vecs[7], vecs[8]
        b1 = b1_ref[l]                                          # (FFN,) f32

        xb = x.astype(jnp.bfloat16)
        q = jnp.dot(xb, wq, preferred_element_type=jnp.float32) + bq   # (BS, H), scale folded in
        k = jnp.dot(xb, wk, preferred_element_type=jnp.float32) + bk
        v = jnp.dot(xb, wv, preferred_element_type=jnp.float32) + bv

        # Per-head attention on contiguous lane slices; output projection accumulated per head.
        attn = jnp.zeros((BS, H), jnp.float32)
        for h in range(NUM_HEADS):
            lo = h * HEAD_DIM
            qh = q[:, lo:lo + HEAD_DIM].astype(jnp.bfloat16)            # (BS, HD)
            kh = k[:, lo:lo + HEAD_DIM].astype(jnp.bfloat16)
            vh = v[:, lo:lo + HEAD_DIM].astype(jnp.bfloat16)
            s = jax.lax.dot_general(qh, kh, (((1,), (1,)), ((), ())),
                                    preferred_element_type=jnp.float32)  # (BS, BS)
            s = s + bias                                                  # mask + block-diagonal
            m = jnp.max(s, axis=-1, keepdims=True)
            p = jnp.exp(s - m)
            denom = jnp.sum(p, axis=-1, keepdims=True)
            p = p * pl.reciprocal(denom, approx=True)
            ctx = jnp.dot(p.astype(jnp.bfloat16), vh,
                          preferred_element_type=jnp.float32)             # (BS, HD)
            attn = attn + jnp.dot(ctx.astype(jnp.bfloat16),
                                  wo[lo:lo + HEAD_DIM, :],
                                  preferred_element_type=jnp.float32)     # (BS, H)
        attn = attn + bo

        h1 = _layer_norm(x + attn, g1, be1)
        f = jnp.dot(h1.astype(jnp.bfloat16), w1,
                    preferred_element_type=jnp.float32) + b1              # (BS, FFN)
        # TODO(synk): DeBERTa uses exact (erf) GELU; tanh approximation used here.
        f = jax.nn.gelu(f, approximate=True)
        f = jnp.dot(f.astype(jnp.bfloat16), w2,
                    preferred_element_type=jnp.float32) + b2              # (BS, H)
        x = _layer_norm(h1 + f, g2, be2)

    # CLS head epilogue: features[:, 0, :] @ W + b, lane-dense padded output.
    cls = jnp.concatenate([x[b * S:b * S + 1, :] for b in range(B)], axis=0)  # (B, H)
    out = jnp.dot(cls, wh_ref[...], preferred_element_type=jnp.float32) + bh_ref[...]
    o_ref[...] = out.astype(o_ref.dtype)                                  # (B, OUT_PAD)


# ----------------------------- wrappers ---------------------------------------
def pack_params(params):
    """Stack per-layer weights (layer-major), cast matmul weights to bf16,
    fold 1/sqrt(HEAD_DIM) into wq/bq, pad the head to a lane-dense width."""
    scale = 1.0 / math.sqrt(HEAD_DIM)
    layers = params['layers']
    wq = jnp.stack([lp['wq'] * scale for lp in layers]).astype(jnp.bfloat16)   # (L, H, H)
    wk = jnp.stack([lp['wk'] for lp in layers]).astype(jnp.bfloat16)
    wv = jnp.stack([lp['wv'] for lp in layers]).astype(jnp.bfloat16)
    wo = jnp.stack([lp['wo'] for lp in layers]).astype(jnp.bfloat16)
    w1 = jnp.stack([lp['w1'] for lp in layers]).astype(jnp.bfloat16)           # (L, H, FFN)
    w2 = jnp.stack([lp['w2'] for lp in layers]).astype(jnp.bfloat16)           # (L, FFN, H)
    vecH = jnp.stack([jnp.stack([lp['bq'] * scale, lp['bk'], lp['bv'], lp['bo'],
                                 lp['g1'], lp['be1'], lp['b2'], lp['g2'], lp['be2']])
                      for lp in layers]).astype(jnp.float32)                   # (L, 9, H)
    b1 = jnp.stack([lp['b1'] for lp in layers]).astype(jnp.float32)            # (L, FFN)
    ln0 = jnp.stack([params['emb_ln_g'], params['emb_ln_b']]).astype(jnp.float32)  # (2, H)
    wh = jnp.pad(params['w_head'], ((0, 0), (0, OUT_PAD - 1))).astype(jnp.float32)   # (H, OUT_PAD)
    bh = jnp.pad(params['b_head'][None, :], ((0, 0), (0, OUT_PAD - 1))).astype(jnp.float32)
    return dict(wq=wq, wk=wk, wv=wv, wo=wo, w1=w1, w2=w2,
                vecH=vecH, b1=b1, ln0=ln0, wh=wh, bh=bh)


def model_forward(params, input_ids, attention_mask):
    pk = pack_params(params)

    # Embedding lookup stays in XLA (gather is not a Pallas hot path at these sizes).
    ids = input_ids.reshape(-1)
    emb = jnp.take(params['tok_emb'], ids, axis=0)                 # (BS, H)
    emb = emb + jnp.tile(params['pos_emb'], (B, 1))                # absolute positions
    emb = emb.astype(jnp.float32)

    # Additive attention bias: block-diagonal over the folded batch + key-padding mask.
    batch_idx = jnp.arange(BS) // S
    same_batch = batch_idx[:, None] == batch_idx[None, :]
    key_valid = (attention_mask.reshape(BS) > 0)[None, :]
    bias = jnp.where(same_batch & key_valid, 0.0, -1e9).astype(jnp.float32)   # (BS, BS)

    out = pl.pallas_call(
        fused_forward_kernel,
        out_shape=jax.ShapeDtypeStruct((B, OUT_PAD), jnp.float32),
        compiler_params=pltpu.CompilerParams(vmem_limit_bytes=32 * 1024 * 1024),
    )(emb, bias, pk['ln0'],
      pk['wq'], pk['wk'], pk['wv'], pk['wo'],
      pk['vecH'], pk['w1'], pk['b1'], pk['w2'],
      pk['wh'], pk['bh'])
    return out[:, :1]                                              # (B, 1)


# ----------------------------- parameter init ---------------------------------
def init_params(key):
    ks = iter(jax.random.split(key, 8 + 8 * NUM_LAYERS))

    def normal(shape):
        return (STD * jax.random.normal(next(ks), shape)).astype(jnp.float32)

    params = {
        'tok_emb': normal((VOCAB, H)),
        'pos_emb': normal((S, H)),
        'emb_ln_g': jnp.ones((H,), jnp.float32),
        'emb_ln_b': jnp.zeros((H,), jnp.float32),
        'layers': [],
        # self.head = nn.Linear(hidden_size, 1); init N(0, initializer_range), bias 0
        'w_head': normal((H, 1)),
        'b_head': jnp.zeros((1,), jnp.float32),
    }
    for _ in range(NUM_LAYERS):
        params['layers'].append({
            'wq': normal((H, H)), 'bq': jnp.zeros((H,), jnp.float32),
            'wk': normal((H, H)), 'bk': jnp.zeros((H,), jnp.float32),
            'wv': normal((H, H)), 'bv': jnp.zeros((H,), jnp.float32),
            'wo': normal((H, H)), 'bo': jnp.zeros((H,), jnp.float32),
            'g1': jnp.ones((H,), jnp.float32), 'be1': jnp.zeros((H,), jnp.float32),
            'w1': normal((H, FFN)), 'b1': jnp.zeros((FFN,), jnp.float32),
            'w2': normal((FFN, H)), 'b2': jnp.zeros((H,), jnp.float32),
            'g2': jnp.ones((H,), jnp.float32), 'be2': jnp.zeros((H,), jnp.float32),
        })
    return params


# ----------------------------- main -------------------------------------------
if __name__ == "__main__":
    root = jax.random.PRNGKey(0)
    k_params, k_ids = jax.random.split(root)

    params = init_params(k_params)
    input_ids = jax.random.randint(k_ids, (B, S), 0, VOCAB, dtype=jnp.int32)
    attention_mask = jnp.ones((B, S), dtype=jnp.int32)

    out = jax.jit(model_forward)(params, input_ids, attention_mask)
    out = jax.block_until_ready(out)
    assert out.shape == (B, 1), out.shape
    print("KERNEL_OK")
</pallas_src>

<mosaic_0001>
module attributes {stable_mosaic.version = 11 : i64} {
  func.func @fused_forward_kernel(%arg0: memref<32x128xf32, #tpu.memory_space<vmem>>, %arg1: memref<32x32xf32, #tpu.memory_space<vmem>>, %arg2: memref<2x128xf32, #tpu.memory_space<vmem>>, %arg3: memref<2x128x128xbf16, #tpu.memory_space<vmem>>, %arg4: memref<2x128x128xbf16, #tpu.memory_space<vmem>>, %arg5: memref<2x128x128xbf16, #tpu.memory_space<vmem>>, %arg6: memref<2x128x128xbf16, #tpu.memory_space<vmem>>, %arg7: memref<2x9x128xf32, #tpu.memory_space<vmem>>, %arg8: memref<2x128x256xbf16, #tpu.memory_space<vmem>>, %arg9: memref<2x256xf32, #tpu.memory_space<vmem>>, %arg10: memref<2x256x128xbf16, #tpu.memory_space<vmem>>, %arg11: memref<128x128xf32, #tpu.memory_space<vmem>>, %arg12: memref<1x128xf32, #tpu.memory_space<vmem>>, %arg13: memref<2x128xf32, #tpu.memory_space<vmem>>) attributes {dimension_semantics = [], scalar_prefetch = 0 : i64, scratch_operands = 0 : i64, tpu.core_type = #tpu.core_type<tc>} {
    %c0 = arith.constant 0 : index
    %c0_0 = arith.constant 0 : index
    %0 = vector.load %arg0[%c0, %c0_0] : memref<32x128xf32, #tpu.memory_space<vmem>>, vector<32x128xf32>
    %c0_1 = arith.constant 0 : index
    %c0_2 = arith.constant 0 : index
    %1 = vector.load %arg2[%c0_1, %c0_2] : memref<2x128xf32, #tpu.memory_space<vmem>>, vector<2x128xf32>
    %2 = vector.extract_strided_slice %1 {offsets = [0, 0], sizes = [1, 128], strides = [1, 1]} : vector<2x128xf32> to vector<1x128xf32>
    %3 = vector.shape_cast %2 : vector<1x128xf32> to vector<128xf32>
    %4 = vector.extract_strided_slice %1 {offsets = [1, 0], sizes = [1, 128], strides = [1, 1]} : vector<2x128xf32> to vector<1x128xf32>
    %5 = vector.shape_cast %4 : vector<1x128xf32> to vector<128xf32>
    %cst = arith.constant dense<0.000000e+00> : vector<32xf32>
    %6 = vector.multi_reduction <add>, %0, %cst [1] : vector<32x128xf32> to vector<32xf32>
    %7 = vector.shape_cast %6 : vector<32xf32> to vector<32x1xf32>
    %cst_3 = arith.constant 1.280000e+02 : f32
    %8 = vector.broadcast %cst_3 : f32 to vector<32x1xf32>
    %9 = arith.divf %7, %8 : vector<32x1xf32>
    %10 = vector.broadcast %9 : vector<32x1xf32> to vector<32x128xf32>
    %11 = arith.subf %0, %10 : vector<32x128xf32>
    %12 = arith.mulf %11, %11 : vector<32x128xf32>
    %cst_4 = arith.constant dense<0.000000e+00> : vector<32xf32>
    %13 = vector.multi_reduction <add>, %12, %cst_4 [1] : vector<32x128xf32> to vector<32xf32>
    %14 = vector.shape_cast %13 : vector<32xf32> to vector<32x1xf32>
    %cst_5 = arith.constant 1.280000e+02 : f32
    %15 = vector.broadcast %cst_5 : f32 to vector<32x1xf32>
    %16 = arith.divf %14, %15 : vector<32x1xf32>
    %17 = vector.broadcast %9 : vector<32x1xf32> to vector<32x128xf32>
    %18 = arith.subf %0, %17 : vector<32x128xf32>
    %cst_6 = arith.constant 1.000000e-07 : f32
    %19 = vector.broadcast %cst_6 : f32 to vector<32x1xf32>
    %20 = arith.addf %16, %19 : vector<32x1xf32>
    %21 = math.rsqrt %20 : vector<32x1xf32>
    %22 = vector.broadcast %21 : vector<32x1xf32> to vector<32x128xf32>
    %23 = arith.mulf %18, %22 : vector<32x128xf32>
    %24 = vector.shape_cast %3 : vector<128xf32> to vector<1x128xf32>
    %25 = vector.broadcast %24 : vector<1x128xf32> to vector<32x128xf32>
    %26 = arith.mulf %23, %25 : vector<32x128xf32>
    %27 = vector.shape_cast %5 : vector<128xf32> to vector<1x128xf32>
    %28 = vector.broadcast %27 : vector<1x128xf32> to vector<32x128xf32>
    %29 = arith.addf %26, %28 : vector<32x128xf32>
    %c0_7 = arith.constant 0 : index
    %c0_8 = arith.constant 0 : index
    %30 = vector.load %arg1[%c0_7, %c0_8] : memref<32x32xf32, #tpu.memory_space<vmem>>, vector<32x32xf32>
    %c0_9 = arith.constant 0 : index
    %c0_10 = arith.constant 0 : index
    %c0_11 = arith.constant 0 : index
    %31 = vector.load %arg3[%c0_9, %c0_10, %c0_11] : memref<2x128x128xbf16, #tpu.memory_space<vmem>>, vector<1x128x128xbf16>
    %32 = vector.shape_cast %31 : vector<1x128x128xbf16> to vector<128x128xbf16>
    %c0_12 = arith.constant 0 : index
    %c0_13 = arith.constant 0 : index
    %c0_14 = arith.constant 0 : index
    %33 = vector.load %arg4[%c0_12, %c0_13, %c0_14] : memref<2x128x128xbf16, #tpu.memory_space<vmem>>, vector<1x128x128xbf16>
    %34 = vector.shape_cast %33 : vector<1x128x128xbf16> to vector<128x128xbf16>
    %c0_15 = arith.constant 0 : index
    %c0_16 = arith.constant 0 : index
    %c0_17 = arith.constant 0 : index
    %35 = vector.load %arg5[%c0_15, %c0_16, %c0_17] : memref<2x128x128xbf16, #tpu.memory_space<vmem>>, vector<1x128x128xbf16>
    %36 = vector.shape_cast %35 : vector<1x128x128xbf16> to vector<128x128xbf16>
    %c0_18 = arith.constant 0 : index
    %c0_19 = arith.constant 0 : index
    %c0_20 = arith.constant 0 : index
    %37 = vector.load %arg6[%c0_18, %c0_19, %c0_20] : memref<2x128x128xbf16, #tpu.memory_space<vmem>>, vector<1x128x128xbf16>
    %38 = vector.shape_cast %37 : vector<1x128x128xbf16> to vector<128x128xbf16>
    %c0_21 = arith.constant 0 : index
    %c0_22 = arith.constant 0 : index
    %c0_23 = arith.constant 0 : index
    %39 = vector.load %arg8[%c0_21, %c0_22, %c0_23] : memref<2x128x256xbf16, #tpu.memory_space<vmem>>, vector<1x128x256xbf16>
    %40 = vector.shape_cast %39 : vector<1x128x256xbf16> to vector<128x256xbf16>
    %c0_24 = arith.constant 0 : index
    %c0_25 = arith.constant 0 : index
    %c0_26 = arith.constant 0 : index
    %41 = vector.load %arg10[%c0_24, %c0_25, %c0_26] : memref<2x256x128xbf16, #tpu.memory_space<vmem>>, vector<1x256x128xbf16>
    %42 = vector.shape_cast %41 : vector<1x256x128xbf16> to vector<256x128xbf16>
    %c0_27 = arith.constant 0 : index
    %c0_28 = arith.constant 0 : index
    %c0_29 = arith.constant 0 : index
    %43 = vector.load %arg7[%c0_27, %c0_28, %c0_29] : memref<2x9x128xf32, #tpu.memory_space<vmem>>, vector<1x9x128xf32>
    %44 = vector.shape_cast %43 : vector<1x9x128xf32> to vector<9x128xf32>
    %45 = vector.extract_strided_slice %44 {offsets = [0, 0], sizes = [1, 128], strides = [1, 1]} : vector<9x128xf32> to vector<1x128xf32>
    %46 = vector.shape_cast %45 : vector<1x128xf32> to vector<128xf32>
    %47 = vector.extract_strided_slice %44 {offsets = [1, 0], sizes = [1, 128], strides = [1, 1]} : vector<9x128xf32> to vector<1x128xf32>
    %48 = vector.shape_cast %47 : vector<1x128xf32> to vector<128xf32>
    %49 = vector.extract_strided_slice %44 {offsets = [2, 0], sizes = [1, 128], strides = [1, 1]} : vector<9x128xf32> to vector<1x128xf32>
    %50 = vector.shape_cast %49 : vector<1x128xf32> to vector<128xf32>
    %51 = vector.extract_strided_slice %44 {offsets = [3, 0], sizes = [1, 128], strides = [1, 1]} : vector<9x128xf32> to vector<1x128xf32>
    %52 = vector.shape_cast %51 : vector<1x128xf32> to vector<128xf32>
    %53 = vector.extract_strided_slice %44 {offsets = [4, 0], sizes = [1, 128], strides = [1, 1]} : vector<9x128xf32> to vector<1x128xf32>
    %54 = vector.shape_cast %53 : vector<1x128xf32> to vector<128xf32>
    %55 = vector.extract_strided_slice %44 {offsets = [5, 0], sizes = [1, 128], strides = [1, 1]} : vector<9x128xf32> to vector<1x128xf32>
    %56 = vector.shape_cast %55 : vector<1x128xf32> to vector<128xf32>
    %57 = vector.extract_strided_slice %44 {offsets = [6, 0], sizes = [1, 128], strides = [1, 1]} : vector<9x128xf32> to vector<1x128xf32>
    %58 = vector.shape_cast %57 : vector<1x128xf32> to vector<128xf32>
    %59 = vector.extract_strided_slice %44 {offsets = [7, 0], sizes = [1, 128], strides = [1, 1]} : vector<9x128xf32> to vector<1x128xf32>
    %60 = vector.shape_cast %59 : vector<1x128xf32> to vector<128xf32>
    %61 = vector.extract_strided_slice %44 {offsets = [8, 0], sizes = [1, 128], strides = [1, 1]} : vector<9x128xf32> to vector<1x128xf32>
    %62 = vector.shape_cast %61 : vector<1x128xf32> to vector<128xf32>
    %c0_30 = arith.constant 0 : index
    %c0_31 = arith.constant 0 : index
    %63 = vector.load %arg9[%c0_30, %c0_31] : memref<2x256xf32, #tpu.memory_space<vmem>>, vector<1x256xf32>
    %64 = vector.shape_cast %63 : vector<1x256xf32> to vector<256xf32>
    %65 = arith.truncf %29 : vector<32x128xf32> to vector<32x128xbf16>
    %cst_32 = arith.constant dense<0.000000e+00> : vector<32x128xf32>
    %66 = tpu.matmul %65, %32, %cst_32 {dimension_numbers = #tpu.dot_dimension_numbers<[1], [0], [0], [1], [0, 0, 1, 1], [], []>} : vector<32x128xbf16>, vector<128x128xbf16>, vector<32x128xf32> -> vector<32x128xf32>
    %67 = vector.shape_cast %46 : vector<128xf32> to vector<1x128xf32>
    %68 = vector.broadcast %67 : vector<1x128xf32> to vector<32x128xf32>
    %69 = arith.addf %66, %68 : vector<32x128xf32>
    %cst_33 = arith.constant dense<0.000000e+00> : vector<32x128xf32>
    %70 = tpu.matmul %65, %34, %cst_33 {dimension_numbers = #tpu.dot_dimension_numbers<[1], [0], [0], [1], [0, 0, 1, 1], [], []>} : vector<32x128xbf16>, vector<128x128xbf16>, vector<32x128xf32> -> vector<32x128xf32>
    %71 = vector.shape_cast %48 : vector<128xf32> to vector<1x128xf32>
    %72 = vector.broadcast %71 : vector<1x128xf32> to vector<32x128xf32>
    %73 = arith.addf %70, %72 : vector<32x128xf32>
    %cst_34 = arith.constant dense<0.000000e+00> : vector<32x128xf32>
    %74 = tpu.matmul %65, %36, %cst_34 {dimension_numbers = #tpu.dot_dimension_numbers<[1], [0], [0], [1], [0, 0, 1, 1], [], []>} : vector<32x128xbf16>, vector<128x128xbf16>, vector<32x128xf32> -> vector<32x128xf32>
    %75 = vector.shape_cast %50 : vector<128xf32> to vector<1x128xf32>
    %76 = vector.broadcast %75 : vector<1x128xf32> to vector<32x128xf32>
    %77 = arith.addf %74, %76 : vector<32x128xf32>
    %cst_35 = arith.constant 0.000000e+00 : f32
    %78 = vector.broadcast %cst_35 : f32 to vector<32x128xf32>
    %79 = vector.extract_strided_slice %69 {offsets = [0, 0], sizes = [32, 32], strides = [1, 1]} : vector<32x128xf32> to vector<32x32xf32>
    %80 = arith.truncf %79 : vector<32x32xf32> to vector<32x32xbf16>
    %81 = vector.extract_strided_slice %73 {offsets = [0, 0], sizes = [32, 32], strides = [1, 1]} : vector<32x128xf32> to vector<32x32xf32>
    %82 = arith.truncf %81 : vector<32x32xf32> to vector<32x32xbf16>
    %83 = vector.extract_strided_slice %77 {offsets = [0, 0], sizes = [32, 32], strides = [1, 1]} : vector<32x128xf32> to vector<32x32xf32>
    %84 = arith.truncf %83 : vector<32x32xf32> to vector<32x32xbf16>
    %cst_36 = arith.constant dense<0.000000e+00> : vector<32x32xf32>
    %85 = tpu.matmul %80, %82, %cst_36 {dimension_numbers = #tpu.dot_dimension_numbers<[1], [1], [0], [0], [0, 0, 1, 0], [], []>} : vector<32x32xbf16>, vector<32x32xbf16>, vector<32x32xf32> -> vector<32x32xf32>
    %86 = arith.addf %85, %30 : vector<32x32xf32>
    %cst_37 = arith.constant dense<0xFF800000> : vector<32xf32>
    %87 = vector.multi_reduction <maximumf>, %86, %cst_37 [1] : vector<32x32xf32> to vector<32xf32>
    %88 = vector.shape_cast %87 : vector<32xf32> to vector<32x1xf32>
    %89 = vector.broadcast %88 : vector<32x1xf32> to vector<32x32xf32>
    %90 = arith.subf %86, %89 : vector<32x32xf32>
    %91 = math.exp %90 : vector<32x32xf32>
    %cst_38 = arith.constant dense<0.000000e+00> : vector<32xf32>
    %92 = vector.multi_reduction <add>, %91, %cst_38 [1] : vector<32x32xf32> to vector<32xf32>
    %93 = vector.shape_cast %92 : vector<32xf32> to vector<32x1xf32>
    %94 = tpu.reciprocal %93 {approx = true} : vector<32x1xf32> -> vector<32x1xf32>
    %95 = vector.broadcast %94 : vector<32x1xf32> to vector<32x32xf32>
    %96 = arith.mulf %91, %95 : vector<32x32xf32>
    %97 = arith.truncf %96 : vector<32x32xf32> to vector<32x32xbf16>
    %cst_39 = arith.constant dense<0.000000e+00> : vector<32x32xf32>
    %98 = tpu.matmul %97, %84, %cst_39 {dimension_numbers = #tpu.dot_dimension_numbers<[1], [0], [0], [1], [0, 0, 1, 1], [], []>} : vector<32x32xbf16>, vector<32x32xbf16>, vector<32x32xf32> -> vector<32x32xf32>
    %99 = arith.truncf %98 : vector<32x32xf32> to vector<32x32xbf16>
    %100 = vector.extract_strided_slice %38 {offsets = [0, 0], sizes = [32, 128], strides = [1, 1]} : vector<128x128xbf16> to vector<32x128xbf16>
    %cst_40 = arith.constant dense<0.000000e+00> : vector<32x128xf32>
    %101 = tpu.matmul %99, %100, %cst_40 {dimension_numbers = #tpu.dot_dimension_numbers<[1], [0], [0], [1], [0, 0, 1, 1], [], []>} : vector<32x32xbf16>, vector<32x128xbf16>, vector<32x128xf32> -> vector<32x128xf32>
    %102 = arith.addf %78, %101 : vector<32x128xf32>
    %103 = vector.extract_strided_slice %69 {offsets = [0, 32], sizes = [32, 32], strides = [1, 1]} : vector<32x128xf32> to vector<32x32xf32>
    %104 = arith.truncf %103 : vector<32x32xf32> to vector<32x32xbf16>
    %105 = vector.extract_strided_slice %73 {offsets = [0, 32], sizes = [32, 32], strides = [1, 1]} : vector<32x128xf32> to vector<32x32xf32>
    %106 = arith.truncf %105 : vector<32x32xf32> to vector<32x32xbf16>
    %107 = vector.extract_strided_slice %77 {offsets = [0, 32], sizes = [32, 32], strides = [1, 1]} : vector<32x128xf32> to vector<32x32xf32>
    %108 = arith.truncf %107 : vector<32x32xf32> to vector<32x32xbf16>
    %cst_41 = arith.constant dense<0.000000e+00> : vector<32x32xf32>
    %109 = tpu.matmul %104, %106, %cst_41 {dimension_numbers = #tpu.dot_dimension_numbers<[1], [1], [0], [0], [0, 0, 1, 0], [], []>} : vector<32x32xbf16>, vector<32x32xbf16>, vector<32x32xf32> -> vector<32x32xf32>
    %110 = arith.addf %109, %30 : vector<32x32xf32>
    %cst_42 = arith.constant dense<0xFF800000> : vector<32xf32>
    %111 = vector.multi_reduction <maximumf>, %110, %cst_42 [1] : vector<32x32xf32> to vector<32xf32>
    %112 = vector.shape_cast %111 : vector<32xf32> to vector<32x1xf32>
    %113 = vector.broadcast %112 : vector<32x1xf32> to vector<32x32xf32>
    %114 = arith.subf %110, %113 : vector<32x32xf32>
    %115 = math.exp %114 : vector<32x32xf32>
    %cst_43 = arith.constant dense<0.000000e+00> : vector<32xf32>
    %116 = vector.multi_reduction <add>, %115, %cst_43 [1] : vector<32x32xf32> to vector<32xf32>
    %117 = vector.shape_cast %116 : vector<32xf32> to vector<32x1xf32>
    %118 = tpu.reciprocal %117 {approx = true} : vector<32x1xf32> -> vector<32x1xf32>
    %119 = vector.broadcast %118 : vector<32x1xf32> to vector<32x32xf32>
    %120 = arith.mulf %115, %119 : vector<32x32xf32>
    %121 = arith.truncf %120 : vector<32x32xf32> to vector<32x32xbf16>
    %cst_44 = arith.constant dense<0.000000e+00> : vector<32x32xf32>
    %122 = tpu.matmul %121, %108, %cst_44 {dimension_numbers = #tpu.dot_dimension_numbers<[1], [0], [0], [1], [0, 0, 1, 1], [], []>} : vector<32x32xbf16>, vector<32x32xbf16>, vector<32x32xf32> -> vector<32x32xf32>
    %123 = arith.truncf %122 : vector<32x32xf32> to vector<32x32xbf16>
    %124 = vector.extract_strided_slice %38 {offsets = [32, 0], sizes = [32, 128], strides = [1, 1]} : vector<128x128xbf16> to vector<32x128xbf16>
    %cst_45 = arith.constant dense<0.000000e+00> : vector<32x128xf32>
    %125 = tpu.matmul %123, %124, %cst_45 {dimension_numbers = #tpu.dot_dimension_numbers<[1], [0], [0], [1], [0, 0, 1, 1], [], []>} : vector<32x32xbf16>, vector<32x128xbf16>, vector<32x128xf32> -> vector<32x128xf32>
    %126 = arith.addf %102, %125 : vector<32x128xf32>
    %127 = vector.extract_strided_slice %69 {offsets = [0, 64], sizes = [32, 32], strides = [1, 1]} : vector<32x128xf32> to vector<32x32xf32>
    %128 = arith.truncf %127 : vector<32x32xf32> to vector<32x32xbf16>
    %129 = vector.extract_strided_slice %73 {offsets = [0, 64], sizes = [32, 32], strides = [1, 1]} : vector<32x128xf32> to vector<32x32xf32>
    %130 = arith.truncf %129 : vector<32x32xf32> to vector<32x32xbf16>
    %131 = vector.extract_strided_slice %77 {offsets = [0, 64], sizes = [32, 32], strides = [1, 1]} : vector<32x128xf32> to vector<32x32xf32>
    %132 = arith.truncf %131 : vector<32x32xf32> to vector<32x32xbf16>
    %cst_46 = arith.constant dense<0.000000e+00> : vector<32x32xf32>
    %133 = tpu.matmul %128, %130, %cst_46 {dimension_numbers = #tpu.dot_dimension_numbers<[1], [1], [0], [0], [0, 0, 1, 0], [], []>} : vector<32x32xbf16>, vector<32x32xbf16>, vector<32x32xf32> -> vector<32x32xf32>
    %134 = arith.addf %133, %30 : vector<32x32xf32>
    %cst_47 = arith.constant dense<0xFF800000> : vector<32xf32>
    %135 = vector.multi_reduction <maximumf>, %134, %cst_47 [1] : vector<32x32xf32> to vector<32xf32>
    %136 = vector.shape_cast %135 : vector<32xf32> to vector<32x1xf32>
    %137 = vector.broadcast %136 : vector<32x1xf32> to vector<32x32xf32>
    %138 = arith.subf %134, %137 : vector<32x32xf32>
    %139 = math.exp %138 : vector<32x32xf32>
    %cst_48 = arith.constant dense<0.000000e+00> : vector<32xf32>
    %140 = vector.multi_reduction <add>, %139, %cst_48 [1] : vector<32x32xf32> to vector<32xf32>
    %141 = vector.shape_cast %140 : vector<32xf32> to vector<32x1xf32>
    %142 = tpu.reciprocal %141 {approx = true} : vector<32x1xf32> -> vector<32x1xf32>
    %143 = vector.broadcast %142 : vector<32x1xf32> to vector<32x32xf32>
    %144 = arith.mulf %139, %143 : vector<32x32xf32>
    %145 = arith.truncf %144 : vector<32x32xf32> to vector<32x32xbf16>
    %cst_49 = arith.constant dense<0.000000e+00> : vector<32x32xf32>
    %146 = tpu.matmul %145, %132, %cst_49 {dimension_numbers = #tpu.dot_dimension_numbers<[1], [0], [0], [1], [0, 0, 1, 1], [], []>} : vector<32x32xbf16>, vector<32x32xbf16>, vector<32x32xf32> -> vector<32x32xf32>
    %147 = arith.truncf %146 : vector<32x32xf32> to vector<32x32xbf16>
    %148 = vector.extract_strided_slice %38 {offsets = [64, 0], sizes = [32, 128], strides = [1, 1]} : vector<128x128xbf16> to vector<32x128xbf16>
    %cst_50 = arith.constant dense<0.000000e+00> : vector<32x128xf32>
    %149 = tpu.matmul %147, %148, %cst_50 {dimension_numbers = #tpu.dot_dimension_numbers<[1], [0], [0], [1], [0, 0, 1, 1], [], []>} : vector<32x32xbf16>, vector<32x128xbf16>, vector<32x128xf32> -> vector<32x128xf32>
    %150 = arith.addf %126, %149 : vector<32x128xf32>
    %151 = vector.extract_strided_slice %69 {offsets = [0, 96], sizes = [32, 32], strides = [1, 1]} : vector<32x128xf32> to vector<32x32xf32>
    %152 = arith.truncf %151 : vector<32x32xf32> to vector<32x32xbf16>
    %153 = vector.extract_strided_slice %73 {offsets = [0, 96], sizes = [32, 32], strides = [1, 1]} : vector<32x128xf32> to vector<32x32xf32>
    %154 = arith.truncf %153 : vector<32x32xf32> to vector<32x32xbf16>
    %155 = vector.extract_strided_slice %77 {offsets = [0, 96], sizes = [32, 32], strides = [1, 1]} : vector<32x128xf32> to vector<32x32xf32>
    %156 = arith.truncf %155 : vector<32x32xf32> to vector<32x32xbf16>
    %cst_51 = arith.constant dense<0.000000e+00> : vector<32x32xf32>
    %157 = tpu.matmul %152, %154, %cst_51 {dimension_numbers = #tpu.dot_dimension_numbers<[1], [1], [0], [0], [0, 0, 1, 0], [], []>} : vector<32x32xbf16>, vector<32x32xbf16>, vector<32x32xf32> -> vector<32x32xf32>
    %158 = arith.addf %157, %30 : vector<32x32xf32>
    %cst_52 = arith.constant dense<0xFF800000> : vector<32xf32>
    %159 = vector.multi_reduction <maximumf>, %158, %cst_52 [1] : vector<32x32xf32> to vector<32xf32>
    %160 = vector.shape_cast %159 : vector<32xf32> to vector<32x1xf32>
    %161 = vector.broadcast %160 : vector<32x1xf32> to vector<32x32xf32>
    %162 = arith.subf %158, %161 : vector<32x32xf32>
    %163 = math.exp %162 : vector<32x32xf32>
    %cst_53 = arith.constant dense<0.000000e+00> : vector<32xf32>
    %164 = vector.multi_reduction <add>, %163, %cst_53 [1] : vector<32x32xf32> to vector<32xf32>
    %165 = vector.shape_cast %164 : vector<32xf32> to vector<32x1xf32>
    %166 = tpu.reciprocal %165 {approx = true} : vector<32x1xf32> -> vector<32x1xf32>
    %167 = vector.broadcast %166 : vector<32x1xf32> to vector<32x32xf32>
    %168 = arith.mulf %163, %167 : vector<32x32xf32>
    %169 = arith.truncf %168 : vector<32x32xf32> to vector<32x32xbf16>
    %cst_54 = arith.constant dense<0.000000e+00> : vector<32x32xf32>
    %170 = tpu.matmul %169, %156, %cst_54 {dimension_numbers = #tpu.dot_dimension_numbers<[1], [0], [0], [1], [0, 0, 1, 1], [], []>} : vector<32x32xbf16>, vector<32x32xbf16>, vector<32x32xf32> -> vector<32x32xf32>
    %171 = arith.truncf %170 : vector<32x32xf32> to vector<32x32xbf16>
    %172 = vector.extract_strided_slice %38 {offsets = [96, 0], sizes = [32, 128], strides = [1, 1]} : vector<128x128xbf16> to vector<32x128xbf16>
    %cst_55 = arith.constant dense<0.000000e+00> : vector<32x128xf32>
    %173 = tpu.matmul %171, %172, %cst_55 {dimension_numbers = #tpu.dot_dimension_numbers<[1], [0], [0], [1], [0, 0, 1, 1], [], []>} : vector<32x32xbf16>, vector<32x128xbf16>, vector<32x128xf32> -> vector<32x128xf32>
    %174 = arith.addf %150, %173 : vector<32x128xf32>
    %175 = vector.shape_cast %52 : vector<128xf32> to vector<1x128xf32>
    %176 = vector.broadcast %175 : vector<1x128xf32> to vector<32x128xf32>
    %177 = arith.addf %174, %176 : vector<32x128xf32>
    %178 = arith.addf %29, %177 : vector<32x128xf32>
    %cst_56 = arith.constant dense<0.000000e+00> : vector<32xf32>
    %179 = vector.multi_reduction <add>, %178, %cst_56 [1] : vector<32x128xf32> to vector<32xf32>
    %180 = vector.shape_cast %179 : vector<32xf32> to vector<32x1xf32>
    %cst_57 = arith.constant 1.280000e+02 : f32
    %181 = vector.broadcast %cst_57 : f32 to vector<32x1xf32>
    %182 = arith.divf %180, %181 : vector<32x1xf32>
    %183 = vector.broadcast %182 : vector<32x1xf32> to vector<32x128xf32>
    %184 = arith.subf %178, %183 : vector<32x128xf32>
    %185 = arith.mulf %184, %184 : vector<32x128xf32>
    %cst_58 = arith.constant dense<0.000000e+00> : vector<32xf32>
    %186 = vector.multi_reduction <add>, %185, %cst_58 [1] : vector<32x128xf32> to vector<32xf32>
    %187 = vector.shape_cast %186 : vector<32xf32> to vector<32x1xf32>
    %cst_59 = arith.constant 1.280000e+02 : f32
    %188 = vector.broadcast %cst_59 : f32 to vector<32x1xf32>
    %189 = arith.divf %187, %188 : vector<32x1xf32>
    %190 = vector.broadcast %182 : vector<32x1xf32> to vector<32x128xf32>
    %191 = arith.subf %178, %190 : vector<32x128xf32>
    %cst_60 = arith.constant 1.000000e-07 : f32
    %192 = vector.broadcast %cst_60 : f32 to vector<32x1xf32>
    %193 = arith.addf %189, %192 : vector<32x1xf32>
    %194 = math.rsqrt %193 : vector<32x1xf32>
    %195 = vector.broadcast %194 : vector<32x1xf32> to vector<32x128xf32>
    %196 = arith.mulf %191, %195 : vector<32x128xf32>
    %197 = vector.shape_cast %54 : vector<128xf32> to vector<1x128xf32>
    %198 = vector.broadcast %197 : vector<1x128xf32> to vector<32x128xf32>
    %199 = arith.mulf %196, %198 : vector<32x128xf32>
    %200 = vector.shape_cast %56 : vector<128xf32> to vector<1x128xf32>
    %201 = vector.broadcast %200 : vector<1x128xf32> to vector<32x128xf32>
    %202 = arith.addf %199, %201 : vector<32x128xf32>
    %203 = arith.truncf %202 : vector<32x128xf32> to vector<32x128xbf16>
    %cst_61 = arith.constant dense<0.000000e+00> : vector<32x256xf32>
    %204 = tpu.matmul %203, %40, %cst_61 {dimension_numbers = #tpu.dot_dimension_numbers<[1], [0], [0], [1], [0, 0, 1, 1], [], []>} : vector<32x128xbf16>, vector<128x256xbf16>, vector<32x256xf32> -> vector<32x256xf32>
    %205 = vector.shape_cast %64 : vector<256xf32> to vector<1x256xf32>
    %206 = vector.broadcast %205 : vector<1x256xf32> to vector<32x256xf32>
    %207 = arith.addf %204, %206 : vector<32x256xf32>
    %208 = arith.mulf %207, %207 : vector<32x256xf32>
    %209 = arith.mulf %207, %208 : vector<32x256xf32>
    %cst_62 = arith.constant 4.471500e-02 : f32
    %210 = vector.broadcast %cst_62 : f32 to vector<32x256xf32>
    %211 = arith.mulf %210, %209 : vector<32x256xf32>
    %212 = arith.addf %207, %211 : vector<32x256xf32>
    %cst_63 = arith.constant 0.797884583 : f32
    %213 = vector.broadcast %cst_63 : f32 to vector<32x256xf32>
    %214 = arith.mulf %213, %212 : vector<32x256xf32>
    %215 = math.tanh %214 : vector<32x256xf32>
    %cst_64 = arith.constant 1.000000e+00 : f32
    %216 = vector.broadcast %cst_64 : f32 to vector<32x256xf32>
    %217 = arith.addf %216, %215 : vector<32x256xf32>
    %cst_65 = arith.constant 5.000000e-01 : f32
    %218 = vector.broadcast %cst_65 : f32 to vector<32x256xf32>
    %219 = arith.mulf %218, %217 : vector<32x256xf32>
    %220 = arith.mulf %207, %219 : vector<32x256xf32>
    %221 = arith.truncf %220 : vector<32x256xf32> to vector<32x256xbf16>
    %cst_66 = arith.constant dense<0.000000e+00> : vector<32x128xf32>
    %222 = tpu.matmul %221, %42, %cst_66 {dimension_numbers = #tpu.dot_dimension_numbers<[1], [0], [0], [1], [0, 0, 1, 1], [], []>} : vector<32x256xbf16>, vector<256x128xbf16>, vector<32x128xf32> -> vector<32x128xf32>
    %223 = vector.shape_cast %58 : vector<128xf32> to vector<1x128xf32>
    %224 = vector.broadcast %223 : vector<1x128xf32> to vector<32x128xf32>
    %225 = arith.addf %222, %224 : vector<32x128xf32>
    %226 = arith.addf %202, %225 : vector<32x128xf32>
    %cst_67 = arith.constant dense<0.000000e+00> : vector<32xf32>
    %227 = vector.multi_reduction <add>, %226, %cst_67 [1] : vector<32x128xf32> to vector<32xf32>
    %228 = vector.shape_cast %227 : vector<32xf32> to vector<32x1xf32>
    %cst_68 = arith.constant 1.280000e+02 : f32
    %229 = vector.broadcast %cst_68 : f32 to vector<32x1xf32>
    %230 = arith.divf %228, %229 : vector<32x1xf32>
    %231 = vector.broadcast %230 : vector<32x1xf32> to vector<32x128xf32>
    %232 = arith.subf %226, %231 : vector<32x128xf32>
    %233 = arith.mulf %232, %232 : vector<32x128xf32>
    %cst_69 = arith.constant dense<0.000000e+00> : vector<32xf32>
    %234 = vector.multi_reduction <add>, %233, %cst_69 [1] : vector<32x128xf32> to vector<32xf32>
    %235 = vector.shape_cast %234 : vector<32xf32> to vector<32x1xf32>
    %cst_70 = arith.constant 1.280000e+02 : f32
    %236 = vector.broadcast %cst_70 : f32 to vector<32x1xf32>
    %237 = arith.divf %235, %236 : vector<32x1xf32>
    %238 = vector.broadcast %230 : vector<32x1xf32> to vector<32x128xf32>
    %239 = arith.subf %226, %238 : vector<32x128xf32>
    %cst_71 = arith.constant 1.000000e-07 : f32
    %240 = vector.broadcast %cst_71 : f32 to vector<32x1xf32>
    %241 = arith.addf %237, %240 : vector<32x1xf32>
    %242 = math.rsqrt %241 : vector<32x1xf32>
    %243 = vector.broadcast %242 : vector<32x1xf32> to vector<32x128xf32>
    %244 = arith.mulf %239, %243 : vector<32x128xf32>
    %245 = vector.shape_cast %60 : vector<128xf32> to vector<1x128xf32>
    %246 = vector.broadcast %245 : vector<1x128xf32> to vector<32x128xf32>
    %247 = arith.mulf %244, %246 : vector<32x128xf32>
    %248 = vector.shape_cast %62 : vector<128xf32> to vector<1x128xf32>
    %249 = vector.broadcast %248 : vector<1x128xf32> to vector<32x128xf32>
    %250 = arith.addf %247, %249 : vector<32x128xf32>
    %c1 = arith.constant 1 : index
    %c0_72 = arith.constant 0 : index
    %c0_73 = arith.constant 0 : index
    %251 = vector.load %arg3[%c1, %c0_72, %c0_73] : memref<2x128x128xbf16, #tpu.memory_space<vmem>>, vector<1x128x128xbf16>
    %252 = vector.shape_cast %251 : vector<1x128x128xbf16> to vector<128x128xbf16>
    %c1_74 = arith.constant 1 : index
    %c0_75 = arith.constant 0 : index
    %c0_76 = arith.constant 0 : index
    %253 = vector.load %arg4[%c1_74, %c0_75, %c0_76] : memref<2x128x128xbf16, #tpu.memory_space<vmem>>, vector<1x128x128xbf16>
    %254 = vector.shape_cast %253 : vector<1x128x128xbf16> to vector<128x128xbf16>
    %c1_77 = arith.constant 1 : index
    %c0_78 = arith.constant 0 : index
    %c0_79 = arith.constant 0 : index
    %255 = vector.load %arg5[%c1_77, %c0_78, %c0_79] : memref<2x128x128xbf16, #tpu.memory_space<vmem>>, vector<1x128x128xbf16>
    %256 = vector.shape_cast %255 : vector<1x128x128xbf16> to vector<128x128xbf16>
    %c1_80 = arith.constant 1 : index
    %c0_81 = arith.constant 0 : index
    %c0_82 = arith.constant 0 : index
    %257 = vector.load %arg6[%c1_80, %c0_81, %c0_82] : memref<2x128x128xbf16, #tpu.memory_space<vmem>>, vector<1x128x128xbf16>
    %258 = vector.shape_cast %257 : vector<1x128x128xbf16> to vector<128x128xbf16>
    %c1_83 = arith.constant 1 : index
    %c0_84 = arith.constant 0 : index
    %c0_85 = arith.constant 0 : index
    %259 = vector.load %arg8[%c1_83, %c0_84, %c0_85] : memref<2x128x256xbf16, #tpu.memory_space<vmem>>, vector<1x128x256xbf16>
    %260 = vector.shape_cast %259 : vector<1x128x256xbf16> to vector<128x256xbf16>
    %c1_86 = arith.constant 1 : index
    %c0_87 = arith.constant 0 : index
    %c0_88 = arith.constant 0 : index
    %261 = vector.load %arg10[%c1_86, %c0_87, %c0_88] : memref<2x256x128xbf16, #tpu.memory_space<vmem>>, vector<1x256x128xbf16>
    %262 = vector.shape_cast %261 : vector<1x256x128xbf16> to vector<256x128xbf16>
    %c1_89 = arith.constant 1 : index
    %c0_90 = arith.constant 0 : index
    %c0_91 = arith.constant 0 : index
    %263 = vector.load %arg7[%c1_89, %c0_90, %c0_91] : memref<2x9x128xf32, #tpu.memory_space<vmem>>, vector<1x9x128xf32>
    %264 = vector.shape_cast %263 : vector<1x9x128xf32> to vector<9x128xf32>
    %265 = vector.extract_strided_slice %264 {offsets = [0, 0], sizes = [1, 128], strides = [1, 1]} : vector<9x128xf32> to vector<1x128xf32>
    %266 = vector.shape_cast %265 : vector<1x128xf32> to vector<128xf32>
    %267 = vector.extract_strided_slice %264 {offsets = [1, 0], sizes = [1, 128], strides = [1, 1]} : vector<9x128xf32> to vector<1x128xf32>
    %268 = vector.shape_cast %267 : vector<1x128xf32> to vector<128xf32>
    %269 = vector.extract_strided_slice %264 {offsets = [2, 0], sizes = [1, 128], strides = [1, 1]} : vector<9x128xf32> to vector<1x128xf32>
    %270 = vector.shape_cast %269 : vector<1x128xf32> to vector<128xf32>
    %271 = vector.extract_strided_slice %264 {offsets = [3, 0], sizes = [1, 128], strides = [1, 1]} : vector<9x128xf32> to vector<1x128xf32>
    %272 = vector.shape_cast %271 : vector<1x128xf32> to vector<128xf32>
    %273 = vector.extract_strided_slice %264 {offsets = [4, 0], sizes = [1, 128], strides = [1, 1]} : vector<9x128xf32> to vector<1x128xf32>
    %274 = vector.shape_cast %273 : vector<1x128xf32> to vector<128xf32>
    %275 = vector.extract_strided_slice %264 {offsets = [5, 0], sizes = [1, 128], strides = [1, 1]} : vector<9x128xf32> to vector<1x128xf32>
    %276 = vector.shape_cast %275 : vector<1x128xf32> to vector<128xf32>
    %277 = vector.extract_strided_slice %264 {offsets = [6, 0], sizes = [1, 128], strides = [1, 1]} : vector<9x128xf32> to vector<1x128xf32>
    %278 = vector.shape_cast %277 : vector<1x128xf32> to vector<128xf32>
    %279 = vector.extract_strided_slice %264 {offsets = [7, 0], sizes = [1, 128], strides = [1, 1]} : vector<9x128xf32> to vector<1x128xf32>
    %280 = vector.shape_cast %279 : vector<1x128xf32> to vector<128xf32>
    %281 = vector.extract_strided_slice %264 {offsets = [8, 0], sizes = [1, 128], strides = [1, 1]} : vector<9x128xf32> to vector<1x128xf32>
    %282 = vector.shape_cast %281 : vector<1x128xf32> to vector<128xf32>
    %c1_92 = arith.constant 1 : index
    %c0_93 = arith.constant 0 : index
    %283 = vector.load %arg9[%c1_92, %c0_93] : memref<2x256xf32, #tpu.memory_space<vmem>>, vector<1x256xf32>
    %284 = vector.shape_cast %283 : vector<1x256xf32> to vector<256xf32>
    %285 = arith.truncf %250 : vector<32x128xf32> to vector<32x128xbf16>
    %cst_94 = arith.constant dense<0.000000e+00> : vector<32x128xf32>
    %286 = tpu.matmul %285, %252, %cst_94 {dimension_numbers = #tpu.dot_dimension_numbers<[1], [0], [0], [1], [0, 0, 1, 1], [], []>} : vector<32x128xbf16>, vector<128x128xbf16>, vector<32x128xf32> -> vector<32x128xf32>
    %287 = vector.shape_cast %266 : vector<128xf32> to vector<1x128xf32>
    %288 = vector.broadcast %287 : vector<1x128xf32> to vector<32x128xf32>
    %289 = arith.addf %286, %288 : vector<32x128xf32>
    %cst_95 = arith.constant dense<0.000000e+00> : vector<32x128xf32>
    %290 = tpu.matmul %285, %254, %cst_95 {dimension_numbers = #tpu.dot_dimension_numbers<[1], [0], [0], [1], [0, 0, 1, 1], [], []>} : vector<32x128xbf16>, vector<128x128xbf16>, vector<32x128xf32> -> vector<32x128xf32>
    %291 = vector.shape_cast %268 : vector<128xf32> to vector<1x128xf32>
    %292 = vector.broadcast %291 : vector<1x128xf32> to vector<32x128xf32>
    %293 = arith.addf %290, %292 : vector<32x128xf32>
    %cst_96 = arith.constant dense<0.000000e+00> : vector<32x128xf32>
    %294 = tpu.matmul %285, %256, %cst_96 {dimension_numbers = #tpu.dot_dimension_numbers<[1], [0], [0], [1], [0, 0, 1, 1], [], []>} : vector<32x128xbf16>, vector<128x128xbf16>, vector<32x128xf32> -> vector<32x128xf32>
    %295 = vector.shape_cast %270 : vector<128xf32> to vector<1x128xf32>
    %296 = vector.broadcast %295 : vector<1x128xf32> to vector<32x128xf32>
    %297 = arith.addf %294, %296 : vector<32x128xf32>
    %cst_97 = arith.constant 0.000000e+00 : f32
    %298 = vector.broadcast %cst_97 : f32 to vector<32x128xf32>
    %299 = vector.extract_strided_slice %289 {offsets = [0, 0], sizes = [32, 32], strides = [1, 1]} : vector<32x128xf32> to vector<32x32xf32>
    %300 = arith.truncf %299 : vector<32x32xf32> to vector<32x32xbf16>
    %301 = vector.extract_strided_slice %293 {offsets = [0, 0], sizes = [32, 32], strides = [1, 1]} : vector<32x128xf32> to vector<32x32xf32>
    %302 = arith.truncf %301 : vector<32x32xf32> to vector<32x32xbf16>
    %303 = vector.extract_strided_slice %297 {offsets = [0, 0], sizes = [32, 32], strides = [1, 1]} : vector<32x128xf32> to vector<32x32xf32>
    %304 = arith.truncf %303 : vector<32x32xf32> to vector<32x32xbf16>
    %cst_98 = arith.constant dense<0.000000e+00> : vector<32x32xf32>
    %305 = tpu.matmul %300, %302, %cst_98 {dimension_numbers = #tpu.dot_dimension_numbers<[1], [1], [0], [0], [0, 0, 1, 0], [], []>} : vector<32x32xbf16>, vector<32x32xbf16>, vector<32x32xf32> -> vector<32x32xf32>
    %306 = arith.addf %305, %30 : vector<32x32xf32>
    %cst_99 = arith.constant dense<0xFF800000> : vector<32xf32>
    %307 = vector.multi_reduction <maximumf>, %306, %cst_99 [1] : vector<32x32xf32> to vector<32xf32>
    %308 = vector.shape_cast %307 : vector<32xf32> to vector<32x1xf32>
    %309 = vector.broadcast %308 : vector<32x1xf32> to vector<32x32xf32>
    %310 = arith.subf %306, %309 : vector<32x32xf32>
    %311 = math.exp %310 : vector<32x32xf32>
    %cst_100 = arith.constant dense<0.000000e+00> : vector<32xf32>
    %312 = vector.multi_reduction <add>, %311, %cst_100 [1] : vector<32x32xf32> to vector<32xf32>
    %313 = vector.shape_cast %312 : vector<32xf32> to vector<32x1xf32>
    %314 = tpu.reciprocal %313 {approx = true} : vector<32x1xf32> -> vector<32x1xf32>
    %315 = vector.broadcast %314 : vector<32x1xf32> to vector<32x32xf32>
    %316 = arith.mulf %311, %315 : vector<32x32xf32>
    %317 = arith.truncf %316 : vector<32x32xf32> to vector<32x32xbf16>
    %cst_101 = arith.constant dense<0.000000e+00> : vector<32x32xf32>
    %318 = tpu.matmul %317, %304, %cst_101 {dimension_numbers = #tpu.dot_dimension_numbers<[1], [0], [0], [1], [0, 0, 1, 1], [], []>} : vector<32x32xbf16>, vector<32x32xbf16>, vector<32x32xf32> -> vector<32x32xf32>
    %319 = arith.truncf %318 : vector<32x32xf32> to vector<32x32xbf16>
    %320 = vector.extract_strided_slice %258 {offsets = [0, 0], sizes = [32, 128], strides = [1, 1]} : vector<128x128xbf16> to vector<32x128xbf16>
    %cst_102 = arith.constant dense<0.000000e+00> : vector<32x128xf32>
    %321 = tpu.matmul %319, %320, %cst_102 {dimension_numbers = #tpu.dot_dimension_numbers<[1], [0], [0], [1], [0, 0, 1, 1], [], []>} : vector<32x32xbf16>, vector<32x128xbf16>, vector<32x128xf32> -> vector<32x128xf32>
    %322 = arith.addf %298, %321 : vector<32x128xf32>
    %323 = vector.extract_strided_slice %289 {offsets = [0, 32], sizes = [32, 32], strides = [1, 1]} : vector<32x128xf32> to vector<32x32xf32>
    %324 = arith.truncf %323 : vector<32x32xf32> to vector<32x32xbf16>
    %325 = vector.extract_strided_slice %293 {offsets = [0, 32], sizes = [32, 32], strides = [1, 1]} : vector<32x128xf32> to vector<32x32xf32>
    %326 = arith.truncf %325 : vector<32x32xf32> to vector<32x32xbf16>
    %327 = vector.extract_strided_slice %297 {offsets = [0, 32], sizes = [32, 32], strides = [1, 1]} : vector<32x128xf32> to vector<32x32xf32>
    %328 = arith.truncf %327 : vector<32x32xf32> to vector<32x32xbf16>
    %cst_103 = arith.constant dense<0.000000e+00> : vector<32x32xf32>
    %329 = tpu.matmul %324, %326, %cst_103 {dimension_numbers = #tpu.dot_dimension_numbers<[1], [1], [0], [0], [0, 0, 1, 0], [], []>} : vector<32x32xbf16>, vector<32x32xbf16>, vector<32x32xf32> -> vector<32x32xf32>
    %330 = arith.addf %329, %30 : vector<32x32xf32>
    %cst_104 = arith.constant dense<0xFF800000> : vector<32xf32>
    %331 = vector.multi_reduction <maximumf>, %330, %cst_104 [1] : vector<32x32xf32> to vector<32xf32>
    %332 = vector.shape_cast %331 : vector<32xf32> to vector<32x1xf32>
    %333 = vector.broadcast %332 : vector<32x1xf32> to vector<32x32xf32>
    %334 = arith.subf %330, %333 : vector<32x32xf32>
    %335 = math.exp %334 : vector<32x32xf32>
    %cst_105 = arith.constant dense<0.000000e+00> : vector<32xf32>
    %336 = vector.multi_reduction <add>, %335, %cst_105 [1] : vector<32x32xf32> to vector<32xf32>
    %337 = vector.shape_cast %336 : vector<32xf32> to vector<32x1xf32>
    %338 = tpu.reciprocal %337 {approx = true} : vector<32x1xf32> -> vector<32x1xf32>
    %339 = vector.broadcast %338 : vector<32x1xf32> to vector<32x32xf32>
    %340 = arith.mulf %335, %339 : vector<32x32xf32>
    %341 = arith.truncf %340 : vector<32x32xf32> to vector<32x32xbf16>
    %cst_106 = arith.constant dense<0.000000e+00> : vector<32x32xf32>
    %342 = tpu.matmul %341, %328, %cst_106 {dimension_numbers = #tpu.dot_dimension_numbers<[1], [0], [0], [1], [0, 0, 1, 1], [], []>} : vector<32x32xbf16>, vector<32x32xbf16>, vector<32x32xf32> -> vector<32x32xf32>
    %343 = arith.truncf %342 : vector<32x32xf32> to vector<32x32xbf16>
    %344 = vector.extract_strided_slice %258 {offsets = [32, 0], sizes = [32, 128], strides = [1, 1]} : vector<128x128xbf16> to vector<32x128xbf16>
    %cst_107 = arith.constant dense<0.000000e+00> : vector<32x128xf32>
    %345 = tpu.matmul %343, %344, %cst_107 {dimension_numbers = #tpu.dot_dimension_numbers<[1], [0], [0], [1], [0, 0, 1, 1], [], []>} : vector<32x32xbf16>, vector<32x128xbf16>, vector<32x128xf32> -> vector<32x128xf32>
    %346 = arith.addf %322, %345 : vector<32x128xf32>
    %347 = vector.extract_strided_slice %289 {offsets = [0, 64], sizes = [32, 32], strides = [1, 1]} : vector<32x128xf32> to vector<32x32xf32>
    %348 = arith.truncf %347 : vector<32x32xf32> to vector<32x32xbf16>
    %349 = vector.extract_strided_slice %293 {offsets = [0, 64], sizes = [32, 32], strides = [1, 1]} : vector<32x128xf32> to vector<32x32xf32>
    %350 = arith.truncf %349 : vector<32x32xf32> to vector<32x32xbf16>
    %351 = vector.extract_strided_slice %297 {offsets = [0, 64], sizes = [32, 32], strides = [1, 1]} : vector<32x128xf32> to vector<32x32xf32>
    %352 = arith.truncf %351 : vector<32x32xf32> to vector<32x32xbf16>
    %cst_108 = arith.constant dense<0.000000e+00> : vector<32x32xf32>
    %353 = tpu.matmul %348, %350, %cst_108 {dimension_numbers = #tpu.dot_dimension_numbers<[1], [1], [0], [0], [0, 0, 1, 0], [], []>} : vector<32x32xbf16>, vector<32x32xbf16>, vector<32x32xf32> -> vector<32x32xf32>
    %354 = arith.addf %353, %30 : vector<32x32xf32>
    %cst_109 = arith.constant dense<0xFF800000> : vector<32xf32>
    %355 = vector.multi_reduction <maximumf>, %354, %cst_109 [1] : vector<32x32xf32> to vector<32xf32>
    %356 = vector.shape_cast %355 : vector<32xf32> to vector<32x1xf32>
    %357 = vector.broadcast %356 : vector<32x1xf32> to vector<32x32xf32>
    %358 = arith.subf %354, %357 : vector<32x32xf32>
    %359 = math.exp %358 : vector<32x32xf32>
    %cst_110 = arith.constant dense<0.000000e+00> : vector<32xf32>
    %360 = vector.multi_reduction <add>, %359, %cst_110 [1] : vector<32x32xf32> to vector<32xf32>
    %361 = vector.shape_cast %360 : vector<32xf32> to vector<32x1xf32>
    %362 = tpu.reciprocal %361 {approx = true} : vector<32x1xf32> -> vector<32x1xf32>
    %363 = vector.broadcast %362 : vector<32x1xf32> to vector<32x32xf32>
    %364 = arith.mulf %359, %363 : vector<32x32xf32>
    %365 = arith.truncf %364 : vector<32x32xf32> to vector<32x32xbf16>
    %cst_111 = arith.constant dense<0.000000e+00> : vector<32x32xf32>
    %366 = tpu.matmul %365, %352, %cst_111 {dimension_numbers = #tpu.dot_dimension_numbers<[1], [0], [0], [1], [0, 0, 1, 1], [], []>} : vector<32x32xbf16>, vector<32x32xbf16>, vector<32x32xf32> -> vector<32x32xf32>
    %367 = arith.truncf %366 : vector<32x32xf32> to vector<32x32xbf16>
    %368 = vector.extract_strided_slice %258 {offsets = [64, 0], sizes = [32, 128], strides = [1, 1]} : vector<128x128xbf16> to vector<32x128xbf16>
    %cst_112 = arith.constant dense<0.000000e+00> : vector<32x128xf32>
    %369 = tpu.matmul %367, %368, %cst_112 {dimension_numbers = #tpu.dot_dimension_numbers<[1], [0], [0], [1], [0, 0, 1, 1], [], []>} : vector<32x32xbf16>, vector<32x128xbf16>, vector<32x128xf32> -> vector<32x128xf32>
    %370 = arith.addf %346, %369 : vector<32x128xf32>
    %371 = vector.extract_strided_slice %289 {offsets = [0, 96], sizes = [32, 32], strides = [1, 1]} : vector<32x128xf32> to vector<32x32xf32>
    %372 = arith.truncf %371 : vector<32x32xf32> to vector<32x32xbf16>
    %373 = vector.extract_strided_slice %293 {offsets = [0, 96], sizes = [32, 32], strides = [1, 1]} : vector<32x128xf32> to vector<32x32xf32>
    %374 = arith.truncf %373 : vector<32x32xf32> to vector<32x32xbf16>
    %375 = vector.extract_strided_slice %297 {offsets = [0, 96], sizes = [32, 32], strides = [1, 1]} : vector<32x128xf32> to vector<32x32xf32>
    %376 = arith.truncf %375 : vector<32x32xf32> to vector<32x32xbf16>
    %cst_113 = arith.constant dense<0.000000e+00> : vector<32x32xf32>
    %377 = tpu.matmul %372, %374, %cst_113 {dimension_numbers = #tpu.dot_dimension_numbers<[1], [1], [0], [0], [0, 0, 1, 0], [], []>} : vector<32x32xbf16>, vector<32x32xbf16>, vector<32x32xf32> -> vector<32x32xf32>
    %378 = arith.addf %377, %30 : vector<32x32xf32>
    %cst_114 = arith.constant dense<0xFF800000> : vector<32xf32>
    %379 = vector.multi_reduction <maximumf>, %378, %cst_114 [1] : vector<32x32xf32> to vector<32xf32>
    %380 = vector.shape_cast %379 : vector<32xf32> to vector<32x1xf32>
    %381 = vector.broadcast %380 : vector<32x1xf32> to vector<32x32xf32>
    %382 = arith.subf %378, %381 : vector<32x32xf32>
    %383 = math.exp %382 : vector<32x32xf32>
    %cst_115 = arith.constant dense<0.000000e+00> : vector<32xf32>
    %384 = vector.multi_reduction <add>, %383, %cst_115 [1] : vector<32x32xf32> to vector<32xf32>
    %385 = vector.shape_cast %384 : vector<32xf32> to vector<32x1xf32>
    %386 = tpu.reciprocal %385 {approx = true} : vector<32x1xf32> -> vector<32x1xf32>
    %387 = vector.broadcast %386 : vector<32x1xf32> to vector<32x32xf32>
    %388 = arith.mulf %383, %387 : vector<32x32xf32>
    %389 = arith.truncf %388 : vector<32x32xf32> to vector<32x32xbf16>
    %cst_116 = arith.constant dense<0.000000e+00> : vector<32x32xf32>
    %390 = tpu.matmul %389, %376, %cst_116 {dimension_numbers = #tpu.dot_dimension_numbers<[1], [0], [0], [1], [0, 0, 1, 1], [], []>} : vector<32x32xbf16>, vector<32x32xbf16>, vector<32x32xf32> -> vector<32x32xf32>
    %391 = arith.truncf %390 : vector<32x32xf32> to vector<32x32xbf16>
    %392 = vector.extract_strided_slice %258 {offsets = [96, 0], sizes = [32, 128], strides = [1, 1]} : vector<128x128xbf16> to vector<32x128xbf16>
    %cst_117 = arith.constant dense<0.000000e+00> : vector<32x128xf32>
    %393 = tpu.matmul %391, %392, %cst_117 {dimension_numbers = #tpu.dot_dimension_numbers<[1], [0], [0], [1], [0, 0, 1, 1], [], []>} : vector<32x32xbf16>, vector<32x128xbf16>, vector<32x128xf32> -> vector<32x128xf32>
    %394 = arith.addf %370, %393 : vector<32x128xf32>
    %395 = vector.shape_cast %272 : vector<128xf32> to vector<1x128xf32>
    %396 = vector.broadcast %395 : vector<1x128xf32> to vector<32x128xf32>
    %397 = arith.addf %394, %396 : vector<32x128xf32>
    %398 = arith.addf %250, %397 : vector<32x128xf32>
    %cst_118 = arith.constant dense<0.000000e+00> : vector<32xf32>
    %399 = vector.multi_reduction <add>, %398, %cst_118 [1] : vector<32x128xf32> to vector<32xf32>
    %400 = vector.shape_cast %399 : vector<32xf32> to vector<32x1xf32>
    %cst_119 = arith.constant 1.280000e+02 : f32
    %401 = vector.broadcast %cst_119 : f32 to vector<32x1xf32>
    %402 = arith.divf %400, %401 : vector<32x1xf32>
    %403 = vector.broadcast %402 : vector<32x1xf32> to vector<32x128xf32>
    %404 = arith.subf %398, %403 : vector<32x128xf32>
    %405 = arith.mulf %404, %404 : vector<32x128xf32>
    %cst_120 = arith.constant dense<0.000000e+00> : vector<32xf32>
    %406 = vector.multi_reduction <add>, %405, %cst_120 [1] : vector<32x128xf32> to vector<32xf32>
    %407 = vector.shape_cast %406 : vector<32xf32> to vector<32x1xf32>
    %cst_121 = arith.constant 1.280000e+02 : f32
    %408 = vector.broadcast %cst_121 : f32 to vector<32x1xf32>
    %409 = arith.divf %407, %408 : vector<32x1xf32>
    %410 = vector.broadcast %402 : vector<32x1xf32> to vector<32x128xf32>
    %411 = arith.subf %398, %410 : vector<32x128xf32>
    %cst_122 = arith.constant 1.000000e-07 : f32
    %412 = vector.broadcast %cst_122 : f32 to vector<32x1xf32>
    %413 = arith.addf %409, %412 : vector<32x1xf32>
    %414 = math.rsqrt %413 : vector<32x1xf32>
    %415 = vector.broadcast %414 : vector<32x1xf32> to vector<32x128xf32>
    %416 = arith.mulf %411, %415 : vector<32x128xf32>
    %417 = vector.shape_cast %274 : vector<128xf32> to vector<1x128xf32>
    %418 = vector.broadcast %417 : vector<1x128xf32> to vector<32x128xf32>
    %419 = arith.mulf %416, %418 : vector<32x128xf32>
    %420 = vector.shape_cast %276 : vector<128xf32> to vector<1x128xf32>
    %421 = vector.broadcast %420 : vector<1x128xf32> to vector<32x128xf32>
    %422 = arith.addf %419, %421 : vector<32x128xf32>
    %423 = arith.truncf %422 : vector<32x128xf32> to vector<32x128xbf16>
    %cst_123 = arith.constant dense<0.000000e+00> : vector<32x256xf32>
    %424 = tpu.matmul %423, %260, %cst_123 {dimension_numbers = #tpu.dot_dimension_numbers<[1], [0], [0], [1], [0, 0, 1, 1], [], []>} : vector<32x128xbf16>, vector<128x256xbf16>, vector<32x256xf32> -> vector<32x256xf32>
    %425 = vector.shape_cast %284 : vector<256xf32> to vector<1x256xf32>
    %426 = vector.broadcast %425 : vector<1x256xf32> to vector<32x256xf32>
    %427 = arith.addf %424, %426 : vector<32x256xf32>
    %428 = arith.mulf %427, %427 : vector<32x256xf32>
    %429 = arith.mulf %427, %428 : vector<32x256xf32>
    %cst_124 = arith.constant 4.471500e-02 : f32
    %430 = vector.broadcast %cst_124 : f32 to vector<32x256xf32>
    %431 = arith.mulf %430, %429 : vector<32x256xf32>
    %432 = arith.addf %427, %431 : vector<32x256xf32>
    %cst_125 = arith.constant 0.797884583 : f32
    %433 = vector.broadcast %cst_125 : f32 to vector<32x256xf32>
    %434 = arith.mulf %433, %432 : vector<32x256xf32>
    %435 = math.tanh %434 : vector<32x256xf32>
    %cst_126 = arith.constant 1.000000e+00 : f32
    %436 = vector.broadcast %cst_126 : f32 to vector<32x256xf32>
    %437 = arith.addf %436, %435 : vector<32x256xf32>
    %cst_127 = arith.constant 5.000000e-01 : f32
    %438 = vector.broadcast %cst_127 : f32 to vector<32x256xf32>
    %439 = arith.mulf %438, %437 : vector<32x256xf32>
    %440 = arith.mulf %427, %439 : vector<32x256xf32>
    %441 = arith.truncf %440 : vector<32x256xf32> to vector<32x256xbf16>
    %cst_128 = arith.constant dense<0.000000e+00> : vector<32x128xf32>
    %442 = tpu.matmul %441, %262, %cst_128 {dimension_numbers = #tpu.dot_dimension_numbers<[1], [0], [0], [1], [0, 0, 1, 1], [], []>} : vector<32x256xbf16>, vector<256x128xbf16>, vector<32x128xf32> -> vector<32x128xf32>
    %443 = vector.shape_cast %278 : vector<128xf32> to vector<1x128xf32>
    %444 = vector.broadcast %443 : vector<1x128xf32> to vector<32x128xf32>
    %445 = arith.addf %442, %444 : vector<32x128xf32>
    %446 = arith.addf %422, %445 : vector<32x128xf32>
    %cst_129 = arith.constant dense<0.000000e+00> : vector<32xf32>
    %447 = vector.multi_reduction <add>, %446, %cst_129 [1] : vector<32x128xf32> to vector<32xf32>
    %448 = vector.shape_cast %447 : vector<32xf32> to vector<32x1xf32>
    %cst_130 = arith.constant 1.280000e+02 : f32
    %449 = vector.broadcast %cst_130 : f32 to vector<32x1xf32>
    %450 = arith.divf %448, %449 : vector<32x1xf32>
    %451 = vector.broadcast %450 : vector<32x1xf32> to vector<32x128xf32>
    %452 = arith.subf %446, %451 : vector<32x128xf32>
    %453 = arith.mulf %452, %452 : vector<32x128xf32>
    %cst_131 = arith.constant dense<0.000000e+00> : vector<32xf32>
    %454 = vector.multi_reduction <add>, %453, %cst_131 [1] : vector<32x128xf32> to vector<32xf32>
    %455 = vector.shape_cast %454 : vector<32xf32> to vector<32x1xf32>
    %cst_132 = arith.constant 1.280000e+02 : f32
    %456 = vector.broadcast %cst_132 : f32 to vector<32x1xf32>
    %457 = arith.divf %455, %456 : vector<32x1xf32>
    %458 = vector.broadcast %450 : vector<32x1xf32> to vector<32x128xf32>
    %459 = arith.subf %446, %458 : vector<32x128xf32>
    %cst_133 = arith.constant 1.000000e-07 : f32
    %460 = vector.broadcast %cst_133 : f32 to vector<32x1xf32>
    %461 = arith.addf %457, %460 : vector<32x1xf32>
    %462 = math.rsqrt %461 : vector<32x1xf32>
    %463 = vector.broadcast %462 : vector<32x1xf32> to vector<32x128xf32>
    %464 = arith.mulf %459, %463 : vector<32x128xf32>
    %465 = vector.shape_cast %280 : vector<128xf32> to vector<1x128xf32>
    %466 = vector.broadcast %465 : vector<1x128xf32> to vector<32x128xf32>
    %467 = arith.mulf %464, %466 : vector<32x128xf32>
    %468 = vector.shape_cast %282 : vector<128xf32> to vector<1x128xf32>
    %469 = vector.broadcast %468 : vector<1x128xf32> to vector<32x128xf32>
    %470 = arith.addf %467, %469 : vector<32x128xf32>
    %471 = vector.extract_strided_slice %470 {offsets = [0, 0], sizes = [1, 128], strides = [1, 1]} : vector<32x128xf32> to vector<1x128xf32>
    %472 = vector.extract_strided_slice %470 {offsets = [16, 0], sizes = [1, 128], strides = [1, 1]} : vector<32x128xf32> to vector<1x128xf32>
    %473 = tpu.concatenate %471, %472 in 0 : vector<1x128xf32>, vector<1x128xf32> -> vector<2x128xf32>
    %c0_134 = arith.constant 0 : index
    %c0_135 = arith.constant 0 : index
    %474 = vector.load %arg11[%c0_134, %c0_135] : memref<128x128xf32, #tpu.memory_space<vmem>>, vector<128x128xf32>
    %cst_136 = arith.constant dense<0.000000e+00> : vector<2x128xf32>
    %475 = tpu.matmul %473, %474, %cst_136 {dimension_numbers = #tpu.dot_dimension_numbers<[1], [0], [0], [1], [0, 0, 1, 1], [], []>} : vector<2x128xf32>, vector<128x128xf32>, vector<2x128xf32> -> vector<2x128xf32>
    %c0_137 = arith.constant 0 : index
    %c0_138 = arith.constant 0 : index
    %476 = vector.load %arg12[%c0_137, %c0_138] : memref<1x128xf32, #tpu.memory_space<vmem>>, vector<1x128xf32>
    %477 = vector.broadcast %476 : vector<1x128xf32> to vector<2x128xf32>
    %478 = arith.addf %475, %477 : vector<2x128xf32>
    %c0_139 = arith.constant 0 : index
    %c0_140 = arith.constant 0 : index
    %479 = vector.load %arg13[%c0_139, %c0_140] : memref<2x128xf32, #tpu.memory_space<vmem>>, vector<2x128xf32>
    tpu.vector_store %arg13[%c0_139, %c0_140], %478 {strides = array<i32>} : memref<2x128xf32, #tpu.memory_space<vmem>>, vector<2x128xf32>,
    return
  }
}

</mosaic_0001>

<bundles_post_ra>
// kernel: model_forward.1
= control target key start
LH: loop header
LB: loop body
LE: loop exit
PB: predicated region body
PF: predicated region fallthrough
CT: control target
= control target key end

     0   :  { %v95_v42 = vlaneseq  ;;  %vm541_vm0 = vcmask 261120   ;;  %s5311_s20 = smov 64   ;;  %s5312_s21 = smov 32   ;;  %vm5315_vm1 = vmmov 0   ;;  %vm3923_vm2 = vcmask 1040384   ;;  %s6571_s0 = inlined_call_operand.vmem [shape: f32[32,128], index: 0, kind: input, shape index: {}]   ;;  %s6572_s3 = inlined_call_operand.vmem [shape: bf16[2,128,128], index: 3, kind: input, shape index: {}]   ;;  %s6573_s4 = inlined_call_operand.vmem [shape: bf16[2,128,128], index: 4, kind: input, shape index: {}]   ;;  %s6574_s5 = inlined_call_operand.vmem [shape: bf16[2,128,128], index: 5, kind: input, shape index: {}]   ;;  %s6575_s2 = inlined_call_operand.vmem [shape: f32[2,128], index: 2, kind: input, shape index: {}]   ;;  %s6576_s7 = inlined_call_operand.vmem [shape: f32[2,9,128], index: 7, kind: input, shape index: {}]   ;;  %s6577_s1 = inlined_call_operand.vmem [shape: f32[32,32], index: 1, kind: input, shape index: {}]   ;;  %s6578_s6 = inlined_call_operand.vmem [shape: bf16[2,128,128], index: 6, kind: input, shape index: {}]   ;;  %s6579_s8 = inlined_call_operand.vmem [shape: bf16[2,128,256], index: 8, kind: input, shape index: {}]   ;;  %s6580_s10 = inlined_call_operand.vmem [shape: bf16[2,256,128], index: 10, kind: input, shape index: {}]   ;;  %s6581_s9 = inlined_call_operand.vmem [shape: f32[2,256], index: 9, kind: input, shape index: {}]   ;;  %s6582_s11 = inlined_call_operand.vmem [shape: f32[128,128], index: 11, kind: input, shape index: {}]   ;;  %s6583_s12 = inlined_call_operand.vmem [shape: f32[1,128], index: 12, kind: input, shape index: {}]   ;;  %s6584_s13 = inlined_call_operand.vmem [shape: f32[2,128], index: 13, kind: output, shape index: {}]  }
   0x1   :  { %v45_v0 = vld [vmem:[%s6571_s0] sm:$0xff]  ;;  %v47_v1 = vld [vmem:[%s6571_s0 + $0x10] sm:$0xff]  ;;  %v46_v2 = vld [vmem:[%s6571_s0 + $0x8] sm:$0xff] }
   0x2   :  { %50 = vadd.xlane.f32.xlu0 %v45_v0  ;;  %54 = vadd.xlane.f32.xlu1 %v47_v1  ;;  %v48_v3 = vld [vmem:[%s6571_s0 + $0x18] sm:$0xff]  ;;  %v4964_v4 = vld [vmem:[%s6572_s3] sm:$0xff]   ;;  %v4966_v22 = vld [vmem:[%s6572_s3 + $0x8] sm:$0xff]   ;;  %v5466_v48 = vshrl.u32 %v95_v42, 7  ;;  %s5310_s0 = smov 96  }
   0x3   :  { %v4965_v5 = vld [vmem:[%s6573_s4] sm:$0xff]   ;;  %4546 = vmatprep.subr.bf16.mxu0 %v4964_v4  ;;  %v4967_v23 = vld [vmem:[%s6573_s4 + $0x8] sm:$0xff]   ;;  %v4968_v24 = vld [vmem:[%s6572_s3 + $0x10] sm:$0xff]  }
   0x4   :  { %4547 = vmatpush3.bf16.msra.mxu0 %v4964_v4  ;;  %4566 = vmatprep.subr.bf16.mxu1 %v4965_v5  ;;  %v4969_v25 = vld [vmem:[%s6573_s4 + $0x10] sm:$0xff]   ;;  %v4970_v26 = vld [vmem:[%s6572_s3 + $0x18] sm:$0xff]   ;;  %v4972_v28 = vld [vmem:[%s6572_s3 + $0x20] sm:$0xff]   ;;  %v5469_v51 = vsub.s32 0, %v5466_v48  ;;  %v5477_v56 = vsub.s32 1, %v5466_v48  ;;  %v436_v42 = vsub.s32 2, %v5466_v48 }
   0x5   :  { %4567 = vmatpush3.bf16.msra.mxu1 %v4965_v5  ;;  %4548 = vmatprep.subr.bf16.mxu0 %v4966_v22  ;;  %v4971_v27 = vld [vmem:[%s6573_s4 + $0x18] sm:$0xff]   ;;  %v4973_v29 = vld [vmem:[%s6573_s4 + $0x20] sm:$0xff]   ;;  %v4974_v30 = vld [vmem:[%s6572_s3 + $0x28] sm:$0xff]  }
   0x6   :  { %52 = vadd.xlane.f32.xlu0 %v46_v2  ;;  %56 = vadd.xlane.f32.xlu1 %v48_v3  ;;  %v4975_v31 = vld [vmem:[%s6573_s4 + $0x28] sm:$0xff]   ;;  %v4976_v32 = vld [vmem:[%s6572_s3 + $0x30] sm:$0xff]   ;;  %v4978_v34 = vld [vmem:[%s6572_s3 + $0x38] sm:$0xff]  }
   0x7   :  { %4568 = vmatprep.subr.bf16.mxu1 %v4967_v23  ;;  %v4977_v33 = vld [vmem:[%s6573_s4 + $0x30] sm:$0xff]   ;;  %v4979_v35 = vld [vmem:[%s6573_s4 + $0x38] sm:$0xff]   ;;  %v4980_v36 = vld [vmem:[%s6574_s5] sm:$0xff]  }
   0x8   :  { %4549 = vmatpush3.bf16.msra.mxu0 %v4966_v22  ;;  %v49_v52 = vld [vmem:[%s6575_s2] sm:$0x3] }
   0x9   :  { %4569 = vmatpush3.bf16.msra.mxu1 %v4967_v23  ;;  %4550 = vmatprep.subr.bf16.mxu0 %v4968_v24  ;;  %v98_v55 = vrot.slane %v49_v52, %v5469_v51  ;;  %v106_v61 = vrot.slane %v49_v52, %v5477_v56 }
   0xa   :  { %4570 = vmatprep.subr.bf16.mxu1 %v4969_v25 }
   0xc   :  { %4551 = vmatpush3.bf16.msra.mxu0 %v4968_v24 }
   0xd   :  { %4571 = vmatpush3.bf16.msra.mxu1 %v4969_v25  ;;  %4552 = vmatprep.subr.bf16.mxu0 %v4970_v26 }
   0xe   :  { %4572 = vmatprep.subr.bf16.mxu1 %v4971_v27 }
  0x10   :  { %4553 = vmatpush3.bf16.msra.mxu0 %v4970_v26 }
  0x11   :  { %4573 = vmatpush3.bf16.msra.mxu1 %v4971_v27  ;;  %4554 = vmatprep.subr.bf16.mxu0 %v4972_v28 }
  0x12   :  { %4574 = vmatprep.subr.bf16.mxu1 %v4973_v29 }
  0x14   :  { %4555 = vmatpush3.bf16.msra.mxu0 %v4972_v28 }
  0x15   :  { %4575 = vmatpush3.bf16.msra.mxu1 %v4973_v29  ;;  %4556 = vmatprep.subr.bf16.mxu0 %v4974_v30 }
  0x16   :  { %4576 = vmatprep.subr.bf16.mxu1 %v4975_v31 }
  0x18   :  { %4557 = vmatpush3.bf16.msra.mxu0 %v4974_v30 }
  0x19   :  { %4577 = vmatpush3.bf16.msra.mxu1 %v4975_v31  ;;  %4558 = vmatprep.subr.bf16.mxu0 %v4976_v32 }
  0x1a   :  { %4578 = vmatprep.subr.bf16.mxu1 %v4977_v33 }
  0x1c   :  { %4559 = vmatpush3.bf16.msra.mxu0 %v4976_v32 }
  0x1d   :  { %4579 = vmatpush3.bf16.msra.mxu1 %v4977_v33  ;;  %4560 = vmatprep.subr.bf16.mxu0 %v4978_v34 }
  0x1e   :  { %4580 = vmatprep.subr.bf16.mxu1 %v4979_v35 }
  0x20   :  { %4561 = vmatpush3.bf16.msra.mxu0 %v4978_v34 }
  0x21   :  { %4581 = vmatpush3.bf16.msra.mxu1 %v4979_v35  ;;  %4586 = vmatprep.subr.bf16.mxu0 %v4980_v36 }
  0x8f   :  { %v51_v6 = vpop.xlane.xlu0 %50  ;;  %v55_v7 = vpop.xlane.xlu1 %54 }
  0x90   :  { %v59_v8 = vmul.f32 0.0078125, %v51_v6  ;;  %v61_v9 = vmul.f32 0.0078125, %v55_v7 }
  0x92   :  { %v5405_v10 = vsub.f32 %v45_v0, %v59_v8  ;;  %v5407_v11 = vsub.f32 %v47_v1, %v61_v9 }
  0x93   :  { %v53_v12 = vpop.xlane.xlu0 %52  ;;  %v57_v13 = vpop.xlane.xlu1 %56 }
  0x94   :  { %v60_v14 = vmul.f32 0.0078125, %v53_v12  ;;  %v67_v15 = vmul.f32 %v5405_v10, %v5405_v10  ;;  %v62_v16 = vmul.f32 0.0078125, %v57_v13  ;;  %v69_v17 = vmul.f32 %v5407_v11, %v5407_v11  ;;  %v4983_v12 = vld [vmem:[%s6574_s5 + $0x18] sm:$0xff]   ;;  %v4984_v13 = vld [vmem:[%s6574_s5 + $0x20] sm:$0xff]  }
  0x96   :  { %71 = vadd.xlane.f32.xlu0 %v67_v15  ;;  %v5413_v18 = vsub.f32 %v46_v2, %v60_v14  ;;  %v5415_v19 = vsub.f32 %v48_v3, %v62_v16  ;;  %v4985_v14 = vld [vmem:[%s6574_s5 + $0x28] sm:$0xff]   ;;  %v4986_v15 = vld [vmem:[%s6574_s5 + $0x30] sm:$0xff]   ;;  %v4987_v16 = vld [vmem:[%s6574_s5 + $0x38] sm:$0xff]  }
  0x98   :  { %v68_v20 = vmul.f32 %v5413_v18, %v5413_v18  ;;  %v70_v21 = vmul.f32 %v5415_v19, %v5415_v19 }
  0x9a   :  { %75 = vadd.xlane.f32.xlu0 %v69_v17  ;;  %73 = vadd.xlane.f32.xlu1 %v68_v20  ;;  %v5519_v17 = vld [vmem:[%s6576_s7] sm:$0xff] }
  0x9e   :  { %77 = vadd.xlane.f32.xlu1 %v70_v21 }
 0x123   :  { %v72_v37 = vpop.xlane.xlu0 %71 }
 0x124   :  { %v79_v38 = vmul.f32 0.0078125, %v72_v37 }
 0x126   :  { %v83_v39 = vadd.f32 1e-07, %v79_v38 }
 0x127   :  { %v74_v40 = vpop.xlane.xlu1 %73  ;;  %v76_v41 = vpop.xlane.xlu0 %75 }
 0x128   :  { %5108 = vrsqrt.f32 %v83_v39  ;;  %v80_v43 = vmul.f32 0.0078125, %v74_v40  ;;  %v81_v44 = vmul.f32 0.0078125, %v76_v41 }
 0x12a   :  { %v84_v45 = vadd.f32 1e-07, %v80_v43  ;;  %v85_v46 = vadd.f32 1e-07, %v81_v44  ;;  %v437_v43 = vrot.slane %v5519_v17, %v436_v42 }
 0x12b   :  { %v78_v47 = vpop.xlane.xlu1 %77 }
 0x12c   :  { %5110 = vrsqrt.f32 %v84_v45  ;;  %v82_v49 = vmul.f32 0.0078125, %v78_v47 }
 0x12d   :  { %5112 = vrsqrt.f32 %v85_v46 }
 0x12e   :  { %v86_v50 = vadd.f32 1e-07, %v82_v49 }
 0x130   :  { %5114 = vrsqrt.f32 %v86_v50 }
 0x132   :  { %v5109_v53 = vpop.eup %5108 }
 0x133   :  { %v91_v54 = vmul.f32 %v5109_v53, %v5405_v10  ;;  %v4981_v10 = vld [vmem:[%s6574_s5 + $0x8] sm:$0xff]  }
 0x135   :  { %v99_v60 = vmul.f32 %v98_v55, %v91_v54 }
 0x136   :  { %v5111_v57 = vpop.eup %5110 }
 0x137   :  { %v5113_v58 = vpop.eup %5112  ;;  %v92_v59 = vmul.f32 %v5111_v57, %v5413_v18  ;;  %v5482_v1 = vadd.f32 %v106_v61, %v99_v60  ;;  %v235_v18 = vrot.slane %v5519_v17, %v5469_v51  ;;  %v5560_v57 = vld [vmem:[%s6577_s1] sm:$0xff] }
 0x138   :  { %v93_v62 = vmul.f32 %v5113_v58, %v5407_v11  ;;  %v4982_v11 = vld [vmem:[%s6574_s5 + $0x10] sm:$0xff]  }
 0x139   :  { %v100_v63 = vmul.f32 %v98_v55, %v92_v59  ;;  %v5565_v59 = vld [vmem:[%s6577_s1 + $0x10] sm:$0xff] }
 0x13a   :  { %v5115_v0 = vpop.eup %5114  ;;  %v101_v4 = vmul.f32 %v98_v55, %v93_v62 }
 0x13b   :  { %v5484_v2 = vadd.f32 %v106_v61, %v100_v63  ;;  %v94_v3 = vmul.f32 %v5115_v0, %v5415_v19  ;;  %v336_v19 = vrot.slane %v5519_v17, %v5477_v56  ;;  %v5576_v0 = vld [vmem:[%s6577_s1 + $0x18] sm:$0xff] }
 0x13c   :  { %v5489_v7 = vadd.f32 %v106_v61, %v101_v4 }
 0x13d   :  { %v230_v5 = vpack.c.bf16 %v5484_v2, %v5482_v1  ;;  %v102_v6 = vmul.f32 %v98_v55, %v94_v3 }
 0x13f   :  { %4562 = vmatprep.mubr.bf16.mxu0 %v230_v5  ;;  %4582 = vmatprep.mubr.bf16.mxu1 %v230_v5  ;;  %v5491_v8 = vadd.f32 %v106_v61, %v102_v6  ;;  %v5570_v61 = vld [vmem:[%s6577_s1 + $0x8] sm:$0xff] }
 0x141   :  { %v231_v9 = vpack.c.bf16 %v5491_v8, %v5489_v7 }
 0x143   :  { %4563 = vmatmul.mubr.bf16.vlgmr.msra.gmra.mrb[0].mxu0 %v231_v9  ;;  %4583 = vmatmul.mubr.bf16.vlgmr.msra.gmra.mrb[0].mxu1 %v231_v9 }
 0x144   :  { %4587 = vmatpush3.bf16.msra.mxu0 %v4980_v36  ;;  %4602 = vmatprep.mubr.bf16.mxu0 %v230_v5 }
 0x145   :  { %4588 = vmatprep.subr.bf16.mxu0 %v4981_v10 }
 0x148   :  { %4589 = vmatpush3.bf16.msra.mxu0 %v4981_v10 }
 0x149   :  { %4590 = vmatprep.subr.bf16.mxu0 %v4982_v11 }
 0x14c   :  { %4591 = vmatpush3.bf16.msra.mxu0 %v4982_v11 }
 0x14d   :  { %4592 = vmatprep.subr.bf16.mxu0 %v4983_v12 }
 0x150   :  { %4593 = vmatpush3.bf16.msra.mxu0 %v4983_v12 }
 0x151   :  { %4594 = vmatprep.subr.bf16.mxu0 %v4984_v13 }
 0x154   :  { %4595 = vmatpush3.bf16.msra.mxu0 %v4984_v13 }
 0x155   :  { %4596 = vmatprep.subr.bf16.mxu0 %v4985_v14 }
 0x158   :  { %4597 = vmatpush3.bf16.msra.mxu0 %v4985_v14 }
 0x159   :  { %4598 = vmatprep.subr.bf16.mxu0 %v4986_v15 }
 0x15c   :  { %4599 = vmatpush3.bf16.msra.mxu0 %v4986_v15 }
 0x15d   :  { %4600 = vmatprep.subr.bf16.mxu0 %v4987_v16 }
 0x160   :  { %4601 = vmatpush3.bf16.msra.mxu0 %v4987_v16 }
 0x163   :  { %4603 = vmatmul.mubr.bf16.vlgmr.msra.gmra.mrb[4].mxu0 %v231_v9 }
 0x216   :  { %v4564_v20 = vpop.f32.mrb[0].mxu0  ;;  %v4584_v21 = vpop.f32.mrb[0].mxu1 }
 0x217   :  { %v318_v22 = vpop.f32.mrb[1].mxu0  ;;  %v419_v23 = vpop.f32.mrb[1].mxu1  ;;  %v327_v26 = vadd.f32 %v4564_v20, %v235_v18  ;;  %v428_v27 = vadd.f32 %v4584_v21, %v336_v19 }
 0x218   :  { %v4565_v24 = vpop.f32.mrb[2].mxu0  ;;  %v4585_v25 = vpop.f32.mrb[2].mxu1  ;;  %v319_v32 = vadd.f32 %v318_v22, %v235_v18  ;;  %v420_v33 = vadd.f32 %v419_v23, %v336_v19 }
 0x219   :  { %v330_v28 = vadd.f32 %v4565_v24, %v235_v18  ;;  %v431_v29 = vadd.f32 %v4585_v25, %v336_v19  ;;  %v321_v30 = vpop.f32.mrb[3].mxu0  ;;  %v422_v31 = vpop.f32.mrb[3].mxu1 }
 0x21a   :  { %v322_v34 = vadd.f32 %v321_v30, %v235_v18  ;;  %v423_v35 = vadd.f32 %v422_v31, %v336_v19 }
 0x21b   :  { %v5525_v36 = vpack.c.bf16 %v330_v28, %v327_v26  ;;  %v5527_v37 = vpack.c.bf16 %v431_v29, %v428_v27 }
 0x21c   :  { %v5529_v38 = vpack.c.bf16 %v322_v34, %v319_v32  ;;  %v5531_v39 = vpack.c.bf16 %v423_v35, %v420_v33 }
 0x21d   :  { %v552_v41 = vsel %vm541_vm0, %v5527_v37, 0 }
 0x21e   :  { %4941 = vmatprep.subr.msk.bf16.mxu1 %vm541_vm0, %v5531_v39  ;;  %4610 = vmatprep.mubr.msk.bf16.mxu1 %vm541_vm0, %v5529_v38  ;;  %v549_v40 = vsel %vm541_vm0, %v5531_v39, 0 }
 0x21f   :  { %4607 = vmatpush3.bf16.xpose.msra.mxu1 %v549_v40 }
 0x220   :  { %4942 = vmatprep.subr.msk.bf16.mxu1 %vm541_vm0, %v5527_v37 }
 0x227   :  { %4609 = vmatpush3.bf16.xpose.msra.mxu1 %v552_v41 }
 0x22e   :  { %4611 = vmatmul.mubr.msk.bf16.vlgmr.msra.gmra.mrb[4].mxu1 %vm541_vm0, %v5525_v36 }
 0x236   :  { %v4604_v44 = vpop.f32.mrb[4].mxu0 }
 0x237   :  { %v520_v45 = vpop.f32.mrb[5].mxu0  ;;  %v529_v47 = vadd.f32 %v4604_v44, %v437_v43 }
 0x238   :  { %v4605_v46 = vpop.f32.mrb[6].mxu0  ;;  %v521_v52 = vadd.f32 %v520_v45, %v437_v43 }
 0x239   :  { %v532_v49 = vadd.f32 %v4605_v46, %v437_v43  ;;  %v523_v50 = vpop.f32.mrb[7].mxu0 }
 0x23a   :  { %v524_v53 = vadd.f32 %v523_v50, %v437_v43 }
 0x23b   :  { %v5549_v54 = vpack.c.bf16 %v532_v49, %v529_v47 }
 0x23c   :  { %v5551_v55 = vpack.c.bf16 %v524_v53, %v521_v52 }
 0x23e   :  { %4614 = vmatprep.subr.bf16.mxu1 %v5551_v55 }
 0x23f   :  { %4615 = vmatpush3.bf16.msra.mxu1 %v5551_v55 }
 0x240   :  { %4616 = vmatprep.subr.bf16.mxu1 %v5549_v54 }
 0x243   :  { %4617 = vmatpush3.bf16.msra.mxu1 %v5549_v54 }
 0x301   :  { %v4612_v58 = vpop.f32.mrb[4].mxu1 }
 0x302   :  { %v588_v60 = vpop.f32.mrb[5].mxu1  ;;  %v597_v4 = vadd.f32 %v4612_v58, %v5565_v59 }
 0x303   :  { %v589_v62 = vadd.f32 %v588_v60, %v5560_v57  ;;  %v4613_v63 = vpop.f32.mrb[6].mxu1 }
 0x304   :  { %v591_v3 = vpop.f32.mrb[7].mxu1  ;;  %v600_v9 = vadd.f32 %v4613_v63, %v5576_v0  ;;  %v609_v11 = vsel %vm541_vm0, %v597_v4, -inf }
 0x305   :  { %v592_v5 = vadd.f32 %v591_v3, %v5570_v61  ;;  %v603_v6 = vsel %vm541_vm0, %v589_v62, -inf }
 0x306   :  { %604 = vmax.xlane.f32.xlu0 %v603_v6  ;;  %v612_v12 = vsel %vm541_vm0, %v600_v9, -inf }
 0x307   :  { %v606_v10 = vsel %vm541_vm0, %v592_v5, -inf }
 0x308   :  { %607 = vmax.xlane.f32.xlu1 %v606_v10 }
 0x30a   :  { %610 = vmax.xlane.f32.xlu0 %v609_v11 }
 0x30c   :  { %613 = vmax.xlane.f32.xlu1 %v612_v12 }
 0x393   :  { %v605_v13 = vpop.xlane.xlu0 %604 }
 0x394   :  { %v615_v14 = vsub.f32 %v589_v62, %v605_v13 }
 0x395   :  { %v608_v15 = vpop.xlane.xlu1 %607 }
 0x396   :  { %v616_v16 = vsub.f32 %v592_v5, %v608_v15  ;;  %v619_v21 = vmul.f32 1.442695, %v615_v14 }
 0x397   :  { %v611_v18 = vpop.xlane.xlu0 %610 }
 0x398   :  { %v621_v19 = vmul.f32 1.442695, %v616_v16  ;;  %v617_v20 = vsub.f32 %v597_v4, %v611_v18 }
 0x399   :  { %v614_v22 = vpop.xlane.xlu1 %613 }
 0x39a   :  { %5116 = vpow2.f32 %v621_v19  ;;  %v623_v23 = vmul.f32 1.442695, %v617_v20  ;;  %v618_v24 = vsub.f32 %v600_v9, %v614_v22 }
 0x39c   :  { %5118 = vpow2.f32 %v623_v23  ;;  %v625_v25 = vmul.f32 1.442695, %v618_v24 }
 0x39d   :  { %5120 = vpow2.f32 %v619_v21 }
 0x39e   :  { %5122 = vpow2.f32 %v625_v25 }
 0x3a4   :  { %v5117_v26 = vpop.eup %5116 }
 0x3a5   :  { %v630_v27 = vsel %vm541_vm0, %v5117_v26, 0.0 }
 0x3a6   :  { %v5119_v28 = vpop.eup %5118  ;;  %631 = vadd.xlane.f32.xlu1 %v630_v27 }
 0x3a7   :  { %v5121_v29 = vpop.eup %5120  ;;  %v633_v30 = vsel %vm541_vm0, %v5119_v28, 0.0 }
 0x3a8   :  { %v5123_v31 = vpop.eup %5122  ;;  %634 = vadd.xlane.f32.xlu0 %v633_v30  ;;  %v627_v33 = vsel %vm541_vm0, %v5121_v29, 0.0 }
 0x3a9   :  { %v636_v32 = vsel %vm541_vm0, %v5123_v31, 0.0 }
 0x3aa   :  { %637 = vadd.xlane.f32.xlu1 %v636_v32 }
 0x3ac   :  { %628 = vadd.xlane.f32.xlu0 %v627_v33 }
 0x3bb   :  { %716 = vrot.lane.b32.xlu1 %v5527_v37, %s5310_s0 }
 0x3bf   :  { %708 = vrot.lane.b32.xlu1 %v5529_v38, %s5310_s0 }
 0x3c2   :  { %714 = vrot.lane.b32.xlu0 %v5531_v39, %s5310_s0 }
 0x3c3   :  { %710 = vrot.lane.b32.xlu1 %v5525_v36, %s5310_s0 }
 0x3c6   :  { %1028 = vrot.lane.b32.xlu0 %v5531_v39, %s5311_s20 }
 0x3c7   :  { %1030 = vrot.lane.b32.xlu1 %v5527_v37, %s5311_s20 }
 0x3ca   :  { %1024 = vrot.lane.b32.xlu0 %v5529_v38, %s5311_s20 }
 0x3cb   :  { %1026 = vrot.lane.b32.xlu1 %v5525_v36, %s5311_s20 }
 0x433   :  { %v632_v34 = vpop.xlane.xlu1 %631 }
 0x434   :  { %5124 = vrcp.f32 %v632_v34 }
 0x435   :  { %v635_v35 = vpop.xlane.xlu0 %634 }
 0x437   :  { %v638_v40 = vpop.xlane.xlu1 %637 }
 0x438   :  { %5126 = vrcp.f32 %v638_v40 }
 0x439   :  { %5128 = vrcp.f32 %v635_v35  ;;  %v629_v41 = vpop.xlane.xlu0 %628 }
 0x43a   :  { %5130 = vrcp.f32 %v629_v41 }
 0x43b   :  { %v717_v50 = vpop.permute.xlu1 %716 }
 0x43c   :  { %v728_v4 = vsel %vm541_vm0, %v717_v50, 0 }
 0x43d   :  { %v715_v43 = vpop.permute.xlu0 %714 }
 0x43e   :  { %4943 = vmatprep.subr.msk.bf16.mxu1 %vm541_vm0, %v715_v43  ;;  %v5125_v44 = vpop.eup %5124  ;;  %v725_v3 = vsel %vm541_vm0, %v715_v43, 0 }
 0x43f   :  { %v644_v53 = vmul.f32 %v5125_v44, %v5117_v26  ;;  %v709_v63 = vpop.permute.xlu1 %708 }
 0x441   :  { %v1029_v5 = vpop.permute.xlu0 %1028 }
 0x442   :  { %v5127_v45 = vpop.eup %5126  ;;  %v1039_v10 = vsel %vm541_vm0, %v1029_v5, 0 }
 0x443   :  { %v5129_v46 = vpop.eup %5128  ;;  %v646_v49 = vmul.f32 %v5127_v45, %v5123_v31  ;;  %v711_v6 = vpop.permute.xlu1 %710 }
 0x444   :  { %v5131_v47 = vpop.eup %5130  ;;  %v645_v58 = vmul.f32 %v5129_v46, %v5119_v28 }
 0x445   :  { %v643_v52 = vmul.f32 %v5131_v47, %v5121_v29  ;;  %v1025_v9 = vpop.permute.xlu0 %1024 }
 0x446   :  { %v648_v62 = vpack.c.bf16 %v646_v49, %v645_v58 }
 0x447   :  { %v647_v60 = vpack.c.bf16 %v644_v53, %v643_v52  ;;  %v1031_v11 = vpop.permute.xlu1 %1030 }
 0x448   :  { %v1042_v12 = vsel %vm541_vm0, %v1031_v11, 0 }
 0x449   :  { %4618 = vmatprep.mubr.msk.bf16.mxu1 %vm541_vm0, %v647_v60 }
 0x44a   :  { %4619 = vmatmul.mubr.msk.bf16.vlgmr.msra.gmra.mrb[8].mxu1 %vm541_vm0, %v648_v62 }
 0x44b   :  { %4623 = vmatpush3.bf16.xpose.msra.mxu1 %v725_v3  ;;  %4626 = vmatprep.mubr.msk.bf16.mxu1 %vm541_vm0, %v709_v63  ;;  %v1027_v13 = vpop.permute.xlu1 %1026 }
 0x44c   :  { %4944 = vmatprep.subr.msk.bf16.mxu1 %vm541_vm0, %v717_v50 }
 0x453   :  { %4625 = vmatpush3.bf16.xpose.msra.mxu1 %v728_v4 }
 0x454   :  { %4945 = vmatprep.subr.msk.bf16.mxu1 %vm541_vm0, %v1029_v5 }
 0x45a   :  { %4627 = vmatmul.mubr.msk.bf16.vlgmr.msra.gmra.mrb[12].mxu1 %vm541_vm0, %v711_v6 }
 0x45b   :  { %4655 = vmatpush3.bf16.xpose.msra.mxu1 %v1039_v10  ;;  %4658 = vmatprep.mubr.msk.bf16.mxu1 %vm541_vm0, %v1025_v9 }
 0x45c   :  { %4946 = vmatprep.subr.msk.bf16.mxu1 %vm541_vm0, %v1031_v11 }
 0x463   :  { %4657 = vmatpush3.bf16.xpose.msra.mxu1 %v1042_v12 }
 0x46a   :  { %4659 = vmatmul.mubr.msk.bf16.vlgmr.msra.gmra.mrb[16].mxu1 %vm541_vm0, %v1027_v13 }
 0x51d   :  { %v5619_v14 = vpop.f32.mrb[8].mxu1 }
 0x51e   :  { %v5621_v15 = vpop.f32.mrb[9].mxu1 }
 0x51f   :  { %v5623_v16 = vpop.f32.mrb[10].mxu1 }
 0x520   :  { %v705_v18 = vpack.c.bf16 %v5623_v16, %v5619_v14  ;;  %v5627_v19 = vpop.f32.mrb[11].mxu1  ;;  %v4992_v14 = vld [vmem:[%s6578_s6 + $0x20] sm:$0xff]   ;;  %v4993_v16 = vld [vmem:[%s6578_s6 + $0x28] sm:$0xff]  }
 0x521   :  { %v704_v20 = vpack.c.bf16 %v5627_v19, %v5621_v15 }
 0x52d   :  { %v4628_v21 = vpop.f32.mrb[12].mxu1 }
 0x52e   :  { %v764_v22 = vpop.f32.mrb[13].mxu1  ;;  %v773_v26 = vadd.f32 %v4628_v21, %v5565_v59 }
 0x52f   :  { %v765_v23 = vadd.f32 %v764_v22, %v5560_v57  ;;  %v4629_v24 = vpop.f32.mrb[14].mxu1 }
 0x530   :  { %v767_v25 = vpop.f32.mrb[15].mxu1  ;;  %v776_v30 = vadd.f32 %v4629_v24, %v5576_v0  ;;  %v785_v31 = vsel %vm541_vm0, %v773_v26, -inf }
 0x531   :  { %v768_v27 = vadd.f32 %v767_v25, %v5570_v61  ;;  %v779_v28 = vsel %vm541_vm0, %v765_v23, -inf }
 0x532   :  { %780 = vmax.xlane.f32.xlu0 %v779_v28  ;;  %v788_v32 = vsel %vm541_vm0, %v776_v30, -inf }
 0x533   :  { %v782_v29 = vsel %vm541_vm0, %v768_v27, -inf }
 0x534   :  { %783 = vmax.xlane.f32.xlu1 %v782_v29 }
 0x536   :  { %786 = vmax.xlane.f32.xlu0 %v785_v31 }
 0x53a   :  { %789 = vmax.xlane.f32.xlu0 %v788_v32 }
 0x53d   :  { %v4660_v33 = vpop.f32.mrb[16].mxu1 }
 0x53e   :  { %v1078_v34 = vpop.f32.mrb[17].mxu1  ;;  %v1087_v12 = vadd.f32 %v4660_v33, %v5565_v59 }
 0x53f   :  { %v4661_v35 = vpop.f32.mrb[18].mxu1  ;;  %v1079_v11 = vadd.f32 %v1078_v34, %v5560_v57 }
 0x540   :  { %v1081_v40 = vpop.f32.mrb[19].mxu1  ;;  %v1090_v21 = vadd.f32 %v4661_v35, %v5576_v0 }
 0x541   :  { %v1093_v13 = vsel %vm541_vm0, %v1079_v11, -inf }
 0x542   :  { %v1102_v22 = vsel %vm541_vm0, %v1090_v21, -inf }
 0x5bf   :  { %v781_v41 = vpop.xlane.xlu0 %780 }
 0x5c0   :  { %v791_v43 = vsub.f32 %v765_v23, %v781_v41 }
 0x5c1   :  { %v784_v44 = vpop.xlane.xlu1 %783 }
 0x5c2   :  { %v795_v47 = vmul.f32 1.442695, %v791_v43  ;;  %v792_v49 = vsub.f32 %v768_v27, %v784_v44 }
 0x5c3   :  { %v787_v45 = vpop.xlane.xlu0 %786 }
 0x5c4   :  { %v793_v46 = vsub.f32 %v773_v26, %v787_v45  ;;  %v797_v58 = vmul.f32 1.442695, %v792_v49 }
 0x5c6   :  { %v799_v50 = vmul.f32 1.442695, %v793_v46 }
 0x5c7   :  { %v790_v52 = vpop.xlane.xlu0 %789 }
 0x5c8   :  { %5132 = vpow2.f32 %v799_v50  ;;  %v794_v53 = vsub.f32 %v776_v30, %v790_v52 }
 0x5c9   :  { %5134 = vpow2.f32 %v795_v47 }
 0x5ca   :  { %v801_v60 = vmul.f32 1.442695, %v794_v53 }
 0x5cc   :  { %5136 = vpow2.f32 %v801_v60 }
 0x5cd   :  { %5138 = vpow2.f32 %v797_v58 }
 0x5d2   :  { %v5133_v62 = vpop.eup %5132 }
 0x5d3   :  { %v809_v63 = vsel %vm541_vm0, %v5133_v62, 0.0  ;;  %v5135_v3 = vpop.eup %5134 }
 0x5d4   :  { %810 = vadd.xlane.f32.xlu0 %v809_v63  ;;  %v803_v5 = vsel %vm541_vm0, %v5135_v3, 0.0 }
 0x5d6   :  { %v5137_v4 = vpop.eup %5136 }
 0x5d7   :  { %v812_v6 = vsel %vm541_vm0, %v5137_v4, 0.0  ;;  %v5139_v9 = vpop.eup %5138 }
 0x5d8   :  { %804 = vadd.xlane.f32.xlu0 %v803_v5  ;;  %813 = vadd.xlane.f32.xlu1 %v812_v6  ;;  %v806_v10 = vsel %vm541_vm0, %v5139_v9, 0.0 }
 0x5dc   :  { %807 = vadd.xlane.f32.xlu1 %v806_v10 }
 0x5ed   :  { %829 = vrot.lane.b32.xlu1 %v5549_v54, %s5310_s0 }
 0x5ee   :  { %827 = vrot.lane.b32.xlu0 %v5551_v55, %s5310_s0 }
 0x5f1   :  { %1277 = vrot.lane.b32.xlu1 %v5531_v39, %s5312_s21  ;;  %v1099_v39 = vsel %vm541_vm0, %v1087_v12, -inf }
 0x5f2   :  { %1273 = vrot.lane.b32.xlu0 %v5529_v38, %s5312_s21  ;;  %v1082_v38 = vadd.f32 %v1081_v40, %v5570_v61 }
 0x5f5   :  { %1279 = vrot.lane.b32.xlu1 %v5527_v37, %s5312_s21  ;;  %v1096_v37 = vsel %vm541_vm0, %v1082_v38, -inf }
 0x5f9   :  { %1275 = vrot.lane.b32.xlu1 %v5525_v36, %s5312_s21 }
 0x611   :  { %1094 = vmax.xlane.f32.xlu0 %v1093_v13 }
 0x615   :  { %1100 = vmax.xlane.f32.xlu0 %v1099_v39 }
 0x619   :  { %1103 = vmax.xlane.f32.xlu0 %v1102_v22 }
 0x61d   :  { %1097 = vmax.xlane.f32.xlu1 %v1096_v37  ;;  %v4988_v37 = vld [vmem:[%s6578_s6 + $0x10] sm:$0xff]  }
 0x661   :  { %v811_v36 = vpop.xlane.xlu0 %810 }
 0x665   :  { %v814_v23 = vpop.xlane.xlu1 %813  ;;  %v805_v24 = vpop.xlane.xlu0 %804 }
 0x666   :  { %5140 = vrcp.f32 %v814_v23  ;;  %v4990_v23 = vld [vmem:[%s6578_s6] sm:$0xff]  }
 0x667   :  { %5142 = vrcp.f32 %v805_v24 }
 0x668   :  { %5144 = vrcp.f32 %v811_v36  ;;  %v4989_v36 = vld [vmem:[%s6578_s6 + $0x18] sm:$0xff]  }
 0x669   :  { %v808_v25 = vpop.xlane.xlu1 %807  ;;  %v828_v26 = vpop.permute.xlu0 %827 }
 0x66a   :  { %5146 = vrcp.f32 %v808_v25  ;;  %4630 = vmatprep.subr.bf16.mxu0 %v828_v26 }
 0x66b   :  { %4631 = vmatpush3.bf16.msra.mxu0 %v828_v26 }
 0x66d   :  { %v830_v27 = vpop.permute.xlu1 %829  ;;  %v1274_v28 = vpop.permute.xlu0 %1273 }
 0x66e   :  { %4632 = vmatprep.subr.bf16.mxu0 %v830_v27  ;;  %4682 = vmatprep.mubr.msk.bf16.mxu1 %vm541_vm0, %v1274_v28 }
 0x66f   :  { %4633 = vmatpush3.bf16.msra.mxu0 %v830_v27 }
 0x670   :  { %v5141_v29 = vpop.eup %5140  ;;  %4638 = vmatprep.subr.bf16.mxu0 %v4988_v37 }
 0x671   :  { %v1278_v30 = vpop.permute.xlu1 %1277  ;;  %v5143_v31 = vpop.eup %5142  ;;  %v822_v35 = vmul.f32 %v5141_v29, %v5137_v4 }
 0x672   :  { %4947 = vmatprep.subr.msk.bf16.mxu1 %vm541_vm0, %v1278_v30  ;;  %v1288_v32 = vsel %vm541_vm0, %v1278_v30, 0  ;;  %v5145_v33 = vpop.eup %5144  ;;  %v819_v41 = vmul.f32 %v5143_v31, %v5135_v3 }
 0x673   :  { %4679 = vmatpush3.bf16.xpose.msra.mxu1 %v1288_v32  ;;  %v821_v44 = vmul.f32 %v5145_v33, %v5133_v62 }
 0x674   :  { %v5147_v34 = vpop.eup %5146 }
 0x675   :  { %v1280_v40 = vpop.permute.xlu1 %1279  ;;  %v820_v43 = vmul.f32 %v5147_v34, %v5139_v9  ;;  %v824_v46 = vpack.c.bf16 %v822_v35, %v821_v44  ;;  %v4991_v34 = vld [vmem:[%s6578_s6 + $0x8] sm:$0xff]  }
 0x676   :  { %4948 = vmatprep.subr.msk.bf16.mxu1 %vm541_vm0, %v1280_v40  ;;  %v1291_v47 = vsel %vm541_vm0, %v1280_v40, 0 }
 0x677   :  { %v823_v45 = vpack.c.bf16 %v820_v43, %v819_v41 }
 0x679   :  { %4634 = vmatprep.mubr.msk.bf16.mxu0 %vm541_vm0, %v823_v45  ;;  %v1276_v49 = vpop.permute.xlu1 %1275 }
 0x67a   :  { %4635 = vmatmul.mubr.msk.bf16.vlgmr.msra.gmra.mrb[8].mxu0 %vm541_vm0, %v824_v46 }
 0x67b   :  { %4681 = vmatpush3.bf16.xpose.msra.mxu1 %v1291_v47  ;;  %4639 = vmatpush3.bf16.msra.mxu0 %v4988_v37 }
 0x67c   :  { %4640 = vmatprep.subr.bf16.mxu0 %v4989_v36 }
 0x67f   :  { %4641 = vmatpush3.bf16.msra.mxu0 %v4989_v36 }
 0x680   :  { %4646 = vmatprep.subr.bf16.mxu0 %v4990_v23 }
 0x682   :  { %4683 = vmatmul.mubr.msk.bf16.vlgmr.msra.gmra.mrb[20].mxu1 %vm541_vm0, %v1276_v49 }
 0x69e   :  { %v1095_v50 = vpop.xlane.xlu0 %1094 }
 0x69f   :  { %v1105_v52 = vsub.f32 %v1079_v11, %v1095_v50 }
 0x6a1   :  { %v1109_v60 = vmul.f32 1.442695, %v1105_v52 }
 0x6a2   :  { %v1101_v53 = vpop.xlane.xlu0 %1100 }
 0x6a3   :  { %v1107_v58 = vsub.f32 %v1087_v12, %v1101_v53 }
 0x6a5   :  { %v1113_v62 = vmul.f32 1.442695, %v1107_v58 }
 0x6a6   :  { %v1104_v63 = vpop.xlane.xlu0 %1103 }
 0x6a7   :  { %5148 = vpow2.f32 %v1113_v62  ;;  %v1108_v3 = vsub.f32 %v1090_v21, %v1104_v63 }
 0x6a8   :  { %5150 = vpow2.f32 %v1109_v60 }
 0x6a9   :  { %v1115_v4 = vmul.f32 1.442695, %v1108_v3 }
 0x6aa   :  { %v1098_v5 = vpop.xlane.xlu1 %1097 }
 0x6ab   :  { %5152 = vpow2.f32 %v1115_v4  ;;  %v1106_v6 = vsub.f32 %v1082_v38, %v1098_v5 }
 0x6ad   :  { %v1111_v9 = vmul.f32 1.442695, %v1106_v6 }
 0x6af   :  { %5154 = vpow2.f32 %v1111_v9 }
 0x6b1   :  { %v5671_v10 = vpop.eup %5148 }
 0x6b2   :  { %v1123_v13 = vsel %vm541_vm0, %v5671_v10, 0.0  ;;  %v5151_v11 = vpop.eup %5150 }
 0x6b3   :  { %1124 = vadd.xlane.f32.xlu0 %v1123_v13  ;;  %v1117_v39 = vsel %vm541_vm0, %v5151_v11, 0.0 }
 0x6b5   :  { %v5675_v12 = vpop.eup %5152 }
 0x6b6   :  { %v1126_v21 = vsel %vm541_vm0, %v5675_v12, 0.0 }
 0x6b7   :  { %1118 = vadd.xlane.f32.xlu0 %v1117_v39  ;;  %1127 = vadd.xlane.f32.xlu1 %v1126_v21 }
 0x6b9   :  { %v5155_v22 = vpop.eup %5154 }
 0x6ba   :  { %v1120_v38 = vsel %vm541_vm0, %v5155_v22, 0.0 }
 0x6bb   :  { %1121 = vadd.xlane.f32.xlu1 %v1120_v38 }
 0x6cc   :  { %1141 = vrot.lane.b32.xlu1 %v5549_v54, %s5311_s20 }
 0x6cd   :  { %1139 = vrot.lane.b32.xlu0 %v5551_v55, %s5311_s20 }
 0x740   :  { %v1125_v25 = vpop.xlane.xlu0 %1124 }
 0x744   :  { %v1128_v24 = vpop.xlane.xlu1 %1127  ;;  %v1119_v27 = vpop.xlane.xlu0 %1118 }
 0x748   :  { %v1122_v26 = vpop.xlane.xlu1 %1121  ;;  %v1140_v46 = vpop.permute.xlu0 %1139 }
 0x749   :  { %5156 = vrcp.f32 %v1122_v26 }
 0x74a   :  { %5158 = vrcp.f32 %v1119_v27 }
 0x74b   :  { %5160 = vrcp.f32 %v1128_v24 }
 0x74c   :  { %5162 = vrcp.f32 %v1125_v25 }
 0x74d   :  { %v4636_v28 = vpop.f32.mrb[8].mxu0 }
 0x74e   :  { %v873_v29 = vpop.f32.mrb[9].mxu0 }
 0x74f   :  { %v4637_v30 = vpop.f32.mrb[10].mxu0 }
 0x750   :  { %v889_v31 = vpack.c.bf16 %v4637_v30, %v4636_v28  ;;  %v876_v32 = vpop.f32.mrb[11].mxu0 }
 0x751   :  { %v888_v33 = vpack.c.bf16 %v876_v32, %v873_v29 }
 0x753   :  { %4642 = vmatprep.mubr.msk.bf16.mxu0 %vm541_vm0, %v888_v33  ;;  %v5157_v44 = vpop.eup %5156 }
 0x754   :  { %4643 = vmatmul.mubr.msk.bf16.vlgmr.msra.gmra.mrb[12].mxu0 %vm541_vm0, %v889_v31  ;;  %v5159_v15 = vpop.eup %5158  ;;  %v1134_v52 = vmul.f32 %v5157_v44, %v5155_v22 }
 0x755   :  { %4647 = vmatpush3.bf16.msra.mxu0 %v4990_v23  ;;  %4650 = vmatprep.mubr.msk.bf16.mxu0 %vm541_vm0, %v704_v20  ;;  %v4684_v35 = vpop.f32.mrb[20].mxu1  ;;  %v1133_v53 = vmul.f32 %v5159_v15, %v5151_v11  ;;  %v5161_v58 = vpop.eup %5160 }
 0x756   :  { %v1327_v40 = vpop.f32.mrb[21].mxu1  ;;  %4648 = vmatprep.subr.bf16.mxu0 %v4991_v34  ;;  %v1336_v19 = vadd.f32 %v4684_v35, %v5565_v59  ;;  %v1142_v59 = vpop.permute.xlu1 %1141  ;;  %v1136_v62 = vmul.f32 %v5161_v58, %v5675_v12 }
 0x757   :  { %v1328_v41 = vadd.f32 %v1327_v40, %v5560_v57  ;;  %v4685_v43 = vpop.f32.mrb[22].mxu1  ;;  %v1137_v60 = vpack.c.bf16 %v1134_v52, %v1133_v53 }
 0x758   :  { %v1330_v45 = vpop.f32.mrb[23].mxu1  ;;  %v1339_v47 = vadd.f32 %v4685_v43, %v5576_v0  ;;  %v1348_v0 = vsel %vm541_vm0, %v1336_v19, -inf  ;;  %v4994_v43 = vld [vmem:[%s6578_s6 + $0x30] sm:$0xff]  }
 0x759   :  { %4649 = vmatpush3.bf16.msra.mxu0 %v4991_v34  ;;  %v1331_v49 = vadd.f32 %v1330_v45, %v5570_v61  ;;  %v1342_v50 = vsel %vm541_vm0, %v1328_v41, -inf  ;;  %v5163_v61 = vpop.eup %5162 }
 0x75a   :  { %4662 = vmatprep.subr.bf16.mxu0 %v1140_v46  ;;  %1343 = vmax.xlane.f32.xlu1 %v1342_v50  ;;  %v1351_v57 = vsel %vm541_vm0, %v1339_v47, -inf  ;;  %v1135_v63 = vmul.f32 %v5163_v61, %v5671_v10 }
 0x75b   :  { %v1345_v20 = vsel %vm541_vm0, %v1331_v49, -inf }
 0x75c   :  { %1346 = vmax.xlane.f32.xlu0 %v1345_v20  ;;  %v1138_v3 = vpack.c.bf16 %v1136_v62, %v1135_v63  ;;  %v1524_v62 = vsub.s32 3, %v5466_v48 }
 0x75e   :  { %1352 = vmax.xlane.f32.xlu1 %v1351_v57  ;;  %v4995_v57 = vld [vmem:[%s6578_s6 + $0x38] sm:$0xff]   ;;  %v1525_v63 = vrot.slane %v5519_v17, %v1524_v62  ;;  %v4996_v17 = vld [vmem:[%s6579_s8] ss:$8 sps:$4 sm:$0xff]  }
 0x760   :  { %4651 = vmatmul.mubr.msk.bf16.vlgmr.msra.gmra.mrb[12].mxu0 %vm541_vm0, %v705_v18  ;;  %1349 = vmax.xlane.f32.xlu0 %v1348_v0 }
 0x761   :  { %4663 = vmatpush3.bf16.msra.mxu0 %v1140_v46  ;;  %4666 = vmatprep.mubr.msk.bf16.mxu0 %vm541_vm0, %v1137_v60 }
 0x762   :  { %4664 = vmatprep.subr.bf16.mxu0 %v1142_v59 }
 0x765   :  { %4665 = vmatpush3.bf16.msra.mxu0 %v1142_v59 }
 0x766   :  { %4670 = vmatprep.subr.bf16.mxu0 %v4992_v14 }
 0x768   :  { %4667 = vmatmul.mubr.msk.bf16.vlgmr.msra.gmra.mrb[16].mxu0 %vm541_vm0, %v1138_v3 }
 0x769   :  { %4671 = vmatpush3.bf16.msra.mxu0 %v4992_v14 }
 0x76a   :  { %4672 = vmatprep.subr.bf16.mxu0 %v4993_v16 }
 0x76d   :  { %4673 = vmatpush3.bf16.msra.mxu0 %v4993_v16 }
 0x7e7   :  { %v1344_v18 = vpop.xlane.xlu1 %1343 }
 0x7e8   :  { %v1354_v9 = vsub.f32 %v1328_v41, %v1344_v18 }
 0x7e9   :  { %v1347_v4 = vpop.xlane.xlu0 %1346 }
 0x7ea   :  { %v1355_v5 = vsub.f32 %v1331_v49, %v1347_v4  ;;  %v1358_v21 = vmul.f32 1.442695, %v1354_v9 }
 0x7eb   :  { %v1353_v6 = vpop.xlane.xlu1 %1352 }
 0x7ec   :  { %v1357_v10 = vsub.f32 %v1339_v47, %v1353_v6  ;;  %v1360_v13 = vmul.f32 1.442695, %v1355_v5 }
 0x7ed   :  { %v1350_v11 = vpop.xlane.xlu0 %1349 }
 0x7ee   :  { %v1364_v12 = vmul.f32 1.442695, %v1357_v10  ;;  %v1356_v39 = vsub.f32 %v1336_v19, %v1350_v11 }
 0x7f0   :  { %5164 = vpow2.f32 %v1364_v12  ;;  %v1362_v22 = vmul.f32 1.442695, %v1356_v39  ;;  %v4998_v39 = vld [vmem:[%s6579_s8 + $0x4] ss:$8 sps:$4 sm:$0xff]  }
 0x7f1   :  { %5166 = vpow2.f32 %v1360_v13  ;;  %1687 = vmatprep.subr.bf16.mxu1 %v4998_v39 }
 0x7f2   :  { %5168 = vpow2.f32 %v1362_v22  ;;  %1688 = vmatpush1.bf16.msra.mxu1 %v4996_v17 }
 0x7f3   :  { %5170 = vpow2.f32 %v1358_v21 }
 0x7fa   :  { %v5165_v38 = vpop.eup %5164 }
 0x7fb   :  { %v5167_v37 = vpop.eup %5166  ;;  %v1375_v36 = vsel %vm541_vm0, %v5165_v38, 0.0 }
 0x7fc   :  { %v5169_v23 = vpop.eup %5168  ;;  %1376 = vadd.xlane.f32.xlu1 %v1375_v36  ;;  %v1369_v26 = vsel %vm541_vm0, %v5167_v37, 0.0 }
 0x7fd   :  { %v1372_v24 = vsel %vm541_vm0, %v5169_v23, 0.0  ;;  %v5171_v25 = vpop.eup %5170 }
 0x7fe   :  { %1373 = vadd.xlane.f32.xlu0 %v1372_v24  ;;  %v1366_v27 = vsel %vm541_vm0, %v5171_v25, 0.0 }
 0x800   :  { %1370 = vadd.xlane.f32.xlu1 %v1369_v26 }
 0x802   :  { %1367 = vadd.xlane.f32.xlu0 %v1366_v27 }
 0x811   :  { %1390 = vrot.lane.b32.xlu1 %v5549_v54, %s5312_s21 }
 0x818   :  { %1388 = vrot.lane.b32.xlu0 %v5551_v55, %s5312_s21 }
 0x83b   :  { %v4668_v28 = vpop.f32.mrb[16].mxu0 }
 0x83c   :  { %v1185_v29 = vpop.f32.mrb[17].mxu0 }
 0x83d   :  { %v4669_v30 = vpop.f32.mrb[18].mxu0 }
 0x83e   :  { %v1201_v31 = vpack.c.bf16 %v4669_v30, %v4668_v28  ;;  %v1188_v32 = vpop.f32.mrb[19].mxu0 }
 0x83f   :  { %v1200_v33 = vpack.c.bf16 %v1188_v32, %v1185_v29  ;;  %v5004_v32 = vld [vmem:[%s6579_s8 + $0x24] ss:$8 sps:$4 sm:$0xff]  }
 0x841   :  { %4674 = vmatprep.mubr.msk.bf16.mxu0 %vm541_vm0, %v1200_v33  ;;  %v5002_v33 = vld [vmem:[%s6579_s8 + $0x20] ss:$8 sps:$4 sm:$0xff]  }
 0x842   :  { %4675 = vmatmul.mubr.msk.bf16.vlgmr.msra.gmra.mrb[12].mxu0 %vm541_vm0, %v1201_v31 }
 0x889   :  { %v1377_v34 = vpop.xlane.xlu1 %1376 }
 0x88b   :  { %v1374_v35 = vpop.xlane.xlu0 %1373 }
 0x88c   :  { %5172 = vrcp.f32 %v1374_v35  ;;  %v5005_v35 = vld [vmem:[%s6579_s8 + $0x30] ss:$8 sps:$4 sm:$0xff]  }
 0x88d   :  { %v1371_v40 = vpop.xlane.xlu1 %1370 }
 0x88e   :  { %5174 = vrcp.f32 %v1371_v40  ;;  %v5010_v40 = vld [vmem:[%s6579_s8 + $0x44] ss:$8 sps:$4 sm:$0xff]  }
 0x88f   :  { %5176 = vrcp.f32 %v1377_v34  ;;  %v1368_v54 = vpop.xlane.xlu0 %1367  ;;  %v5007_v34 = vld [vmem:[%s6579_s8 + $0x34] ss:$8 sps:$4 sm:$0xff]  }
 0x890   :  { %5178 = vrcp.f32 %v1368_v54  ;;  %v5008_v54 = vld [vmem:[%s6579_s8 + $0x40] ss:$8 sps:$4 sm:$0xff]  }
 0x891   :  { %v1391_v55 = vpop.permute.xlu1 %1390 }
 0x893   :  { %v1389_v41 = vpop.permute.xlu0 %1388 }
 0x894   :  { %4686 = vmatprep.subr.bf16.mxu0 %v1389_v41 }
 0x895   :  { %4687 = vmatpush3.bf16.msra.mxu0 %v1389_v41  ;;  %v5013_v41 = vld [vmem:[%s6579_s8 + $0x54] ss:$8 sps:$4 sm:$0xff]  }
 0x896   :  { %4688 = vmatprep.subr.bf16.mxu0 %v1391_v55  ;;  %v5173_v44 = vpop.eup %5172 }
 0x897   :  { %v1384_v49 = vmul.f32 %v5173_v44, %v5169_v23  ;;  %v5014_v44 = vld [vmem:[%s6579_s8 + $0x60] ss:$8 sps:$4 sm:$0xff]  }
 0x898   :  { %v5175_v45 = vpop.eup %5174 }
 0x899   :  { %v5177_v46 = vpop.eup %5176  ;;  %4689 = vmatpush3.bf16.msra.mxu0 %v1391_v55  ;;  %v1383_v15 = vmul.f32 %v5175_v45, %v5167_v37  ;;  %v5011_v55 = vld [vmem:[%s6579_s8 + $0x50] ss:$8 sps:$4 sm:$0xff]   ;;  %v5019_v45 = vld [vmem:[%s6579_s8 + $0x74] ss:$8 sps:$4 sm:$0xff]  }
 0x89a   :  { %v5179_v47 = vpop.eup %5178  ;;  %4694 = vmatprep.subr.bf16.mxu0 %v4994_v43  ;;  %v1385_v19 = vmul.f32 %v5177_v46, %v5165_v38  ;;  %v5017_v46 = vld [vmem:[%s6579_s8 + $0x70] ss:$8 sps:$4 sm:$0xff]  }
 0x89b   :  { %v1382_v50 = vmul.f32 %v5179_v47, %v5171_v25  ;;  %v5313_v47 = vmov 0  }
 0x89c   :  { %v1387_v52 = vpack.c.bf16 %v1385_v19, %v1384_v49  ;;  %1719 = vmatprep.mubr.bf16.mxu1 %v5313_v47 }
 0x89d   :  { %v1386_v20 = vpack.c.bf16 %v1383_v15, %v1382_v50 }
 0x89f   :  { %4690 = vmatprep.mubr.msk.bf16.mxu0 %vm541_vm0, %v1386_v20 }
 0x8a0   :  { %4691 = vmatmul.mubr.msk.bf16.vlgmr.msra.gmra.mrb[20].mxu0 %vm541_vm0, %v1387_v52 }
 0x8a1   :  { %4695 = vmatpush3.bf16.msra.mxu0 %v4994_v43  ;;  %v5016_v43 = vld [vmem:[%s6579_s8 + $0x64] ss:$8 sps:$4 sm:$0xff]  }
 0x8a2   :  { %4696 = vmatprep.subr.bf16.mxu0 %v4995_v57 }
 0x8a5   :  { %4697 = vmatpush3.bf16.msra.mxu0 %v4995_v57 }
 0x973   :  { %v4692_v53 = vpop.f32.mrb[20].mxu0 }
 0x974   :  { %v1434_v58 = vpop.f32.mrb[21].mxu0 }
 0x975   :  { %v4693_v0 = vpop.f32.mrb[22].mxu0 }
 0x976   :  { %v1450_v60 = vpack.c.bf16 %v4693_v0, %v4692_v53  ;;  %v1437_v61 = vpop.f32.mrb[23].mxu0 }
 0x977   :  { %v1449_v59 = vpack.c.bf16 %v1437_v61, %v1434_v58 }
 0x979   :  { %4698 = vmatprep.mubr.msk.bf16.mxu0 %vm541_vm0, %v1449_v59  ;;  %v1580_v59 = vsub.s32 4, %v5466_v48 }
 0x97a   :  { %4699 = vmatmul.mubr.msk.bf16.vlgmr.msra.gmra.mrb[12].mxu0 %vm541_vm0, %v1450_v60 }
 0xa4d   :  { %v4700_v3 = vpop.f32.mrb[12].mxu0 }
 0xa4e   :  { %v1503_v14 = vpop.f32.mrb[13].mxu0  ;;  %v1528_v10 = vadd.f32 %v4700_v3, %v1525_v63 }
 0xa4f   :  { %v1526_v16 = vadd.f32 %v1525_v63, %v1503_v14  ;;  %v4701_v18 = vpop.f32.mrb[14].mxu0  ;;  %v1588_v14 = vsub.s32 5, %v5466_v48 }
 0xa50   :  { %v1506_v4 = vpop.f32.mrb[15].mxu0  ;;  %v1529_v5 = vadd.f32 %v4701_v18, %v1525_v63  ;;  %v1532_v12 = vadd.f32 %v1528_v10, %v5489_v7 }
 0xa51   :  { %v1527_v6 = vadd.f32 %v1525_v63, %v1506_v4  ;;  %v1530_v9 = vadd.f32 %v1526_v16, %v5482_v1  ;;  %v4999_v1 = vld [vmem:[%s6579_s8 + $0x10] ss:$8 sps:$4 sm:$0xff]   ;;  %v5822_v63 = vld [vmem:[%s6576_s7] sm:$0xff] }
 0xa52   :  { %v1533_v11 = vadd.f32 %v1529_v5, %v5491_v8  ;;  %v1581_v3 = vrot.slane %v5822_v63, %v1580_v59 }
 0xa53   :  { %1534 = vadd.xlane.f32.xlu1 %v1530_v9  ;;  %v1531_v13 = vadd.f32 %v1527_v6, %v5484_v2  ;;  %v5001_v2 = vld [vmem:[%s6579_s8 + $0x14] ss:$8 sps:$4 sm:$0xff]  }
 0xa54   :  { %1689 = vmatprep.subr.bf16.mxu1 %v5001_v2 }
 0xa55   :  { %1536 = vadd.xlane.f32.xlu0 %v1531_v13  ;;  %1690 = vmatpush1.bf16.msra.mxu1 %v4999_v1 }
 0xa56   :  { %1691 = vmatprep.subr.bf16.mxu1 %v5004_v32  ;;  %v5031_v32 = vld [vmem:[%s6580_s10 + $0x28] sm:$0xff]  }
 0xa57   :  { %1540 = vadd.xlane.f32.xlu1 %v1533_v11 }
 0xa59   :  { %1538 = vadd.xlane.f32.xlu0 %v1532_v12  ;;  %1692 = vmatpush1.bf16.msra.mxu1 %v5002_v33  ;;  %v5032_v33 = vld [vmem:[%s6580_s10 + $0x70] sm:$0xff]  }
 0xa5a   :  { %1693 = vmatprep.subr.bf16.mxu1 %v5007_v34  ;;  %v5033_v34 = vld [vmem:[%s6580_s10 + $0x30] sm:$0xff]  }
 0xa5d   :  { %1694 = vmatpush1.bf16.msra.mxu1 %v5005_v35  ;;  %v5034_v35 = vld [vmem:[%s6580_s10 + $0x78] sm:$0xff]  }
 0xa5e   :  { %1695 = vmatprep.subr.bf16.mxu1 %v5010_v40  ;;  %v5035_v40 = vld [vmem:[%s6580_s10 + $0x38] sm:$0xff]  }
 0xa61   :  { %1696 = vmatpush1.bf16.msra.mxu1 %v5008_v54  ;;  %v229_v54 = vld [vmem:[%s6581_s9] ss:$2 sm:$0x3] }
 0xa62   :  { %1697 = vmatprep.subr.bf16.mxu1 %v5013_v41  ;;  %v1600_v41 = vrot.slane %v229_v54, %v5469_v51 }
 0xa65   :  { %1698 = vmatpush1.bf16.msra.mxu1 %v5011_v55  ;;  %v1604_v55 = vrot.slane %v229_v54, %v5477_v56 }
 0xa66   :  { %1699 = vmatprep.subr.bf16.mxu1 %v5016_v43 }
 0xa69   :  { %1700 = vmatpush1.bf16.msra.mxu1 %v5014_v44 }
 0xa6a   :  { %1701 = vmatprep.subr.bf16.mxu1 %v5019_v45 }
 0xa6d   :  { %1702 = vmatpush1.bf16.msra.mxu1 %v5017_v46 }
 0xae0   :  { %v1535_v7 = vpop.xlane.xlu1 %1534 }
 0xae1   :  { %v1542_v8 = vmul.f32 0.0078125, %v1535_v7 }
 0xae2   :  { %v1537_v21 = vpop.xlane.xlu0 %1536 }
 0xae3   :  { %v5765_v22 = vsub.f32 %v1530_v9, %v1542_v8  ;;  %v1543_v38 = vmul.f32 0.0078125, %v1537_v21  ;;  %v1589_v9 = vrot.slane %v5822_v63, %v1588_v14 }
 0xae4   :  { %v1541_v37 = vpop.xlane.xlu1 %1540 }
 0xae5   :  { %v5767_v36 = vsub.f32 %v1531_v13, %v1543_v38  ;;  %v1545_v23 = vmul.f32 0.0078125, %v1541_v37  ;;  %v1550_v24 = vmul.f32 %v5765_v22, %v5765_v22  ;;  %v5020_v37 = vld [vmem:[%s6580_s10 + $0x40] sm:$0xff]  }
 0xae6   :  { %v1539_v25 = vpop.xlane.xlu0 %1538  ;;  %4395 = vmatprep.subr.bf16.mxu0 %v5020_v37 }
 0xae7   :  { %v5771_v26 = vsub.f32 %v1533_v11, %v1545_v23  ;;  %v1544_v27 = vmul.f32 0.0078125, %v1539_v25  ;;  %1554 = vadd.xlane.f32.xlu0 %v1550_v24  ;;  %v1551_v28 = vmul.f32 %v5767_v36, %v5767_v36  ;;  %v5022_v23 = vld [vmem:[%s6580_s10 + $0x48] sm:$0xff]   ;;  %v5024_v25 = vld [vmem:[%s6580_s10 + $0x50] sm:$0xff]  }
 0xae8   :  { %v5023_v24 = vld [vmem:[%s6580_s10 + $0x8] sm:$0xff]  }
 0xae9   :  { %v5775_v29 = vsub.f32 %v1532_v12, %v1544_v27  ;;  %1556 = vadd.xlane.f32.xlu1 %v1551_v28  ;;  %v1553_v30 = vmul.f32 %v5771_v26, %v5771_v26  ;;  %v5026_v27 = vld [vmem:[%s6580_s10 + $0x58] sm:$0xff]  }
 0xaea   :  { %v5027_v28 = vld [vmem:[%s6580_s10 + $0x18] sm:$0xff]  }
 0xaeb   :  { %v1552_v31 = vmul.f32 %v5775_v29, %v5775_v29 }
 0xaed   :  { %1560 = vadd.xlane.f32.xlu1 %v1553_v30  ;;  %1558 = vadd.xlane.f32.xlu0 %v1552_v31  ;;  %v5029_v30 = vld [vmem:[%s6580_s10 + $0x20] sm:$0xff]   ;;  %v5030_v31 = vld [vmem:[%s6580_s10 + $0x68] sm:$0xff]  }
 0xb74   :  { %v1555_v49 = vpop.xlane.xlu0 %1554 }
 0xb75   :  { %v1562_v50 = vmul.f32 0.0078125, %v1555_v49 }
 0xb76   :  { %v1557_v15 = vpop.xlane.xlu1 %1556 }
 0xb77   :  { %v1566_v19 = vadd.f32 1e-07, %v1562_v50  ;;  %v1563_v20 = vmul.f32 0.0078125, %v1557_v15 }
 0xb79   :  { %5180 = vrsqrt.f32 %v1566_v19  ;;  %v1567_v52 = vadd.f32 1e-07, %v1563_v20 }
 0xb7a   :  { %v1561_v57 = vpop.xlane.xlu1 %1560  ;;  %v1559_v53 = vpop.xlane.xlu0 %1558 }
 0xb7b   :  { %5182 = vrsqrt.f32 %v1567_v52  ;;  %v1565_v58 = vmul.f32 0.0078125, %v1561_v57  ;;  %v1564_v0 = vmul.f32 0.0078125, %v1559_v53 }
 0xb7d   :  { %v1569_v60 = vadd.f32 1e-07, %v1565_v58  ;;  %v1568_v61 = vadd.f32 1e-07, %v1564_v0 }
 0xb7f   :  { %5184 = vrsqrt.f32 %v1569_v60 }
 0xb80   :  { %5186 = vrsqrt.f32 %v1568_v61 }
 0xb83   :  { %v5181_v16 = vpop.eup %5180 }
 0xb84   :  { %v1574_v18 = vmul.f32 %v5181_v16, %v5765_v22 }
 0xb85   :  { %v5183_v4 = vpop.eup %5182 }
 0xb86   :  { %v1575_v5 = vmul.f32 %v5183_v4, %v5767_v36  ;;  %v1582_v6 = vmul.f32 %v1581_v3, %v1574_v18  ;;  %v5021_v36 = vld [vmem:[%s6580_s10] sm:$0xff]  }
 0xb87   :  { %4396 = vmatpush3.bf16.msra.mxu0 %v5021_v36 }
 0xb88   :  { %v1583_v10 = vmul.f32 %v1581_v3, %v1575_v5  ;;  %v5833_v12 = vadd.f32 %v1589_v9, %v1582_v6  ;;  %4397 = vmatprep.subr.bf16.mxu0 %v5022_v23 }
 0xb89   :  { %v5185_v13 = vpop.eup %5184 }
 0xb8a   :  { %v5187_v11 = vpop.eup %5186  ;;  %v5835_v17 = vadd.f32 %v1589_v9, %v1583_v10  ;;  %v1577_v39 = vmul.f32 %v5185_v13, %v5771_v26  ;;  %v5025_v26 = vld [vmem:[%s6580_s10 + $0x10] sm:$0xff]  }
 0xb8b   :  { %v1576_v1 = vmul.f32 %v5187_v11, %v5775_v29  ;;  %4398 = vmatpush3.bf16.msra.mxu0 %v5023_v24  ;;  %v5028_v29 = vld [vmem:[%s6580_s10 + $0x60] sm:$0xff]  }
 0xb8c   :  { %v1594_v2 = vpack.c.bf16 %v5835_v17, %v5833_v12  ;;  %v1585_v7 = vmul.f32 %v1581_v3, %v1577_v39  ;;  %4399 = vmatprep.subr.bf16.mxu0 %v5024_v25 }
 0xb8d   :  { %v1584_v8 = vmul.f32 %v1581_v3, %v1576_v1 }
 0xb8e   :  { %1720 = vmatmul.mubr.bf16.vlgmr.msra.gmra.mrb[24].mxu1 %v1594_v2  ;;  %v5844_v22 = vadd.f32 %v1589_v9, %v1585_v7 }
 0xb8f   :  { %1729 = vmatprep.mubr.bf16.mxu1 %v5313_v47  ;;  %v5842_v21 = vadd.f32 %v1589_v9, %v1584_v8  ;;  %4400 = vmatpush3.bf16.msra.mxu0 %v5025_v26 }
 0xb90   :  { %4401 = vmatprep.subr.bf16.mxu0 %v5026_v27 }
 0xb91   :  { %v1595_v38 = vpack.c.bf16 %v5844_v22, %v5842_v21 }
 0xb93   :  { %4402 = vmatpush3.bf16.msra.mxu0 %v5027_v28 }
 0xb94   :  { %4403 = vmatprep.subr.bf16.mxu0 %v5028_v29 }
 0xb96   :  { %1730 = vmatmul.mubr.bf16.gmra.mrb[28].mxu1 %v1595_v38 }
 0xb97   :  { %4404 = vmatpush3.bf16.msra.mxu0 %v5029_v30 }
 0xb98   :  { %4405 = vmatprep.subr.bf16.mxu0 %v5030_v31 }
 0xb9b   :  { %4406 = vmatpush3.bf16.msra.mxu0 %v5031_v32 }
 0xb9c   :  { %4407 = vmatprep.subr.bf16.mxu0 %v5032_v33 }
 0xb9f   :  { %4408 = vmatpush3.bf16.msra.mxu0 %v5033_v34 }
 0xba0   :  { %4409 = vmatprep.subr.bf16.mxu0 %v5034_v35 }
 0xba3   :  { %4410 = vmatpush3.bf16.msra.mxu0 %v5035_v40 }
 0xc61   :  { %v1721_v43 = vpop.f32.mrb[24].mxu1 }
 0xc62   :  { %v5901_v44 = vadd.f32 %v1721_v43, %v1600_v41  ;;  %v1723_v45 = vpop.f32.mrb[25].mxu1 }
 0xc63   :  { %v5903_v46 = vadd.f32 %v1723_v45, %v1604_v55  ;;  %v1725_v49 = vpop.f32.mrb[26].mxu1 }
 0xc64   :  { %v1740_v50 = vmul.f32 %v5901_v44, %v5901_v44  ;;  %v5907_v15 = vadd.f32 %v1725_v49, %v1600_v41  ;;  %v1727_v19 = vpop.f32.mrb[27].mxu1 }
 0xc65   :  { %v1741_v20 = vmul.f32 %v5903_v46, %v5903_v46  ;;  %v5911_v52 = vadd.f32 %v1727_v19, %v1604_v55 }
 0xc66   :  { %v1748_v57 = vmul.f32 %v1740_v50, %v5901_v44  ;;  %v1742_v53 = vmul.f32 %v5907_v15, %v5907_v15 }
 0xc67   :  { %v1749_v58 = vmul.f32 %v1741_v20, %v5903_v46  ;;  %v1743_v0 = vmul.f32 %v5911_v52, %v5911_v52 }
 0xc68   :  { %v1756_v60 = vmul.f32 0.044715, %v1748_v57  ;;  %v1750_v61 = vmul.f32 %v1742_v53, %v5907_v15 }
 0xc69   :  { %v1757_v3 = vmul.f32 0.044715, %v1749_v58  ;;  %v1751_v16 = vmul.f32 %v1743_v0, %v5911_v52  ;;  %v1731_v18 = vpop.f32.mrb[28].mxu1 }
 0xc6a   :  { %v1764_v4 = vadd.f32 %v1756_v60, %v5901_v44  ;;  %v1758_v5 = vmul.f32 0.044715, %v1750_v61  ;;  %v5922_v6 = vadd.f32 %v1731_v18, %v1600_v41  ;;  %v1733_v9 = vpop.f32.mrb[29].mxu1 }
 0xc6b   :  { %v1765_v10 = vadd.f32 %v1757_v3, %v5903_v46  ;;  %v1759_v13 = vmul.f32 0.044715, %v1751_v16  ;;  %v5925_v11 = vadd.f32 %v1733_v9, %v1604_v55  ;;  %v1735_v39 = vpop.f32.mrb[30].mxu1 }
 0xc6c   :  { %v1772_v1 = vmul.f32 0.7978846, %v1764_v4  ;;  %v1766_v2 = vadd.f32 %v1758_v5, %v5907_v15  ;;  %v1744_v7 = vmul.f32 %v5922_v6, %v5922_v6  ;;  %v5930_v8 = vadd.f32 %v1735_v39, %v1600_v41  ;;  %v1737_v38 = vpop.f32.mrb[31].mxu1 }
 0xc6d   :  { %v1773_v37 = vmul.f32 0.7978846, %v1765_v10  ;;  %v1767_v36 = vadd.f32 %v1759_v13, %v5911_v52  ;;  %v1745_v23 = vmul.f32 %v5925_v11, %v5925_v11  ;;  %v5935_v24 = vadd.f32 %v1737_v38, %v1604_v55 }
 0xc6e   :  { %5188 = vtanh.f32 %v1772_v1  ;;  %v1774_v25 = vmul.f32 0.7978846, %v1766_v2  ;;  %v1752_v26 = vmul.f32 %v1744_v7, %v5922_v6  ;;  %v1746_v27 = vmul.f32 %v5930_v8, %v5930_v8 }
 0xc6f   :  { %5190 = vtanh.f32 %v1773_v37  ;;  %v1775_v28 = vmul.f32 0.7978846, %v1767_v36  ;;  %v1753_v29 = vmul.f32 %v1745_v23, %v5925_v11  ;;  %v1747_v30 = vmul.f32 %v5935_v24, %v5935_v24 }
 0xc70   :  { %5192 = vtanh.f32 %v1774_v25  ;;  %v1760_v31 = vmul.f32 0.044715, %v1752_v26  ;;  %v1754_v32 = vmul.f32 %v1746_v27, %v5930_v8 }
 0xc71   :  { %5194 = vtanh.f32 %v1775_v28  ;;  %v1761_v33 = vmul.f32 0.044715, %v1753_v29  ;;  %v1755_v34 = vmul.f32 %v1747_v30, %v5935_v24 }
 0xc72   :  { %v1768_v35 = vadd.f32 %v1760_v31, %v5922_v6  ;;  %v1762_v40 = vmul.f32 0.044715, %v1754_v32 }
 0xc73   :  { %v1769_v54 = vadd.f32 %v1761_v33, %v5925_v11  ;;  %v1763_v41 = vmul.f32 0.044715, %v1755_v34  ;;  %v1818_v34 = vsub.s32 6, %v5466_v48 }
 0xc74   :  { %v1776_v55 = vmul.f32 0.7978846, %v1768_v35  ;;  %v1770_v43 = vadd.f32 %v1762_v40, %v5930_v8 }
 0xc75   :  { %v1777_v45 = vmul.f32 0.7978846, %v1769_v54  ;;  %v1771_v49 = vadd.f32 %v1763_v41, %v5935_v24  ;;  %v1819_v40 = vrot.slane %v5822_v63, %v1818_v34 }
 0xc76   :  { %5196 = vtanh.f32 %v1776_v55  ;;  %v1778_v50 = vmul.f32 0.7978846, %v1770_v43 }
 0xc77   :  { %5198 = vtanh.f32 %v1777_v45  ;;  %v1779_v19 = vmul.f32 0.7978846, %v1771_v49 }
 0xc78   :  { %v5189_v20 = vpop.eup %5188  ;;  %5200 = vtanh.f32 %v1778_v50 }
 0xc79   :  { %v5191_v57 = vpop.eup %5190  ;;  %v1788_v53 = vadd.f32 1.0, %v5189_v20  ;;  %5202 = vtanh.f32 %v1779_v19 }
 0xc7a   :  { %v5193_v58 = vpop.eup %5192  ;;  %v1789_v0 = vadd.f32 1.0, %v5191_v57 }
 0xc7b   :  { %v5195_v60 = vpop.eup %5194  ;;  %v1796_v61 = vmul.f32 0.5, %v1788_v53  ;;  %v1790_v3 = vadd.f32 1.0, %v5193_v58 }
 0xc7c   :  { %v1791_v16 = vadd.f32 1.0, %v5195_v60  ;;  %v1797_v18 = vmul.f32 0.5, %v1789_v0 }
 0xc7d   :  { %v1798_v4 = vmul.f32 0.5, %v1790_v3  ;;  %v1804_v9 = vmul.f32 %v1796_v61, %v5901_v44 }
 0xc7e   :  { %v1799_v5 = vmul.f32 0.5, %v1791_v16  ;;  %v1805_v39 = vmul.f32 %v1797_v18, %v5903_v46 }
 0xc7f   :  { %v1806_v10 = vmul.f32 %v1798_v4, %v5907_v15 }
 0xc80   :  { %v5197_v13 = vpop.eup %5196  ;;  %v1807_v1 = vmul.f32 %v1799_v5, %v5911_v52 }
 0xc81   :  { %v5199_v2 = vpop.eup %5198  ;;  %v1812_v7 = vpack.c.bf16 %v1806_v10, %v1804_v9  ;;  %v1792_v38 = vadd.f32 1.0, %v5197_v13 }
 0xc82   :  { %v5201_v37 = vpop.eup %5200  ;;  %v1813_v36 = vpack.c.bf16 %v1807_v1, %v1805_v39  ;;  %v1793_v23 = vadd.f32 1.0, %v5199_v2 }
 0xc83   :  { %v5203_v25 = vpop.eup %5202  ;;  %v1794_v26 = vadd.f32 1.0, %v5201_v37  ;;  %v1800_v27 = vmul.f32 0.5, %v1792_v38  ;;  %v5036_v38 = vld [vmem:[%s6572_s3 + $0x40] sm:$0xff]  }
 0xc84   :  { %1948 = vmatprep.mubr.bf16.mxu0 %v1813_v36  ;;  %v1795_v28 = vadd.f32 1.0, %v5203_v25  ;;  %v1801_v29 = vmul.f32 0.5, %v1793_v23  ;;  %v5037_v37 = vld [vmem:[%s6573_s4 + $0x40] sm:$0xff]   ;;  %4702 = vmatprep.subr.bf16.mxu1 %v5036_v38  ;;  %v5038_v36 = vld [vmem:[%s6572_s3 + $0x48] sm:$0xff]   ;;  %v5040_v25 = vld [vmem:[%s6572_s3 + $0x50] sm:$0xff]  }
 0xc85   :  { %1949 = vmatmul.mubr.bf16.vlgmr.msra.gmra.mrb[24].mxu0 %v1812_v7  ;;  %v1802_v44 = vmul.f32 0.5, %v1794_v26  ;;  %v1808_v30 = vmul.f32 %v1800_v27, %v5922_v6  ;;  %4703 = vmatpush3.bf16.msra.mxu1 %v5036_v38  ;;  %v5039_v23 = vld [vmem:[%s6573_s4 + $0x48] sm:$0xff]   ;;  %v5041_v26 = vld [vmem:[%s6573_s4 + $0x50] sm:$0xff]   ;;  %v5042_v27 = vld [vmem:[%s6572_s3 + $0x58] sm:$0xff]  }
 0xc86   :  { %v1803_v15 = vmul.f32 0.5, %v1795_v28  ;;  %v1809_v52 = vmul.f32 %v1801_v29, %v5925_v11  ;;  %4722 = vmatprep.subr.bf16.mxu0 %v5037_v37  ;;  %4704 = vmatprep.subr.bf16.mxu1 %v5038_v36  ;;  %v5043_v28 = vld [vmem:[%s6573_s4 + $0x58] sm:$0xff]   ;;  %v5044_v29 = vld [vmem:[%s6572_s3 + $0x60] sm:$0xff]   ;;  %v5058_v38 = vld [vmem:[%s6574_s5 + $0x70] sm:$0xff]  }
 0xc87   :  { %v1810_v46 = vmul.f32 %v1802_v44, %v5930_v8  ;;  %4723 = vmatpush3.bf16.msra.mxu0 %v5037_v37  ;;  %v5045_v44 = vld [vmem:[%s6573_s4 + $0x60] sm:$0xff]   ;;  %v5059_v37 = vld [vmem:[%s6574_s5 + $0x78] sm:$0xff]  }
 0xc88   :  { %v1811_v31 = vmul.f32 %v1803_v15, %v5935_v24  ;;  %4724 = vmatprep.subr.bf16.mxu0 %v5039_v23  ;;  %v5046_v15 = vld [vmem:[%s6572_s3 + $0x68] sm:$0xff]  }
 0xc89   :  { %v1814_v32 = vpack.c.bf16 %v1810_v46, %v1808_v30  ;;  %4705 = vmatpush3.bf16.msra.mxu1 %v5038_v36  ;;  %v5047_v30 = vld [vmem:[%s6573_s4 + $0x68] sm:$0xff]   ;;  %v5048_v46 = vld [vmem:[%s6572_s3 + $0x70] sm:$0xff]  }
 0xc8a   :  { %v1815_v33 = vpack.c.bf16 %v1811_v31, %v1809_v52  ;;  %4706 = vmatprep.subr.bf16.mxu1 %v5040_v25  ;;  %v5049_v52 = vld [vmem:[%s6573_s4 + $0x70] sm:$0xff]   ;;  %v5050_v31 = vld [vmem:[%s6572_s3 + $0x78] sm:$0xff]  }
 0xc8b   :  { %4725 = vmatpush3.bf16.msra.mxu0 %v5039_v23  ;;  %v6079_v36 = vld [vmem:[%s6576_s7 + $0x10] sm:$0xff] }
 0xc8c   :  { %1956 = vmatprep.mubr.bf16.mxu0 %v1815_v33  ;;  %4726 = vmatprep.subr.bf16.mxu0 %v5041_v26  ;;  %v5052_v33 = vld [vmem:[%s6574_s5 + $0x40] sm:$0xff]   ;;  %v2157_v23 = vrot.slane %v6079_v36, %v5469_v51 }
 0xc8d   :  { %1957 = vmatmul.mubr.bf16.gmra.mrb[28].mxu0 %v1814_v32  ;;  %4707 = vmatpush3.bf16.msra.mxu1 %v5040_v25  ;;  %v5051_v32 = vld [vmem:[%s6573_s4 + $0x78] sm:$0xff]   ;;  %v2258_v25 = vrot.slane %v6079_v36, %v5477_v56 }
 0xc8e   :  { %4708 = vmatprep.subr.bf16.mxu1 %v5042_v27 }
 0xc8f   :  { %4727 = vmatpush3.bf16.msra.mxu0 %v5041_v26 }
 0xc90   :  { %4728 = vmatprep.subr.bf16.mxu0 %v5043_v28 }
 0xc91   :  { %4709 = vmatpush3.bf16.msra.mxu1 %v5042_v27 }
 0xc92   :  { %4710 = vmatprep.subr.bf16.mxu1 %v5044_v29 }
 0xc93   :  { %4729 = vmatpush3.bf16.msra.mxu0 %v5043_v28 }
 0xc94   :  { %4730 = vmatprep.subr.bf16.mxu0 %v5045_v44 }
 0xc95   :  { %4711 = vmatpush3.bf16.msra.mxu1 %v5044_v29 }
 0xc96   :  { %4712 = vmatprep.subr.bf16.mxu1 %v5046_v15 }
 0xc97   :  { %4731 = vmatpush3.bf16.msra.mxu0 %v5045_v44 }
 0xc98   :  { %4732 = vmatprep.subr.bf16.mxu0 %v5047_v30 }
 0xc99   :  { %4713 = vmatpush3.bf16.msra.mxu1 %v5046_v15 }
 0xc9a   :  { %4714 = vmatprep.subr.bf16.mxu1 %v5048_v46 }
 0xc9b   :  { %4733 = vmatpush3.bf16.msra.mxu0 %v5047_v30 }
 0xc9c   :  { %4734 = vmatprep.subr.bf16.mxu0 %v5049_v52 }
 0xc9d   :  { %4715 = vmatpush3.bf16.msra.mxu1 %v5048_v46 }
 0xc9e   :  { %4716 = vmatprep.subr.bf16.mxu1 %v5050_v31 }
 0xc9f   :  { %4735 = vmatpush3.bf16.msra.mxu0 %v5049_v52 }
 0xca0   :  { %4736 = vmatprep.subr.bf16.mxu0 %v5051_v32 }
 0xca1   :  { %4717 = vmatpush3.bf16.msra.mxu1 %v5050_v31 }
 0xca2   :  { %4742 = vmatprep.subr.bf16.mxu1 %v5052_v33 }
 0xca3   :  { %4737 = vmatpush3.bf16.msra.mxu0 %v5051_v32 }
 0xd58   :  { %v4411_v35 = vpop.f32.mrb[24].mxu0 }
 0xd59   :  { %v4412_v54 = vpop.f32.mrb[25].mxu0 }
 0xd5a   :  { %v4413_v41 = vadd.f32 %v4412_v54, %v4411_v35  ;;  %v4414_v6 = vpop.f32.mrb[26].mxu0 }
 0xd5b   :  { %v4415_v55 = vpop.f32.mrb[27].mxu0 }
 0xd5c   :  { %v1951_v8 = vadd.f32 %v4413_v41, %v1819_v40  ;;  %v4416_v43 = vadd.f32 %v4415_v55, %v4414_v6 }
 0xd5e   :  { %v1954_v11 = vadd.f32 %v4416_v43, %v1819_v40  ;;  %v1965_v24 = vadd.f32 %v1951_v8, %v5833_v12 }
 0xd60   :  { %1969 = vadd.xlane.f32.xlu0 %v1965_v24  ;;  %v4417_v45 = vpop.f32.mrb[28].mxu0  ;;  %v1966_v49 = vadd.f32 %v1954_v11, %v5835_v17  ;;  %v2015_v11 = vsub.s32 7, %v5466_v48  ;;  %v4316_v48 = vld [vmem:[%s6583_s12] ss:$0 sm:$0xff] }
 0xd61   :  { %v4418_v50 = vpop.f32.mrb[29].mxu0 }
 0xd62   :  { %v4419_v19 = vadd.f32 %v4418_v50, %v4417_v45  ;;  %1971 = vadd.xlane.f32.xlu1 %v1966_v49  ;;  %v4420_v20 = vpop.f32.mrb[30].mxu0 }
 0xd63   :  { %v4421_v57 = vpop.f32.mrb[31].mxu0 }
 0xd64   :  { %v1959_v53 = vadd.f32 %v4419_v19, %v1819_v40  ;;  %v4422_v58 = vadd.f32 %v4421_v57, %v4420_v20  ;;  %v2016_v19 = vrot.slane %v5822_v63, %v2015_v11 }
 0xd66   :  { %v1962_v0 = vadd.f32 %v4422_v58, %v1819_v40  ;;  %v1967_v60 = vadd.f32 %v1959_v53, %v5842_v21 }
 0xd68   :  { %1973 = vadd.xlane.f32.xlu0 %v1967_v60  ;;  %v1968_v61 = vadd.f32 %v1962_v0, %v5844_v22 }
 0xd6a   :  { %1975 = vadd.xlane.f32.xlu1 %v1968_v61 }
 0xded   :  { %v1970_v3 = vpop.xlane.xlu0 %1969 }
 0xdee   :  { %v1977_v12 = vmul.f32 0.0078125, %v1970_v3 }
 0xdef   :  { %v1972_v16 = vpop.xlane.xlu1 %1971 }
 0xdf0   :  { %v5965_v18 = vsub.f32 %v1965_v24, %v1977_v12  ;;  %v1978_v17 = vmul.f32 0.0078125, %v1972_v16 }
 0xdf2   :  { %v5967_v4 = vsub.f32 %v1966_v49, %v1978_v17  ;;  %v1985_v5 = vmul.f32 %v5965_v18, %v5965_v18 }
 0xdf4   :  { %1989 = vadd.xlane.f32.xlu0 %v1985_v5  ;;  %v1986_v9 = vmul.f32 %v5967_v4, %v5967_v4 }
 0xdf5   :  { %v1974_v21 = vpop.xlane.xlu0 %1973 }
 0xdf6   :  { %v1979_v10 = vmul.f32 0.0078125, %v1974_v21  ;;  %1991 = vadd.xlane.f32.xlu1 %v1986_v9 }
 0xdf7   :  { %v1976_v22 = vpop.xlane.xlu1 %1975 }
 0xdf8   :  { %v5973_v13 = vsub.f32 %v1967_v60, %v1979_v10  ;;  %v1980_v39 = vmul.f32 0.0078125, %v1976_v22  ;;  %v4111_v60 = vld [vmem:[%s6576_s7 + $0x8] ss:$0 sm:$0xff] }
 0xdfa   :  { %v5975_v1 = vsub.f32 %v1968_v61, %v1980_v39  ;;  %v1987_v2 = vmul.f32 %v5973_v13, %v5973_v13  ;;  %v5054_v39 = vld [vmem:[%s6574_s5 + $0x50] sm:$0xff]  }
 0xdfc   :  { %1993 = vadd.xlane.f32.xlu0 %v1987_v2  ;;  %v1988_v7 = vmul.f32 %v5975_v1, %v5975_v1  ;;  %v5056_v2 = vld [vmem:[%s6574_s5 + $0x60] sm:$0xff]  }
 0xdfe   :  { %1995 = vadd.xlane.f32.xlu1 %v1988_v7  ;;  %v5057_v7 = vld [vmem:[%s6574_s5 + $0x68] sm:$0xff]  }
 0xe81   :  { %v1990_v35 = vpop.xlane.xlu0 %1989 }
 0xe82   :  { %v1997_v40 = vmul.f32 0.0078125, %v1990_v35 }
 0xe83   :  { %v1992_v54 = vpop.xlane.xlu1 %1991 }
 0xe84   :  { %v2001_v41 = vadd.f32 1e-07, %v1997_v40  ;;  %v1998_v6 = vmul.f32 0.0078125, %v1992_v54 }
 0xe86   :  { %5204 = vrsqrt.f32 %v2001_v41  ;;  %v2002_v55 = vadd.f32 1e-07, %v1998_v6 }
 0xe88   :  { %5206 = vrsqrt.f32 %v2002_v55 }
 0xe89   :  { %v1994_v8 = vpop.xlane.xlu0 %1993 }
 0xe8a   :  { %v1999_v43 = vmul.f32 0.0078125, %v1994_v8 }
 0xe8b   :  { %v1996_v24 = vpop.xlane.xlu1 %1995 }
 0xe8c   :  { %v2003_v45 = vadd.f32 1e-07, %v1999_v43  ;;  %v2000_v49 = vmul.f32 0.0078125, %v1996_v24 }
 0xe8e   :  { %5208 = vrsqrt.f32 %v2003_v45  ;;  %v2004_v50 = vadd.f32 1e-07, %v2000_v49  ;;  %v2359_v49 = vrot.slane %v6079_v36, %v436_v42 }
 0xe90   :  { %v5205_v20 = vpop.eup %5204  ;;  %5210 = vrsqrt.f32 %v2004_v50 }
 0xe91   :  { %v2009_v57 = vmul.f32 %v5205_v20, %v5965_v18 }
 0xe92   :  { %v5207_v53 = vpop.eup %5206 }
 0xe93   :  { %v2010_v58 = vmul.f32 %v5207_v53, %v5967_v4  ;;  %v2017_v0 = vmul.f32 %v2016_v19, %v2009_v57 }
 0xe95   :  { %v2018_v61 = vmul.f32 %v2016_v19, %v2010_v58  ;;  %v6041_v3 = vadd.f32 %v4111_v60, %v2017_v0 }
 0xe97   :  { %v6043_v12 = vadd.f32 %v4111_v60, %v2018_v61 }
 0xe98   :  { %v5209_v16 = vpop.eup %5208 }
 0xe99   :  { %v2011_v63 = vmul.f32 %v5209_v16, %v5973_v13  ;;  %v2152_v17 = vpack.c.bf16 %v6043_v12, %v6041_v3  ;;  %v5053_v13 = vld [vmem:[%s6574_s5 + $0x48] sm:$0xff]  }
 0xe9a   :  { %v5211_v18 = vpop.eup %5210 }
 0xe9b   :  { %v2019_v5 = vmul.f32 %v2016_v19, %v2011_v63  ;;  %v2012_v4 = vmul.f32 %v5211_v18, %v5975_v1  ;;  %4718 = vmatprep.mubr.bf16.mxu1 %v2152_v17  ;;  %4738 = vmatprep.mubr.bf16.mxu0 %v2152_v17  ;;  %v5055_v1 = vld [vmem:[%s6574_s5 + $0x58] sm:$0xff]  }
 0xe9d   :  { %v2020_v9 = vmul.f32 %v2016_v19, %v2012_v4  ;;  %v6049_v21 = vadd.f32 %v4111_v60, %v2019_v5 }
 0xe9f   :  { %v6051_v10 = vadd.f32 %v4111_v60, %v2020_v9 }
 0xea1   :  { %v2153_v22 = vpack.c.bf16 %v6051_v10, %v6049_v21 }
 0xea3   :  { %4719 = vmatmul.mubr.bf16.vlgmr.msra.gmra.mrb[32].mxu1 %v2153_v22  ;;  %4739 = vmatmul.mubr.bf16.vlgmr.msra.gmra.mrb[32].mxu0 %v2153_v22 }
 0xea4   :  { %4743 = vmatpush3.bf16.msra.mxu1 %v5052_v33  ;;  %4758 = vmatprep.mubr.bf16.mxu1 %v2152_v17 }
 0xea5   :  { %4744 = vmatprep.subr.bf16.mxu1 %v5053_v13 }
 0xea8   :  { %4745 = vmatpush3.bf16.msra.mxu1 %v5053_v13 }
 0xea9   :  { %4746 = vmatprep.subr.bf16.mxu1 %v5054_v39 }
 0xeac   :  { %4747 = vmatpush3.bf16.msra.mxu1 %v5054_v39 }
 0xead   :  { %4748 = vmatprep.subr.bf16.mxu1 %v5055_v1 }
 0xeb0   :  { %4749 = vmatpush3.bf16.msra.mxu1 %v5055_v1 }
 0xeb1   :  { %4750 = vmatprep.subr.bf16.mxu1 %v5056_v2 }
 0xeb4   :  { %4751 = vmatpush3.bf16.msra.mxu1 %v5056_v2 }
 0xeb5   :  { %4752 = vmatprep.subr.bf16.mxu1 %v5057_v7 }
 0xeb8   :  { %4753 = vmatpush3.bf16.msra.mxu1 %v5057_v7 }
 0xeb9   :  { %4754 = vmatprep.subr.bf16.mxu1 %v5058_v38 }
 0xebc   :  { %4755 = vmatpush3.bf16.msra.mxu1 %v5058_v38 }
 0xebd   :  { %4756 = vmatprep.subr.bf16.mxu1 %v5059_v37 }
 0xec0   :  { %4757 = vmatpush3.bf16.msra.mxu1 %v5059_v37  ;;  %v6147_v37 = vld [vmem:[%s6577_s1] sm:$0xff] }
 0xec3   :  { %4759 = vmatmul.mubr.bf16.vlgmr.msra.gmra.mrb[36].mxu1 %v2153_v22 }
 0xf76   :  { %v4720_v26 = vpop.f32.mrb[32].mxu1  ;;  %v4740_v27 = vpop.f32.mrb[32].mxu0 }
 0xf77   :  { %v2240_v28 = vpop.f32.mrb[33].mxu1  ;;  %v2341_v29 = vpop.f32.mrb[33].mxu0  ;;  %v2249_v30 = vadd.f32 %v4720_v26, %v2157_v23  ;;  %v2350_v46 = vadd.f32 %v4740_v27, %v2258_v25  ;;  %v6153_v27 = vld [vmem:[%s6577_s1 + $0x10] sm:$0xff] }
 0xf78   :  { %v4721_v44 = vpop.f32.mrb[34].mxu1  ;;  %v4741_v15 = vpop.f32.mrb[34].mxu0  ;;  %v2241_v35 = vadd.f32 %v2240_v28, %v2157_v23  ;;  %v2342_v40 = vadd.f32 %v2341_v29, %v2258_v25  ;;  %v6159_v29 = vld [vmem:[%s6577_s1 + $0x8] sm:$0xff] }
 0xf79   :  { %v2252_v52 = vadd.f32 %v4721_v44, %v2157_v23  ;;  %v2353_v31 = vadd.f32 %v4741_v15, %v2258_v25  ;;  %v2243_v32 = vpop.f32.mrb[35].mxu1  ;;  %v2344_v33 = vpop.f32.mrb[35].mxu0 }
 0xf7a   :  { %v2244_v54 = vadd.f32 %v2243_v32, %v2157_v23  ;;  %v2345_v41 = vadd.f32 %v2344_v33, %v2258_v25 }
 0xf7b   :  { %v6085_v6 = vpack.c.bf16 %v2252_v52, %v2249_v30  ;;  %v6087_v55 = vpack.c.bf16 %v2353_v31, %v2350_v46  ;;  %v6167_v46 = vld [vmem:[%s6577_s1 + $0x18] sm:$0xff] }
 0xf7c   :  { %v6089_v8 = vpack.c.bf16 %v2244_v54, %v2241_v35  ;;  %v6091_v43 = vpack.c.bf16 %v2345_v41, %v2342_v40 }
 0xf7d   :  { %2637 = vrot.lane.b32.xlu1 %v6087_v55, %s5310_s0  ;;  %v2473_v45 = vsel %vm541_vm0, %v6087_v55, 0 }
 0xf7e   :  { %2635 = vrot.lane.b32.xlu0 %v6091_v43, %s5310_s0  ;;  %4949 = vmatprep.subr.msk.bf16.mxu0 %vm541_vm0, %v6091_v43  ;;  %v2470_v24 = vsel %vm541_vm0, %v6091_v43, 0 }
 0xf7f   :  { %4766 = vmatprep.mubr.msk.bf16.mxu0 %vm541_vm0, %v6089_v8  ;;  %4763 = vmatpush3.bf16.xpose.msra.mxu0 %v2470_v24 }
 0xf80   :  { %4950 = vmatprep.subr.msk.bf16.mxu0 %vm541_vm0, %v6087_v55 }
 0xf81   :  { %2629 = vrot.lane.b32.xlu1 %v6089_v8, %s5310_s0 }
 0xf82   :  { %2949 = vrot.lane.b32.xlu0 %v6091_v43, %s5311_s20 }
 0xf85   :  { %2631 = vrot.lane.b32.xlu1 %v6085_v6, %s5310_s0 }
 0xf86   :  { %2945 = vrot.lane.b32.xlu0 %v6089_v8, %s5311_s20 }
 0xf87   :  { %4765 = vmatpush3.bf16.xpose.msra.mxu0 %v2473_v45 }
 0xf89   :  { %2951 = vrot.lane.b32.xlu1 %v6087_v55, %s5311_s20 }
 0xf8d   :  { %2947 = vrot.lane.b32.xlu1 %v6085_v6, %s5311_s20 }
 0xf8e   :  { %4767 = vmatmul.mubr.msk.bf16.vlgmr.msra.gmra.mrb[36].mxu0 %vm541_vm0, %v6085_v6 }
 0xf96   :  { %v4760_v50 = vpop.f32.mrb[36].mxu1 }
 0xf97   :  { %v2442_v19 = vpop.f32.mrb[37].mxu1  ;;  %v2451_v57 = vadd.f32 %v4760_v50, %v2359_v49 }
 0xf98   :  { %v4761_v20 = vpop.f32.mrb[38].mxu1  ;;  %v2443_v0 = vadd.f32 %v2442_v19, %v2359_v49 }
 0xf99   :  { %v2454_v53 = vadd.f32 %v4761_v20, %v2359_v49  ;;  %v2445_v58 = vpop.f32.mrb[39].mxu1 }
 0xf9a   :  { %v2446_v60 = vadd.f32 %v2445_v58, %v2359_v49 }
 0xf9b   :  { %v6124_v61 = vpack.c.bf16 %v2454_v53, %v2451_v57 }
 0xf9c   :  { %v6126_v16 = vpack.c.bf16 %v2446_v60, %v2443_v0 }
 0xf9e   :  { %4770 = vmatprep.subr.bf16.mxu0 %v6126_v16 }
 0xf9f   :  { %4771 = vmatpush3.bf16.msra.mxu0 %v6126_v16 }
 0xfa0   :  { %4772 = vmatprep.subr.bf16.mxu0 %v6124_v61 }
 0xfa3   :  { %4773 = vmatpush3.bf16.msra.mxu0 %v6124_v61 }
 0xfef   :  { %v2638_v42 = vpop.permute.xlu1 %2637 }
 0xff0   :  { %v2636_v63 = vpop.permute.xlu0 %2635  ;;  %v2649_v5 = vsel %vm541_vm0, %v2638_v42, 0 }
 0xff1   :  { %v2646_v17 = vsel %vm541_vm0, %v2636_v63, 0  ;;  %4951 = vmatprep.subr.msk.bf16.mxu1 %vm541_vm0, %v2636_v63 }
 0xff2   :  { %4779 = vmatpush3.bf16.xpose.msra.mxu1 %v2646_v17 }
 0xff3   :  { %4952 = vmatprep.subr.msk.bf16.mxu1 %vm541_vm0, %v2638_v42  ;;  %v2630_v18 = vpop.permute.xlu1 %2629 }
 0xff4   :  { %4782 = vmatprep.mubr.msk.bf16.mxu1 %vm541_vm0, %v2630_v18  ;;  %v2950_v4 = vpop.permute.xlu0 %2949 }
 0xff5   :  { %v2960_v22 = vsel %vm541_vm0, %v2950_v4, 0 }
 0xff7   :  { %v2632_v9 = vpop.permute.xlu1 %2631 }
 0xff8   :  { %v2946_v13 = vpop.permute.xlu0 %2945 }
 0xffa   :  { %4781 = vmatpush3.bf16.xpose.msra.mxu1 %v2649_v5 }
 0xffb   :  { %4953 = vmatprep.subr.msk.bf16.mxu1 %vm541_vm0, %v2950_v4  ;;  %v2952_v39 = vpop.permute.xlu1 %2951 }
 0xffc   :  { %v2963_v1 = vsel %vm541_vm0, %v2952_v39, 0 }
 0xfff   :  { %v2948_v2 = vpop.permute.xlu1 %2947 }
0x1001   :  { %4783 = vmatmul.mubr.msk.bf16.vlgmr.msra.gmra.mrb[40].mxu1 %vm541_vm0, %v2632_v9 }
0x1002   :  { %4811 = vmatpush3.bf16.xpose.msra.mxu1 %v2960_v22  ;;  %4814 = vmatprep.mubr.msk.bf16.mxu1 %vm541_vm0, %v2946_v13 }
0x1003   :  { %4954 = vmatprep.subr.msk.bf16.mxu1 %vm541_vm0, %v2952_v39 }
0x100a   :  { %4813 = vmatpush3.bf16.xpose.msra.mxu1 %v2963_v1 }
0x1011   :  { %4815 = vmatmul.mubr.msk.bf16.vlgmr.msra.gmra.mrb[44].mxu1 %vm541_vm0, %v2948_v2 }
0x1061   :  { %v4768_v7 = vpop.f32.mrb[36].mxu0 }
0x1062   :  { %v2509_v38 = vpop.f32.mrb[37].mxu0  ;;  %v2518_v28 = vadd.f32 %v6153_v27, %v4768_v7 }
0x1063   :  { %v2510_v23 = vadd.f32 %v6147_v37, %v2509_v38  ;;  %v4769_v25 = vpop.f32.mrb[38].mxu0 }
0x1064   :  { %v2512_v26 = vpop.f32.mrb[39].mxu0  ;;  %v2521_v52 = vadd.f32 %v6167_v46, %v4769_v25  ;;  %v2530_v31 = vsel %vm541_vm0, %v2518_v28, -inf }
0x1065   :  { %v2513_v44 = vadd.f32 %v6159_v29, %v2512_v26  ;;  %v2524_v15 = vsel %vm541_vm0, %v2510_v23, -inf }
0x1066   :  { %2525 = vmax.xlane.f32.xlu0 %v2524_v15  ;;  %v2533_v32 = vsel %vm541_vm0, %v2521_v52, -inf }
0x1067   :  { %v2527_v30 = vsel %vm541_vm0, %v2513_v44, -inf }
0x1068   :  { %2528 = vmax.xlane.f32.xlu1 %v2527_v30 }
0x106a   :  { %2531 = vmax.xlane.f32.xlu0 %v2530_v31 }
0x106e   :  { %2534 = vmax.xlane.f32.xlu0 %v2533_v32 }
0x10d4   :  { %v4784_v33 = vpop.f32.mrb[40].mxu1 }
0x10d5   :  { %v2685_v35 = vpop.f32.mrb[41].mxu1  ;;  %v2694_v24 = vadd.f32 %v6153_v27, %v4784_v33 }
0x10d6   :  { %v2686_v40 = vadd.f32 %v6147_v37, %v2685_v35  ;;  %v4785_v54 = vpop.f32.mrb[42].mxu1 }
0x10d7   :  { %v2688_v41 = vpop.f32.mrb[43].mxu1  ;;  %v2697_v50 = vadd.f32 %v6167_v46, %v4785_v54  ;;  %v2706_v20 = vsel %vm541_vm0, %v2694_v24, -inf }
0x10d8   :  { %v2689_v45 = vadd.f32 %v6159_v29, %v2688_v41  ;;  %v2700_v49 = vsel %vm541_vm0, %v2686_v40, -inf }
0x10d9   :  { %2701 = vmax.xlane.f32.xlu0 %v2700_v49  ;;  %v2709_v57 = vsel %vm541_vm0, %v2697_v50, -inf }
0x10da   :  { %v2703_v19 = vsel %vm541_vm0, %v2689_v45, -inf }
0x10db   :  { %2704 = vmax.xlane.f32.xlu1 %v2703_v19 }
0x10dd   :  { %2707 = vmax.xlane.f32.xlu0 %v2706_v20 }
0x10df   :  { %2710 = vmax.xlane.f32.xlu1 %v2709_v57 }
0x10e4   :  { %v6180_v53 = vpop.f32.mrb[44].mxu1 }
0x10e5   :  { %v6182_v58 = vpop.f32.mrb[45].mxu1 }
0x10e6   :  { %v6184_v0 = vpop.f32.mrb[46].mxu1 }
0x10e7   :  { %v6186_v60 = vpop.f32.mrb[47].mxu1 }
0x10f3   :  { %v2526_v42 = vpop.xlane.xlu0 %2525 }
0x10f4   :  { %v2536_v63 = vsub.f32 %v2510_v23, %v2526_v42 }
0x10f5   :  { %v2529_v17 = vpop.xlane.xlu1 %2528 }
0x10f6   :  { %v2540_v4 = vmul.f32 1.442695, %v2536_v63  ;;  %v2537_v9 = vsub.f32 %v2513_v44, %v2529_v17 }
0x10f7   :  { %v2532_v18 = vpop.xlane.xlu0 %2531 }
0x10f8   :  { %v2538_v5 = vsub.f32 %v2518_v28, %v2532_v18  ;;  %v2542_v1 = vmul.f32 1.442695, %v2537_v9 }
0x10fa   :  { %v2544_v22 = vmul.f32 1.442695, %v2538_v5 }
0x10fb   :  { %v2535_v13 = vpop.xlane.xlu0 %2534 }
0x10fc   :  { %5212 = vpow2.f32 %v2544_v22  ;;  %v2539_v39 = vsub.f32 %v2521_v52, %v2535_v13 }
0x10fd   :  { %5214 = vpow2.f32 %v2540_v4 }
0x10fe   :  { %v2546_v2 = vmul.f32 1.442695, %v2539_v39 }
0x1100   :  { %5216 = vpow2.f32 %v2546_v2 }
0x1101   :  { %5218 = vpow2.f32 %v2542_v1 }
0x1106   :  { %v5213_v7 = vpop.eup %5212 }
0x1107   :  { %v2554_v38 = vsel %vm541_vm0, %v5213_v7, 0.0  ;;  %v5215_v25 = vpop.eup %5214 }
0x1108   :  { %2555 = vadd.xlane.f32.xlu0 %v2554_v38  ;;  %v2548_v26 = vsel %vm541_vm0, %v5215_v25, 0.0 }
0x110a   :  { %v5217_v23 = vpop.eup %5216 }
0x110b   :  { %v2557_v28 = vsel %vm541_vm0, %v5217_v23, 0.0  ;;  %v5219_v44 = vpop.eup %5218 }
0x110c   :  { %2549 = vadd.xlane.f32.xlu0 %v2548_v26  ;;  %2558 = vadd.xlane.f32.xlu1 %v2557_v28  ;;  %v2551_v15 = vsel %vm541_vm0, %v5219_v44, 0.0 }
0x1110   :  { %2552 = vadd.xlane.f32.xlu1 %v2551_v15 }
0x1166   :  { %v2702_v30 = vpop.xlane.xlu0 %2701 }
0x1167   :  { %v2712_v52 = vsub.f32 %v2686_v40, %v2702_v30 }
0x1168   :  { %v2705_v31 = vpop.xlane.xlu1 %2704 }
0x1169   :  { %v2713_v33 = vsub.f32 %v2689_v45, %v2705_v31  ;;  %v2716_v54 = vmul.f32 1.442695, %v2712_v52 }
0x116a   :  { %v2708_v32 = vpop.xlane.xlu0 %2707 }
0x116b   :  { %v2714_v35 = vsub.f32 %v2694_v24, %v2708_v32  ;;  %v2718_v20 = vmul.f32 1.442695, %v2713_v33 }
0x116c   :  { %v2711_v41 = vpop.xlane.xlu1 %2710 }
0x116d   :  { %v2720_v49 = vmul.f32 1.442695, %v2714_v35  ;;  %v2715_v19 = vsub.f32 %v2697_v50, %v2711_v41 }
0x116f   :  { %5220 = vpow2.f32 %v2720_v49  ;;  %v2722_v57 = vmul.f32 1.442695, %v2715_v19 }
0x1170   :  { %5222 = vpow2.f32 %v2716_v54 }
0x1171   :  { %5224 = vpow2.f32 %v2722_v57 }
0x1172   :  { %5226 = vpow2.f32 %v2718_v20 }
0x1179   :  { %v6192_v42 = vpop.eup %5220 }
0x117a   :  { %v6194_v63 = vpop.eup %5222  ;;  %v2730_v40 = vsel %vm541_vm0, %v6192_v42, 0.0 }
0x117b   :  { %v6198_v17 = vpop.eup %5224  ;;  %2731 = vadd.xlane.f32.xlu0 %v2730_v40  ;;  %v2724_v50 = vsel %vm541_vm0, %v6194_v63, 0.0 }
0x117c   :  { %v2733_v24 = vsel %vm541_vm0, %v6198_v17, 0.0  ;;  %v6202_v45 = vpop.eup %5226 }
0x117d   :  { %2734 = vadd.xlane.f32.xlu1 %v2733_v24  ;;  %v2727_v18 = vsel %vm541_vm0, %v6202_v45, 0.0 }
0x117f   :  { %2725 = vadd.xlane.f32.xlu0 %v2724_v50 }
0x1181   :  { %2728 = vadd.xlane.f32.xlu1 %v2727_v18 }
0x1192   :  { %2750 = vrot.lane.b32.xlu1 %v6124_v61, %s5310_s0 }
0x1195   :  { %2748 = vrot.lane.b32.xlu0 %v6126_v16, %s5310_s0  ;;  %v2556_v5 = vpop.xlane.xlu0 %2555 }
0x1196   :  { %3198 = vrot.lane.b32.xlu1 %v6091_v43, %s5312_s21 }
0x1199   :  { %v2559_v4 = vpop.xlane.xlu1 %2558  ;;  %3194 = vrot.lane.b32.xlu0 %v6089_v8, %s5312_s21  ;;  %v2550_v9 = vpop.xlane.xlu0 %2549 }
0x119a   :  { %3200 = vrot.lane.b32.xlu1 %v6087_v55, %s5312_s21  ;;  %5228 = vrcp.f32 %v2559_v4  ;;  %v3000_v55 = vadd.f32 %v6147_v37, %v6182_v58 }
0x119b   :  { %5230 = vrcp.f32 %v2550_v9 }
0x119c   :  { %5232 = vrcp.f32 %v2556_v5  ;;  %v3014_v30 = vsel %vm541_vm0, %v3000_v55, -inf }
0x119d   :  { %v2553_v22 = vpop.xlane.xlu1 %2552 }
0x119e   :  { %5234 = vrcp.f32 %v2553_v22  ;;  %3196 = vrot.lane.b32.xlu1 %v6085_v6, %s5312_s21  ;;  %v3008_v6 = vadd.f32 %v6153_v27, %v6180_v53 }
0x11a4   :  { %v5229_v13 = vpop.eup %5228 }
0x11a5   :  { %v5231_v39 = vpop.eup %5230  ;;  %v2567_v2 = vmul.f32 %v5229_v13, %v5217_v23  ;;  %v3003_v23 = vadd.f32 %v6159_v29, %v6186_v60 }
0x11a6   :  { %v5233_v1 = vpop.eup %5232  ;;  %v2564_v38 = vmul.f32 %v5231_v39, %v5215_v25  ;;  %v3011_v25 = vadd.f32 %v6167_v46, %v6184_v0 }
0x11a7   :  { %v2566_v8 = vmul.f32 %v5233_v1, %v5213_v7  ;;  %v3020_v7 = vsel %vm541_vm0, %v3008_v6, -inf  ;;  %v3017_v58 = vsel %vm541_vm0, %v3003_v23, -inf }
0x11a8   :  { %v5235_v43 = vpop.eup %5234 }
0x11a9   :  { %v2565_v26 = vmul.f32 %v5235_v43, %v5219_v44  ;;  %v2569_v15 = vpack.c.bf16 %v2567_v2, %v2566_v8  ;;  %v3023_v44 = vsel %vm541_vm0, %v3011_v25, -inf }
0x11ab   :  { %v2568_v28 = vpack.c.bf16 %v2565_v26, %v2564_v38 }
0x11ad   :  { %4774 = vmatprep.mubr.msk.bf16.mxu0 %vm541_vm0, %v2568_v28 }
0x11ae   :  { %4775 = vmatmul.mubr.msk.bf16.vlgmr.msra.gmra.mrb[40].mxu0 %vm541_vm0, %v2569_v15 }
0x11b8   :  { %3015 = vmax.xlane.f32.xlu0 %v3014_v30 }
0x11bc   :  { %3021 = vmax.xlane.f32.xlu0 %v3020_v7 }
0x11c0   :  { %3024 = vmax.xlane.f32.xlu0 %v3023_v44  ;;  %v5060_v44 = vld [vmem:[%s6578_s6 + $0x50] sm:$0xff]  }
0x11c2   :  { %3018 = vmax.xlane.f32.xlu1 %v3017_v58  ;;  %v5061_v58 = vld [vmem:[%s6578_s6 + $0x58] sm:$0xff]  }
0x1208   :  { %v2732_v52 = vpop.xlane.xlu0 %2731 }
0x120a   :  { %v2735_v53 = vpop.xlane.xlu1 %2734 }
0x120b   :  { %5236 = vrcp.f32 %v2735_v53 }
0x120c   :  { %v2726_v31 = vpop.xlane.xlu0 %2725 }
0x120d   :  { %5238 = vrcp.f32 %v2726_v31 }
0x120e   :  { %5240 = vrcp.f32 %v2732_v52  ;;  %v2729_v32 = vpop.xlane.xlu1 %2728  ;;  %v5062_v52 = vld [vmem:[%s6578_s6 + $0x40] sm:$0xff]  }
0x120f   :  { %5242 = vrcp.f32 %v2729_v32 }
0x1210   :  { %v2749_v0 = vpop.permute.xlu0 %2748 }
0x1211   :  { %4786 = vmatprep.subr.bf16.mxu0 %v2749_v0 }
0x1212   :  { %v2751_v33 = vpop.permute.xlu1 %2750  ;;  %4787 = vmatpush3.bf16.msra.mxu0 %v2749_v0 }
0x1213   :  { %4788 = vmatprep.subr.bf16.mxu0 %v2751_v33 }
0x1214   :  { %v3195_v60 = vpop.permute.xlu0 %3194 }
0x1215   :  { %4838 = vmatprep.mubr.msk.bf16.mxu1 %vm541_vm0, %v3195_v60  ;;  %v5237_v35 = vpop.eup %5236 }
0x1216   :  { %v3199_v54 = vpop.permute.xlu1 %3198  ;;  %4789 = vmatpush3.bf16.msra.mxu0 %v2751_v33  ;;  %v2743_v57 = vmul.f32 %v5237_v35, %v6198_v17 }
0x1217   :  { %v5239_v41 = vpop.eup %5238  ;;  %v3209_v49 = vsel %vm541_vm0, %v3199_v54, 0  ;;  %4955 = vmatprep.subr.msk.bf16.mxu1 %vm541_vm0, %v3199_v54  ;;  %4794 = vmatprep.subr.bf16.mxu0 %v5060_v44 }
0x1218   :  { %v5241_v19 = vpop.eup %5240  ;;  %4835 = vmatpush3.bf16.xpose.msra.mxu1 %v3209_v49  ;;  %v2740_v24 = vmul.f32 %v5239_v41, %v6194_v63 }
0x1219   :  { %v5243_v20 = vpop.eup %5242  ;;  %v2742_v18 = vmul.f32 %v5241_v19, %v6192_v42 }
0x121a   :  { %v3201_v40 = vpop.permute.xlu1 %3200  ;;  %v2741_v50 = vmul.f32 %v5243_v20, %v6202_v45 }
0x121b   :  { %4956 = vmatprep.subr.msk.bf16.mxu1 %vm541_vm0, %v3201_v40  ;;  %v2745_v4 = vpack.c.bf16 %v2743_v57, %v2742_v18  ;;  %v3212_v9 = vsel %vm541_vm0, %v3201_v40, 0  ;;  %v5063_v18 = vld [vmem:[%s6578_s6 + $0x48] sm:$0xff]  }
0x121c   :  { %v2744_v5 = vpack.c.bf16 %v2741_v50, %v2740_v24 }
0x121e   :  { %4790 = vmatprep.mubr.msk.bf16.mxu0 %vm541_vm0, %v2744_v5  ;;  %v3197_v22 = vpop.permute.xlu1 %3196 }
0x121f   :  { %4791 = vmatmul.mubr.msk.bf16.vlgmr.msra.gmra.mrb[44].mxu0 %vm541_vm0, %v2745_v4 }
0x1220   :  { %4837 = vmatpush3.bf16.xpose.msra.mxu1 %v3212_v9  ;;  %4795 = vmatpush3.bf16.msra.mxu0 %v5060_v44 }
0x1221   :  { %4796 = vmatprep.subr.bf16.mxu0 %v5061_v58 }
0x1224   :  { %4797 = vmatpush3.bf16.msra.mxu0 %v5061_v58 }
0x1225   :  { %4802 = vmatprep.subr.bf16.mxu0 %v5062_v52 }
0x1227   :  { %4839 = vmatmul.mubr.msk.bf16.vlgmr.msra.gmra.mrb[48].mxu1 %vm541_vm0, %v3197_v22 }
0x1228   :  { %3640 = vmatprep.mubr.bf16.mxu1 %v5313_v47 }
0x1245   :  { %v3016_v63 = vpop.xlane.xlu0 %3015 }
0x1246   :  { %v3026_v17 = vsub.f32 %v3000_v55, %v3016_v63 }
0x1248   :  { %v3030_v13 = vmul.f32 1.442695, %v3026_v17 }
0x1249   :  { %v3022_v45 = vpop.xlane.xlu0 %3021 }
0x124a   :  { %v3028_v42 = vsub.f32 %v3008_v6, %v3022_v45 }
0x124c   :  { %v3034_v39 = vmul.f32 1.442695, %v3028_v42 }
0x124d   :  { %v3025_v1 = vpop.xlane.xlu0 %3024 }
0x124e   :  { %5244 = vpow2.f32 %v3034_v39  ;;  %v3029_v43 = vsub.f32 %v3011_v25, %v3025_v1 }
0x124f   :  { %v3019_v2 = vpop.xlane.xlu1 %3018  ;;  %5246 = vpow2.f32 %v3030_v13 }
0x1250   :  { %v3036_v38 = vmul.f32 1.442695, %v3029_v43  ;;  %v3027_v26 = vsub.f32 %v3003_v23, %v3019_v2 }
0x1252   :  { %5248 = vpow2.f32 %v3036_v38  ;;  %v3032_v8 = vmul.f32 1.442695, %v3027_v26 }
0x1254   :  { %5250 = vpow2.f32 %v3032_v8 }
0x1258   :  { %v6247_v28 = vpop.eup %5244 }
0x1259   :  { %v3044_v15 = vsel %vm541_vm0, %v6247_v28, 0.0  ;;  %v6251_v55 = vpop.eup %5246 }
0x125a   :  { %3045 = vadd.xlane.f32.xlu0 %v3044_v15  ;;  %v3038_v30 = vsel %vm541_vm0, %v6251_v55, 0.0 }
0x125c   :  { %v6253_v6 = vpop.eup %5248 }
0x125d   :  { %v3047_v25 = vsel %vm541_vm0, %v6253_v6, 0.0 }
0x125e   :  { %v5251_v7 = vpop.eup %5250  ;;  %3039 = vadd.xlane.f32.xlu0 %v3038_v30  ;;  %3048 = vadd.xlane.f32.xlu1 %v3047_v25 }
0x125f   :  { %v3041_v23 = vsel %vm541_vm0, %v5251_v7, 0.0 }
0x1262   :  { %3042 = vadd.xlane.f32.xlu1 %v3041_v23  ;;  %v5065_v23 = vld [vmem:[%s6578_s6 + $0x68] sm:$0xff]  }
0x1273   :  { %3062 = vrot.lane.b32.xlu1 %v6124_v61, %s5311_s20 }
0x1274   :  { %3060 = vrot.lane.b32.xlu0 %v6126_v16, %s5311_s20 }
0x1281   :  { %v4776_v53 = vpop.f32.mrb[40].mxu0 }
0x1282   :  { %v2610_v31 = vpop.f32.mrb[41].mxu0 }
0x1283   :  { %v4777_v32 = vpop.f32.mrb[42].mxu0 }
0x1284   :  { %v2626_v0 = vpack.c.bf16 %v4777_v32, %v4776_v53  ;;  %v2613_v33 = vpop.f32.mrb[43].mxu0 }
0x1285   :  { %v2625_v60 = vpack.c.bf16 %v2613_v33, %v2610_v31 }
0x12e7   :  { %v3046_v54 = vpop.xlane.xlu0 %3045 }
0x12eb   :  { %v3049_v35 = vpop.xlane.xlu1 %3048  ;;  %v3040_v49 = vpop.xlane.xlu0 %3039 }
0x12ef   :  { %v3043_v41 = vpop.xlane.xlu1 %3042  ;;  %v3061_v45 = vpop.permute.xlu0 %3060 }
0x12f0   :  { %5252 = vrcp.f32 %v3043_v41 }
0x12f1   :  { %5254 = vrcp.f32 %v3040_v49 }
0x12f2   :  { %v4792_v19 = vpop.f32.mrb[44].mxu0  ;;  %5256 = vrcp.f32 %v3049_v35 }
0x12f3   :  { %v2794_v20 = vpop.f32.mrb[45].mxu0  ;;  %5258 = vrcp.f32 %v3046_v54  ;;  %v3063_v30 = vpop.permute.xlu1 %3062 }
0x12f4   :  { %v4793_v57 = vpop.f32.mrb[46].mxu0 }
0x12f5   :  { %v2810_v40 = vpack.c.bf16 %v4793_v57, %v4792_v19  ;;  %v2797_v24 = vpop.f32.mrb[47].mxu0 }
0x12f6   :  { %v2809_v50 = vpack.c.bf16 %v2797_v24, %v2794_v20 }
0x12f8   :  { %4798 = vmatprep.mubr.msk.bf16.mxu0 %vm541_vm0, %v2809_v50 }
0x12f9   :  { %4799 = vmatmul.mubr.msk.bf16.vlgmr.msra.gmra.mrb[48].mxu0 %vm541_vm0, %v2810_v40 }
0x12fa   :  { %4803 = vmatpush3.bf16.msra.mxu0 %v5062_v52  ;;  %4806 = vmatprep.mubr.msk.bf16.mxu0 %vm541_vm0, %v2625_v60  ;;  %v4840_v5 = vpop.f32.mrb[48].mxu1  ;;  %v5253_v63 = vpop.eup %5252 }
0x12fb   :  { %v3248_v4 = vpop.f32.mrb[49].mxu1  ;;  %4804 = vmatprep.subr.bf16.mxu0 %v5063_v18  ;;  %v5255_v1 = vpop.eup %5254  ;;  %v3257_v43 = vadd.f32 %v6153_v27, %v4840_v5  ;;  %v3055_v38 = vmul.f32 %v5253_v63, %v5251_v7  ;;  %v5064_v7 = vld [vmem:[%s6578_s6 + $0x60] sm:$0xff]  }
0x12fc   :  { %v3249_v9 = vadd.f32 %v6147_v37, %v3248_v4  ;;  %v4841_v22 = vpop.f32.mrb[50].mxu1  ;;  %v3054_v26 = vmul.f32 %v5255_v1, %v6251_v55 }
0x12fd   :  { %v3251_v17 = vpop.f32.mrb[51].mxu1  ;;  %v3260_v42 = vadd.f32 %v6167_v46, %v4841_v22  ;;  %v5257_v46 = vpop.eup %5256  ;;  %v3269_v8 = vsel %vm541_vm0, %v3257_v43, -inf }
0x12fe   :  { %4805 = vmatpush3.bf16.msra.mxu0 %v5063_v18  ;;  %v3252_v13 = vadd.f32 %v6159_v29, %v3251_v17  ;;  %v3263_v39 = vsel %vm541_vm0, %v3249_v9, -inf  ;;  %v3058_v29 = vpack.c.bf16 %v3055_v38, %v3054_v26  ;;  %v5259_v15 = vpop.eup %5258  ;;  %v3057_v27 = vmul.f32 %v5257_v46, %v6253_v6 }
0x12ff   :  { %4818 = vmatprep.subr.bf16.mxu0 %v3061_v45  ;;  %3264 = vmax.xlane.f32.xlu1 %v3263_v39  ;;  %v3272_v37 = vsel %vm541_vm0, %v3260_v42, -inf  ;;  %v3056_v25 = vmul.f32 %v5259_v15, %v6247_v28  ;;  %v5067_v15 = vld [vmem:[%s6578_s6 + $0x78] sm:$0xff]  }
0x1300   :  { %v3266_v2 = vsel %vm541_vm0, %v3252_v13, -inf }
0x1301   :  { %3267 = vmax.xlane.f32.xlu0 %v3266_v2  ;;  %v3059_v55 = vpack.c.bf16 %v3057_v27, %v3056_v25 }
0x1303   :  { %3273 = vmax.xlane.f32.xlu1 %v3272_v37 }
0x1305   :  { %4807 = vmatmul.mubr.msk.bf16.vlgmr.msra.gmra.mrb[48].mxu0 %vm541_vm0, %v2626_v0  ;;  %3270 = vmax.xlane.f32.xlu0 %v3269_v8 }
0x1306   :  { %4819 = vmatpush3.bf16.msra.mxu0 %v3061_v45  ;;  %4822 = vmatprep.mubr.msk.bf16.mxu0 %vm541_vm0, %v3058_v29 }
0x1307   :  { %4820 = vmatprep.subr.bf16.mxu0 %v3063_v30 }
0x130a   :  { %4821 = vmatpush3.bf16.msra.mxu0 %v3063_v30 }
0x130b   :  { %4826 = vmatprep.subr.bf16.mxu0 %v5064_v7 }
0x130d   :  { %4823 = vmatmul.mubr.msk.bf16.vlgmr.msra.gmra.mrb[52].mxu0 %vm541_vm0, %v3059_v55 }
0x130e   :  { %4827 = vmatpush3.bf16.msra.mxu0 %v5064_v7 }
0x130f   :  { %4828 = vmatprep.subr.bf16.mxu0 %v5065_v23 }
0x1312   :  { %4829 = vmatpush3.bf16.msra.mxu0 %v5065_v23 }
0x138c   :  { %v3265_v6 = vpop.xlane.xlu1 %3264 }
0x138d   :  { %v3275_v52 = vsub.f32 %v3249_v9, %v3265_v6  ;;  %v3446_v6 = vrot.slane %v6079_v36, %v1524_v62  ;;  %v5068_v62 = vld [vmem:[%s6579_s8 + $0x80] ss:$8 sps:$4 sm:$0xff]  }
0x138e   :  { %v3268_v44 = vpop.xlane.xlu0 %3267 }
0x138f   :  { %v3276_v58 = vsub.f32 %v3252_v13, %v3268_v44  ;;  %v3279_v60 = vmul.f32 1.442695, %v3275_v52  ;;  %v5066_v13 = vld [vmem:[%s6578_s6 + $0x70] sm:$0xff]  }
0x1390   :  { %v3274_v28 = vpop.xlane.xlu1 %3273 }
0x1391   :  { %v3278_v53 = vsub.f32 %v3260_v42, %v3274_v28  ;;  %v3281_v31 = vmul.f32 1.442695, %v3276_v58 }
0x1392   :  { %v3271_v32 = vpop.xlane.xlu0 %3270 }
0x1393   :  { %v3285_v0 = vmul.f32 1.442695, %v3278_v53  ;;  %v3277_v33 = vsub.f32 %v3257_v43, %v3271_v32 }
0x1395   :  { %5260 = vpow2.f32 %v3285_v0  ;;  %v3283_v35 = vmul.f32 1.442695, %v3277_v33 }
0x1396   :  { %5262 = vpow2.f32 %v3281_v31 }
0x1397   :  { %5264 = vpow2.f32 %v3283_v35 }
0x1398   :  { %5266 = vpow2.f32 %v3279_v60 }
0x139f   :  { %v5261_v54 = vpop.eup %5260 }
0x13a0   :  { %v5263_v41 = vpop.eup %5262  ;;  %v3296_v49 = vsel %vm541_vm0, %v5261_v54, 0.0 }
0x13a1   :  { %v5265_v19 = vpop.eup %5264  ;;  %3297 = vadd.xlane.f32.xlu1 %v3296_v49  ;;  %v3290_v40 = vsel %vm541_vm0, %v5263_v41, 0.0 }
0x13a2   :  { %v3293_v20 = vsel %vm541_vm0, %v5265_v19, 0.0  ;;  %v5267_v57 = vpop.eup %5266 }
0x13a3   :  { %3294 = vadd.xlane.f32.xlu0 %v3293_v20  ;;  %v3287_v24 = vsel %vm541_vm0, %v5267_v57, 0.0 }
0x13a5   :  { %3291 = vadd.xlane.f32.xlu1 %v3290_v40 }
0x13a7   :  { %3288 = vadd.xlane.f32.xlu0 %v3287_v24 }
0x13b6   :  { %3311 = vrot.lane.b32.xlu1 %v6124_v61, %s5312_s21 }
0x13bd   :  { %3309 = vrot.lane.b32.xlu0 %v6126_v16, %s5312_s21 }
0x13e0   :  { %v4824_v50 = vpop.f32.mrb[52].mxu0 }
0x13e1   :  { %v3106_v18 = vpop.f32.mrb[53].mxu0 }
0x13e2   :  { %v4825_v5 = vpop.f32.mrb[54].mxu0 }
0x13e3   :  { %v3122_v4 = vpack.c.bf16 %v4825_v5, %v4824_v50  ;;  %v3109_v9 = vpop.f32.mrb[55].mxu0 }
0x13e4   :  { %v3121_v22 = vpack.c.bf16 %v3109_v9, %v3106_v18 }
0x13e6   :  { %4830 = vmatprep.mubr.msk.bf16.mxu0 %vm541_vm0, %v3121_v22 }
0x13e7   :  { %4831 = vmatmul.mubr.msk.bf16.vlgmr.msra.gmra.mrb[48].mxu0 %vm541_vm0, %v3122_v4 }
0x142e   :  { %v3298_v63 = vpop.xlane.xlu1 %3297 }
0x1430   :  { %v3295_v17 = vpop.xlane.xlu0 %3294 }
0x1431   :  { %5268 = vrcp.f32 %v3295_v17  ;;  %v5076_v17 = vld [vmem:[%s6579_s8 + $0xa4] ss:$8 sps:$4 sm:$0xff]  }
0x1432   :  { %v3292_v45 = vpop.xlane.xlu1 %3291 }
0x1433   :  { %5270 = vrcp.f32 %v3292_v45  ;;  %v5074_v45 = vld [vmem:[%s6579_s8 + $0xa0] ss:$8 sps:$4 sm:$0xff]  }
0x1434   :  { %5272 = vrcp.f32 %v3298_v63  ;;  %v3289_v61 = vpop.xlane.xlu0 %3288 }
0x1435   :  { %5274 = vrcp.f32 %v3289_v61  ;;  %v5079_v61 = vld [vmem:[%s6579_s8 + $0xb4] ss:$8 sps:$4 sm:$0xff]  }
0x1436   :  { %v3312_v16 = vpop.permute.xlu1 %3311 }
0x1438   :  { %v3310_v42 = vpop.permute.xlu0 %3309 }
0x1439   :  { %4842 = vmatprep.subr.bf16.mxu0 %v3310_v42 }
0x143a   :  { %4843 = vmatpush3.bf16.msra.mxu0 %v3310_v42  ;;  %v5077_v42 = vld [vmem:[%s6579_s8 + $0xb0] ss:$8 sps:$4 sm:$0xff]  }
0x143b   :  { %4844 = vmatprep.subr.bf16.mxu0 %v3312_v16  ;;  %v5269_v39 = vpop.eup %5268 }
0x143c   :  { %v3305_v38 = vmul.f32 %v5269_v39, %v5265_v19  ;;  %v5085_v39 = vld [vmem:[%s6579_s8 + $0xd4] ss:$8 sps:$4 sm:$0xff]  }
0x143d   :  { %v5271_v1 = vpop.eup %5270 }
0x143e   :  { %v5273_v43 = vpop.eup %5272  ;;  %4845 = vmatpush3.bf16.msra.mxu0 %v3312_v16  ;;  %v3304_v26 = vmul.f32 %v5271_v1, %v5263_v41  ;;  %v5082_v16 = vld [vmem:[%s6579_s8 + $0xc4] ss:$8 sps:$4 sm:$0xff]   ;;  %v5083_v1 = vld [vmem:[%s6579_s8 + $0xd0] ss:$8 sps:$4 sm:$0xff]  }
0x143f   :  { %v5275_v2 = vpop.eup %5274  ;;  %4850 = vmatprep.subr.bf16.mxu0 %v5066_v13  ;;  %v3306_v46 = vmul.f32 %v5273_v43, %v5261_v54  ;;  %v5088_v43 = vld [vmem:[%s6579_s8 + $0xe4] ss:$8 sps:$4 sm:$0xff]  }
0x1440   :  { %v3303_v37 = vmul.f32 %v5275_v2, %v5267_v57  ;;  %v5086_v2 = vld [vmem:[%s6579_s8 + $0xe0] ss:$8 sps:$4 sm:$0xff]  }
0x1441   :  { %v3308_v29 = vpack.c.bf16 %v3306_v46, %v3305_v38  ;;  %v5091_v38 = vld [vmem:[%s6579_s8 + $0xf4] ss:$8 sps:$4 sm:$0xff]  }
0x1442   :  { %v3307_v8 = vpack.c.bf16 %v3304_v26, %v3303_v37  ;;  %v5089_v37 = vld [vmem:[%s6579_s8 + $0xf0] ss:$8 sps:$4 sm:$0xff]  }
0x1444   :  { %4846 = vmatprep.mubr.msk.bf16.mxu0 %vm541_vm0, %v3307_v8 }
0x1445   :  { %4847 = vmatmul.mubr.msk.bf16.vlgmr.msra.gmra.mrb[56].mxu0 %vm541_vm0, %v3308_v29 }
0x1446   :  { %4851 = vmatpush3.bf16.msra.mxu0 %v5066_v13  ;;  %v5080_v13 = vld [vmem:[%s6579_s8 + $0xc0] ss:$8 sps:$4 sm:$0xff]  }
0x1447   :  { %4852 = vmatprep.subr.bf16.mxu0 %v5067_v15 }
0x144a   :  { %4853 = vmatpush3.bf16.msra.mxu0 %v5067_v15 }
0x1518   :  { %v4848_v30 = vpop.f32.mrb[56].mxu0 }
0x1519   :  { %v3355_v27 = vpop.f32.mrb[57].mxu0 }
0x151a   :  { %v4849_v25 = vpop.f32.mrb[58].mxu0 }
0x151b   :  { %v3371_v55 = vpack.c.bf16 %v4849_v25, %v4848_v30  ;;  %v3358_v7 = vpop.f32.mrb[59].mxu0 }
0x151c   :  { %v3370_v23 = vpack.c.bf16 %v3358_v7, %v3355_v27 }
0x151e   :  { %4854 = vmatprep.mubr.msk.bf16.mxu0 %vm541_vm0, %v3370_v23 }
0x151f   :  { %4855 = vmatmul.mubr.msk.bf16.vlgmr.msra.gmra.mrb[48].mxu0 %vm541_vm0, %v3371_v55 }
0x15f2   :  { %v4856_v44 = vpop.f32.mrb[48].mxu0 }
0x15f3   :  { %v3424_v58 = vpop.f32.mrb[49].mxu0  ;;  %v3449_v33 = vadd.f32 %v4856_v44, %v3446_v6  ;;  %v6381_v44 = vld [vmem:[%s6576_s7 + $0x10] sm:$0xff] }
0x15f4   :  { %v3447_v28 = vadd.f32 %v3446_v6, %v3424_v58  ;;  %v4857_v52 = vpop.f32.mrb[50].mxu0  ;;  %v3502_v58 = vrot.slane %v6381_v44, %v1580_v59 }
0x15f5   :  { %v3427_v53 = vpop.f32.mrb[51].mxu0  ;;  %v3450_v32 = vadd.f32 %v4857_v52, %v3446_v6  ;;  %v3453_v54 = vadd.f32 %v3449_v33, %v6049_v21  ;;  %v5071_v21 = vld [vmem:[%s6579_s8 + $0x90] ss:$8 sps:$4 sm:$0xff]  }
0x15f6   :  { %v3451_v31 = vadd.f32 %v3447_v28, %v6041_v3  ;;  %v3448_v0 = vadd.f32 %v3446_v6, %v3427_v53  ;;  %v5070_v3 = vld [vmem:[%s6579_s8 + $0x84] ss:$8 sps:$4 sm:$0xff]  }
0x15f7   :  { %v3454_v35 = vadd.f32 %v3450_v32, %v6051_v10  ;;  %3608 = vmatprep.subr.bf16.mxu1 %v5070_v3 }
0x15f8   :  { %v3452_v60 = vadd.f32 %v3448_v0, %v6043_v12  ;;  %3455 = vadd.xlane.f32.xlu1 %v3451_v31  ;;  %v5073_v12 = vld [vmem:[%s6579_s8 + $0x94] ss:$8 sps:$4 sm:$0xff]   ;;  %3609 = vmatpush1.bf16.msra.mxu1 %v5068_v62  ;;  %v3510_v0 = vrot.slane %v6381_v44, %v1588_v14 }
0x15f9   :  { %3610 = vmatprep.subr.bf16.mxu1 %v5073_v12 }
0x15fa   :  { %3457 = vadd.xlane.f32.xlu0 %v3452_v60 }
0x15fc   :  { %3461 = vadd.xlane.f32.xlu1 %v3454_v35  ;;  %3611 = vmatpush1.bf16.msra.mxu1 %v5071_v21 }
0x15fd   :  { %3612 = vmatprep.subr.bf16.mxu1 %v5076_v17  ;;  %v5106_v17 = vld [vmem:[%s6580_s10 + $0xf8] sm:$0xff]  }
0x15fe   :  { %3459 = vadd.xlane.f32.xlu0 %v3453_v54 }
0x1600   :  { %3613 = vmatpush1.bf16.msra.mxu1 %v5074_v45  ;;  %v5107_v45 = vld [vmem:[%s6580_s10 + $0xb8] sm:$0xff]  }
0x1601   :  { %3614 = vmatprep.subr.bf16.mxu1 %v5079_v61  ;;  %v4226_v61 = vld [vmem:[%s6581_s9 + $0x1] ss:$2 sm:$0x3] }
0x1604   :  { %3615 = vmatpush1.bf16.msra.mxu1 %v5077_v42  ;;  %v3521_v42 = vrot.slane %v4226_v61, %v5469_v51 }
0x1605   :  { %3616 = vmatprep.subr.bf16.mxu1 %v5082_v16  ;;  %v3525_v16 = vrot.slane %v4226_v61, %v5477_v56 }
0x1608   :  { %3617 = vmatpush1.bf16.msra.mxu1 %v5080_v13 }
0x1609   :  { %3618 = vmatprep.subr.bf16.mxu1 %v5085_v39 }
0x160c   :  { %3619 = vmatpush1.bf16.msra.mxu1 %v5083_v1 }
0x160d   :  { %3620 = vmatprep.subr.bf16.mxu1 %v5088_v43 }
0x1610   :  { %3621 = vmatpush1.bf16.msra.mxu1 %v5086_v2 }
0x1611   :  { %3622 = vmatprep.subr.bf16.mxu1 %v5091_v38 }
0x1614   :  { %3623 = vmatpush1.bf16.msra.mxu1 %v5089_v37 }
0x1685   :  { %v3456_v10 = vpop.xlane.xlu1 %3455 }
0x1686   :  { %v3463_v36 = vmul.f32 0.0078125, %v3456_v10 }
0x1687   :  { %v3458_v41 = vpop.xlane.xlu0 %3457 }
0x1688   :  { %v3467_v49 = vsub.f32 %v3451_v31, %v3463_v36  ;;  %v3464_v19 = vmul.f32 0.0078125, %v3458_v41 }
0x1689   :  { %v3462_v20 = vpop.xlane.xlu1 %3461 }
0x168a   :  { %v3468_v57 = vsub.f32 %v3452_v60, %v3464_v19  ;;  %v3466_v40 = vmul.f32 0.0078125, %v3462_v20  ;;  %v3471_v24 = vmul.f32 %v3467_v49, %v3467_v49  ;;  %v5093_v19 = vld [vmem:[%s6580_s10 + $0x80] sm:$0xff]   ;;  %v5095_v20 = vld [vmem:[%s6580_s10 + $0x88] sm:$0xff]  }
0x168b   :  { %v3460_v50 = vpop.xlane.xlu0 %3459 }
0x168c   :  { %v6338_v18 = vsub.f32 %v3454_v35, %v3466_v40  ;;  %v3465_v5 = vmul.f32 0.0078125, %v3460_v50  ;;  %3475 = vadd.xlane.f32.xlu0 %v3471_v24  ;;  %v3472_v4 = vmul.f32 %v3468_v57, %v3468_v57  ;;  %v5097_v40 = vld [vmem:[%s6580_s10 + $0x90] sm:$0xff]   ;;  %v5098_v24 = vld [vmem:[%s6580_s10 + $0xd8] sm:$0xff]  }
0x168d   :  { %v5099_v50 = vld [vmem:[%s6580_s10 + $0x98] sm:$0xff]  }
0x168e   :  { %v3469_v9 = vsub.f32 %v3453_v54, %v3465_v5  ;;  %3477 = vadd.xlane.f32.xlu1 %v3472_v4  ;;  %v3474_v22 = vmul.f32 %v6338_v18, %v6338_v18  ;;  %v5101_v5 = vld [vmem:[%s6580_s10 + $0xa0] sm:$0xff]   ;;  %v5102_v4 = vld [vmem:[%s6580_s10 + $0xe8] sm:$0xff]  }
0x1690   :  { %v3473_v63 = vmul.f32 %v3469_v9, %v3469_v9 }
0x1692   :  { %3481 = vadd.xlane.f32.xlu1 %v3474_v22  ;;  %3479 = vadd.xlane.f32.xlu0 %v3473_v63  ;;  %v5104_v22 = vld [vmem:[%s6580_s10 + $0xf0] sm:$0xff]  }
0x1693   :  { %v5105_v63 = vld [vmem:[%s6580_s10 + $0xb0] sm:$0xff]  }
0x1719   :  { %v3476_v26 = vpop.xlane.xlu0 %3475 }
0x171a   :  { %v3483_v46 = vmul.f32 0.0078125, %v3476_v26 }
0x171b   :  { %v3478_v8 = vpop.xlane.xlu1 %3477 }
0x171c   :  { %v3487_v29 = vadd.f32 1e-07, %v3483_v46  ;;  %v3484_v15 = vmul.f32 0.0078125, %v3478_v8 }
0x171e   :  { %5276 = vrsqrt.f32 %v3487_v29  ;;  %v3488_v30 = vadd.f32 1e-07, %v3484_v15 }
0x171f   :  { %v3482_v27 = vpop.xlane.xlu1 %3481  ;;  %v3480_v25 = vpop.xlane.xlu0 %3479 }
0x1720   :  { %5278 = vrsqrt.f32 %v3488_v30  ;;  %v3486_v55 = vmul.f32 0.0078125, %v3482_v27  ;;  %v3485_v7 = vmul.f32 0.0078125, %v3480_v25 }
0x1722   :  { %v3490_v23 = vadd.f32 1e-07, %v3486_v55  ;;  %v3489_v6 = vadd.f32 1e-07, %v3485_v7 }
0x1724   :  { %5280 = vrsqrt.f32 %v3490_v23 }
0x1725   :  { %5282 = vrsqrt.f32 %v3489_v6 }
0x1728   :  { %v5277_v28 = vpop.eup %5276 }
0x1729   :  { %v3495_v52 = vmul.f32 %v5277_v28, %v3467_v49  ;;  %v5092_v49 = vld [vmem:[%s6580_s10 + $0xc0] sm:$0xff]  }
0x172a   :  { %v5279_v53 = vpop.eup %5278  ;;  %4501 = vmatprep.subr.bf16.mxu0 %v5092_v49 }
0x172b   :  { %v3496_v31 = vmul.f32 %v5279_v53, %v3468_v57  ;;  %v3503_v32 = vmul.f32 %v3502_v58, %v3495_v52  ;;  %4502 = vmatpush3.bf16.msra.mxu0 %v5093_v19  ;;  %v5096_v57 = vld [vmem:[%s6580_s10 + $0xd0] sm:$0xff]  }
0x172d   :  { %v3504_v33 = vmul.f32 %v3502_v58, %v3496_v31  ;;  %v6389_v54 = vadd.f32 %v3510_v0, %v3503_v32 }
0x172e   :  { %v5281_v60 = vpop.eup %5280 }
0x172f   :  { %v5283_v35 = vpop.eup %5282  ;;  %v3512_v62 = vadd.f32 %v3510_v0, %v3504_v33  ;;  %v3498_v3 = vmul.f32 %v5281_v60, %v6338_v18  ;;  %v5100_v18 = vld [vmem:[%s6580_s10 + $0xe0] sm:$0xff]  }
0x1730   :  { %v3497_v12 = vmul.f32 %v5283_v35, %v3469_v9  ;;  %v5103_v9 = vld [vmem:[%s6580_s10 + $0xa8] sm:$0xff]  }
0x1731   :  { %v3515_v59 = vpack.c.bf16 %v3512_v62, %v6389_v54  ;;  %v3506_v21 = vmul.f32 %v3502_v58, %v3498_v3 }
0x1732   :  { %v3505_v10 = vmul.f32 %v3502_v58, %v3497_v12 }
0x1733   :  { %3641 = vmatmul.mubr.bf16.vlgmr.msra.gmra.mrb[52].mxu1 %v3515_v59  ;;  %v3514_v41 = vadd.f32 %v3510_v0, %v3506_v21 }
0x1734   :  { %3650 = vmatprep.mubr.bf16.mxu1 %v5313_v47  ;;  %v6394_v36 = vadd.f32 %v3510_v0, %v3505_v10  ;;  %v5094_v47 = vld [vmem:[%s6580_s10 + $0xc8] sm:$0xff]  }
0x1735   :  { %4503 = vmatprep.subr.bf16.mxu0 %v5094_v47 }
0x1736   :  { %v3516_v14 = vpack.c.bf16 %v3514_v41, %v6394_v36  ;;  %4504 = vmatpush3.bf16.msra.mxu0 %v5095_v20 }
0x1737   :  { %4505 = vmatprep.subr.bf16.mxu0 %v5096_v57 }
0x173a   :  { %4506 = vmatpush3.bf16.msra.mxu0 %v5097_v40 }
0x173b   :  { %3651 = vmatmul.mubr.bf16.gmra.mrb[56].mxu1 %v3516_v14  ;;  %4507 = vmatprep.subr.bf16.mxu0 %v5098_v24 }
0x173e   :  { %4508 = vmatpush3.bf16.msra.mxu0 %v5099_v50 }
0x173f   :  { %4509 = vmatprep.subr.bf16.mxu0 %v5100_v18 }
0x1742   :  { %4510 = vmatpush3.bf16.msra.mxu0 %v5101_v5 }
0x1743   :  { %4511 = vmatprep.subr.bf16.mxu0 %v5102_v4 }
0x1746   :  { %4512 = vmatpush3.bf16.msra.mxu0 %v5103_v9 }
0x1747   :  { %4513 = vmatprep.subr.bf16.mxu0 %v5104_v22 }
0x174a   :  { %4514 = vmatpush3.bf16.msra.mxu0 %v5105_v63 }
0x174b   :  { %4515 = vmatprep.subr.bf16.mxu0 %v5106_v17 }
0x174e   :  { %4516 = vmatpush3.bf16.msra.mxu0 %v5107_v45 }
0x1806   :  { %v3642_v13 = vpop.f32.mrb[52].mxu1 }
0x1807   :  { %v6450_v39 = vadd.f32 %v3642_v13, %v3521_v42  ;;  %v3644_v1 = vpop.f32.mrb[53].mxu1 }
0x1808   :  { %v6452_v43 = vadd.f32 %v3644_v1, %v3525_v16  ;;  %v3646_v2 = vpop.f32.mrb[54].mxu1 }
0x1809   :  { %v3661_v38 = vmul.f32 %v6450_v39, %v6450_v39  ;;  %v6456_v37 = vadd.f32 %v3646_v2, %v3521_v42  ;;  %v3648_v26 = vpop.f32.mrb[55].mxu1 }
0x180a   :  { %v3662_v46 = vmul.f32 %v6452_v43, %v6452_v43  ;;  %v6460_v8 = vadd.f32 %v3648_v26, %v3525_v16 }
0x180b   :  { %v3669_v51 = vmul.f32 %v3661_v38, %v6450_v39  ;;  %v3663_v56 = vmul.f32 %v6456_v37, %v6456_v37 }
0x180c   :  { %v3670_v29 = vmul.f32 %v3662_v46, %v6452_v43  ;;  %v3664_v15 = vmul.f32 %v6460_v8, %v6460_v8 }
0x180d   :  { %v3677_v30 = vmul.f32 0.044715, %v3669_v51  ;;  %v3671_v27 = vmul.f32 %v3663_v56, %v6456_v37 }
0x180e   :  { %v3678_v25 = vmul.f32 0.044715, %v3670_v29  ;;  %v3672_v55 = vmul.f32 %v3664_v15, %v6460_v8  ;;  %v3652_v7 = vpop.f32.mrb[56].mxu1 }
0x180f   :  { %v3685_v23 = vadd.f32 %v3677_v30, %v6450_v39  ;;  %v3679_v6 = vmul.f32 0.044715, %v3671_v27  ;;  %v6471_v58 = vadd.f32 %v3652_v7, %v3521_v42  ;;  %v3654_v28 = vpop.f32.mrb[57].mxu1 }
0x1810   :  { %v3686_v52 = vadd.f32 %v3678_v25, %v6452_v43  ;;  %v3680_v53 = vmul.f32 0.044715, %v3672_v55  ;;  %v6474_v31 = vadd.f32 %v3654_v28, %v3525_v16  ;;  %v3656_v32 = vpop.f32.mrb[58].mxu1 }
0x1811   :  { %v3693_v0 = vmul.f32 0.7978846, %v3685_v23  ;;  %v3687_v33 = vadd.f32 %v3679_v6, %v6456_v37  ;;  %v3665_v60 = vmul.f32 %v6471_v58, %v6471_v58  ;;  %v6479_v35 = vadd.f32 %v3656_v32, %v3521_v42  ;;  %v3658_v62 = vpop.f32.mrb[59].mxu1 }
0x1812   :  { %v3694_v3 = vmul.f32 0.7978846, %v3686_v52  ;;  %v3688_v12 = vadd.f32 %v3680_v53, %v6460_v8  ;;  %v3666_v59 = vmul.f32 %v6474_v31, %v6474_v31  ;;  %v6484_v21 = vadd.f32 %v3658_v62, %v3525_v16 }
0x1813   :  { %5284 = vtanh.f32 %v3693_v0  ;;  %v3695_v10 = vmul.f32 0.7978846, %v3687_v33  ;;  %v3673_v41 = vmul.f32 %v3665_v60, %v6471_v58  ;;  %v3667_v14 = vmul.f32 %v6479_v35, %v6479_v35 }
0x1814   :  { %5286 = vtanh.f32 %v3694_v3  ;;  %v3696_v49 = vmul.f32 0.7978846, %v3688_v12  ;;  %v3674_v19 = vmul.f32 %v3666_v59, %v6474_v31  ;;  %v3668_v47 = vmul.f32 %v6484_v21, %v6484_v21 }
0x1815   :  { %5288 = vtanh.f32 %v3695_v10  ;;  %v3681_v20 = vmul.f32 0.044715, %v3673_v41  ;;  %v3675_v57 = vmul.f32 %v3667_v14, %v6479_v35 }
0x1816   :  { %5290 = vtanh.f32 %v3696_v49  ;;  %v3682_v40 = vmul.f32 0.044715, %v3674_v19  ;;  %v3676_v24 = vmul.f32 %v3668_v47, %v6484_v21  ;;  %v3740_v49 = vrot.slane %v6381_v44, %v1818_v34 }
0x1817   :  { %v3689_v50 = vadd.f32 %v3681_v20, %v6471_v58  ;;  %v3683_v18 = vmul.f32 0.044715, %v3675_v57 }
0x1818   :  { %v3690_v5 = vadd.f32 %v3682_v40, %v6474_v31  ;;  %v3684_v4 = vmul.f32 0.044715, %v3676_v24 }
0x1819   :  { %v3697_v9 = vmul.f32 0.7978846, %v3689_v50  ;;  %v3691_v22 = vadd.f32 %v3683_v18, %v6479_v35 }
0x181a   :  { %v3698_v63 = vmul.f32 0.7978846, %v3690_v5  ;;  %v3692_v17 = vadd.f32 %v3684_v4, %v6484_v21 }
0x181b   :  { %5292 = vtanh.f32 %v3697_v9  ;;  %v3699_v45 = vmul.f32 0.7978846, %v3691_v22 }
0x181c   :  { %5294 = vtanh.f32 %v3698_v63  ;;  %v3700_v61 = vmul.f32 0.7978846, %v3692_v17 }
0x181d   :  { %v5285_v42 = vpop.eup %5284  ;;  %5296 = vtanh.f32 %v3699_v45 }
0x181e   :  { %v5287_v16 = vpop.eup %5286  ;;  %v3709_v13 = vadd.f32 1.0, %v5285_v42  ;;  %5298 = vtanh.f32 %v3700_v61  ;;  %v3926_v42 = vld [vmem:[%s6582_s11 + $0x8] sm:$0xff] }
0x181f   :  { %v5289_v1 = vpop.eup %5288  ;;  %v3710_v2 = vadd.f32 1.0, %v5287_v16  ;;  %v5314_v16 = vmov 0.0|0.0  }
0x1820   :  { %v5291_v38 = vpop.eup %5290  ;;  %v3717_v26 = vmul.f32 0.5, %v3709_v13  ;;  %v3711_v46 = vadd.f32 1.0, %v5289_v1  ;;  %4893 = vmatprep.subr.bf16.mxu1 %v5314_v16  ;;  %v3927_v13 = vld [vmem:[%s6582_s11 + $0x10] sm:$0xff]  ;;  %v3928_v1 = vld [vmem:[%s6582_s11 + $0x18] sm:$0xff] }
0x1821   :  { %v3712_v51 = vadd.f32 1.0, %v5291_v38  ;;  %v3718_v56 = vmul.f32 0.5, %v3710_v2  ;;  %v4897_v2 = vpack.c.bf16 %v3928_v1, %v3927_v13  ;;  %v3929_v38 = vld [vmem:[%s6582_s11 + $0x20] sm:$0xff] }
0x1822   :  { %v3719_v29 = vmul.f32 0.5, %v3711_v46  ;;  %v3725_v30 = vmul.f32 %v3717_v26, %v6450_v39  ;;  %v3930_v26 = vld [vmem:[%s6582_s11 + $0x28] sm:$0xff] }
0x1823   :  { %v3720_v15 = vmul.f32 0.5, %v3712_v51  ;;  %v3726_v55 = vmul.f32 %v3718_v56, %v6452_v43  ;;  %v4900_v46 = vpack.c.bf16 %v3930_v26, %v3929_v38  ;;  %v3931_v51 = vld [vmem:[%s6582_s11 + $0x30] sm:$0xff]  ;;  %v3932_v56 = vld [vmem:[%s6582_s11 + $0x38] sm:$0xff] }
0x1824   :  { %v3727_v27 = vmul.f32 %v3719_v29, %v6456_v37  ;;  %v4903_v29 = vpack.c.bf16 %v3932_v56, %v3931_v51 }
0x1825   :  { %v5293_v25 = vpop.eup %5292  ;;  %v3728_v7 = vmul.f32 %v3720_v15, %v6460_v8  ;;  %v3933_v15 = vld [vmem:[%s6582_s11 + $0x40] sm:$0xff] }
0x1826   :  { %v5295_v23 = vpop.eup %5294  ;;  %v3733_v6 = vpack.c.bf16 %v3727_v27, %v3725_v30  ;;  %v3713_v28 = vadd.f32 1.0, %v5293_v25  ;;  %v3934_v30 = vld [vmem:[%s6582_s11 + $0x48] sm:$0xff]  ;;  %v3935_v25 = vld [vmem:[%s6582_s11 + $0x50] sm:$0xff] }
0x1827   :  { %v5297_v52 = vpop.eup %5296  ;;  %v3734_v53 = vpack.c.bf16 %v3728_v7, %v3726_v55  ;;  %v3714_v32 = vadd.f32 1.0, %v5295_v23  ;;  %v4906_v27 = vpack.c.bf16 %v3934_v30, %v3933_v15  ;;  %v3936_v55 = vld [vmem:[%s6582_s11 + $0x58] sm:$0xff]  ;;  %v3937_v23 = vld [vmem:[%s6582_s11 + $0x60] sm:$0xff] }
0x1828   :  { %v5299_v0 = vpop.eup %5298  ;;  %v3715_v33 = vadd.f32 1.0, %v5297_v52  ;;  %v3721_v60 = vmul.f32 0.5, %v3713_v28  ;;  %v4909_v7 = vpack.c.bf16 %v3936_v55, %v3935_v25  ;;  %v3939_v28 = vld [vmem:[%s6582_s11 + $0x70] sm:$0xff] }
0x1829   :  { %3869 = vmatprep.mubr.bf16.mxu0 %v3734_v53  ;;  %v3716_v62 = vadd.f32 1.0, %v5299_v0  ;;  %v3722_v3 = vmul.f32 0.5, %v3714_v32  ;;  %v3940_v53 = vld [vmem:[%s6582_s11 + $0x78] sm:$0xff]  ;;  %v5316_v32 = vmov 0.0  }
0x182a   :  { %3870 = vmatmul.mubr.bf16.vlgmr.msra.gmra.mrb[60].mxu0 %v3733_v6  ;;  %v3723_v39 = vmul.f32 0.5, %v3715_v33  ;;  %v3729_v12 = vmul.f32 %v3721_v60, %v6471_v58  ;;  %v3938_v6 = vld [vmem:[%s6582_s11 + $0x68] sm:$0xff]  ;;  %4890 = vmatprep.mubr.msk.f32.mxu1 %vm5315_vm1, %v5316_v32  ;;  %v4915_v0 = vpack.c.bf16 %v3940_v53, %v3939_v28 }
0x182b   :  { %v3724_v37 = vmul.f32 0.5, %v3716_v62  ;;  %v3730_v8 = vmul.f32 %v3722_v3, %v6474_v31  ;;  %v4912_v52 = vpack.c.bf16 %v3938_v6, %v3937_v23 }
0x182c   :  { %v3731_v43 = vmul.f32 %v3723_v39, %v6479_v35 }
0x182d   :  { %v3732_v59 = vmul.f32 %v3724_v37, %v6484_v21 }
0x182e   :  { %v3735_v10 = vpack.c.bf16 %v3731_v43, %v3729_v12 }
0x182f   :  { %v3736_v41 = vpack.c.bf16 %v3732_v59, %v3730_v8  ;;  %v3911_v8 = vrot.slane %v6381_v44, %v2015_v11 }
0x1831   :  { %3876 = vmatprep.mubr.bf16.mxu0 %v3736_v41 }
0x1832   :  { %3877 = vmatmul.mubr.bf16.gmra.mrb[64].mxu0 %v3735_v10 }
0x18fd   :  { %v4517_v14 = vpop.f32.mrb[60].mxu0 }
0x18fe   :  { %v4518_v19 = vpop.f32.mrb[61].mxu0 }
0x18ff   :  { %v4519_v47 = vadd.f32 %v4518_v19, %v4517_v14  ;;  %v4520_v20 = vpop.f32.mrb[62].mxu0 }
0x1900   :  { %v4521_v57 = vpop.f32.mrb[63].mxu0 }
0x1901   :  { %v3872_v58 = vadd.f32 %v4519_v47, %v3740_v49 }
0x1903   :  { %v3884_v35 = vadd.f32 %v3872_v58, %v6389_v54  ;;  %v3925_v54 = vld [vmem:[%s6582_s11] sm:$0xff] }
0x1905   :  { %3886 = vadd.xlane.f32.xlu1 %v3884_v35  ;;  %v4523_v31 = vpop.f32.mrb[64].mxu0 }
0x1906   :  { %v4524_v40 = vpop.f32.mrb[65].mxu0 }
0x1907   :  { %v4525_v21 = vadd.f32 %v4524_v40, %v4523_v31  ;;  %v4526_v24 = vpop.f32.mrb[66].mxu0 }
0x1908   :  { %v4527_v50 = vpop.f32.mrb[67].mxu0 }
0x1909   :  { %v3879_v18 = vadd.f32 %v4525_v21, %v3740_v49  ;;  %v4315_v49 = vld [vmem:[%s6576_s7 + $0x18] ss:$0 sm:$0xff] }
0x190b   :  { %v3885_v5 = vadd.f32 %v3879_v18, %v6394_v36  ;;  %v4894_v36 = vpack.c.bf16 %v3926_v42, %v3925_v54 }
0x190d   :  { %3888 = vadd.xlane.f32.xlu0 %v3885_v5  ;;  %4895 = vmatpush3.bf16.msra.mxu1 %v4894_v36 }
0x190e   :  { %4896 = vmatprep.subr.bf16.mxu1 %v5314_v16 }
0x1911   :  { %4898 = vmatpush3.bf16.msra.mxu1 %v4897_v2 }
0x1912   :  { %4899 = vmatprep.subr.bf16.mxu1 %v5314_v16 }
0x1915   :  { %4901 = vmatpush3.bf16.msra.mxu1 %v4900_v46 }
0x1916   :  { %4902 = vmatprep.subr.bf16.mxu1 %v5314_v16 }
0x1919   :  { %4904 = vmatpush3.bf16.msra.mxu1 %v4903_v29 }
0x191a   :  { %4905 = vmatprep.subr.bf16.mxu1 %v5314_v16 }
0x191d   :  { %4907 = vmatpush3.bf16.msra.mxu1 %v4906_v27 }
0x191e   :  { %4908 = vmatprep.subr.bf16.mxu1 %v5314_v16 }
0x1921   :  { %4910 = vmatpush3.bf16.msra.mxu1 %v4909_v7 }
0x1922   :  { %4911 = vmatprep.subr.bf16.mxu1 %v5314_v16 }
0x1925   :  { %4913 = vmatpush3.bf16.msra.mxu1 %v4912_v52 }
0x1926   :  { %4914 = vmatprep.subr.bf16.mxu1 %v5314_v16 }
0x1929   :  { %4916 = vmatpush3.bf16.msra.mxu1 %v4915_v0 }
0x1992   :  { %v3887_v4 = vpop.xlane.xlu1 %3886 }
0x1993   :  { %v3890_v9 = vmul.f32 0.0078125, %v3887_v4 }
0x1995   :  { %v3892_v34 = vsub.f32 %v3884_v35, %v3890_v9 }
0x1997   :  { %v3894_v22 = vmul.f32 %v3892_v34, %v3892_v34 }
0x1999   :  { %3896 = vadd.xlane.f32.xlu1 %v3894_v22 }
0x199a   :  { %v3889_v63 = vpop.xlane.xlu0 %3888 }
0x199b   :  { %v3891_v17 = vmul.f32 0.0078125, %v3889_v63 }
0x199d   :  { %v3893_v45 = vsub.f32 %v3885_v5, %v3891_v17 }
0x199f   :  { %v3895_v61 = vmul.f32 %v3893_v45, %v3893_v45 }
0x19a1   :  { %3898 = vadd.xlane.f32.xlu0 %v3895_v61 }
0x1a26   :  { %v3897_v33 = vpop.xlane.xlu1 %3896 }
0x1a27   :  { %v3900_v60 = vmul.f32 0.0078125, %v3897_v33 }
0x1a29   :  { %v3902_v62 = vadd.f32 1e-07, %v3900_v60 }
0x1a2b   :  { %5300 = vrsqrt.f32 %v3902_v62 }
0x1a2e   :  { %v3899_v3 = vpop.xlane.xlu0 %3898 }
0x1a2f   :  { %v3901_v39 = vmul.f32 0.0078125, %v3899_v3 }
0x1a31   :  { %v3903_v37 = vadd.f32 1e-07, %v3901_v39 }
0x1a33   :  { %5302 = vrsqrt.f32 %v3903_v37 }
0x1a35   :  { %v5301_v12 = vpop.eup %5300 }
0x1a36   :  { %v3906_v43 = vmul.f32 %v5301_v12, %v3892_v34 }
0x1a38   :  { %v3912_v41 = vmul.f32 %v3911_v8, %v3906_v43 }
0x1a3a   :  { %v3918_v47 = vadd.f32 %v4315_v49, %v3912_v41 }
0x1a3d   :  { %v5303_v59 = vpop.eup %5302 }
0x1a3e   :  { %v3907_v10 = vmul.f32 %v5303_v59, %v3893_v45 }
0x1a40   :  { %v3913_v14 = vmul.f32 %v3911_v8, %v3907_v10 }
0x1a42   :  { %v3919_v19 = vadd.f32 %v4315_v49, %v3913_v14 }
0x1a44   :  { %v3921_v20 = vrot.slane %v3919_v19, 7 }
0x1a46   :  { %v3924_v57 = vsel %vm3923_vm2, %v3918_v47, %v3921_v20 }
0x1a47   :  { %4891 = vmatmul.mubr.f32.vlgmr.msra.gmra.mrb[60].mxu1 %v3924_v57 }
0x1b1a   :  { %v4014_v58 = vpop.f32.mrb[60].mxu1 }
0x1b1b   :  { %v4015_v11 = vadd.f32 %v4316_v48, %v4014_v58  ;;  %v4892_v44 = vpop.f32.mrb[61].mxu1 }
0x1b1d   :  { %4018 = vst [vmem:[%s6584_s13] sm:$0x3] %v4015_v11 }

</bundles_post_ra>
